<compile_context>
chip_gen: v5e
topology: v5e:2x2
jax: 0.10.0
libtpu: 0.0.40
codegen_flags: <defaults>
</compile_context>

<pallas_src>
import math
from functools import partial

import numpy as np

import jax
import jax.numpy as jnp
from jax.experimental import pallas as pl
from jax.experimental.pallas import tpu as pltpu


N_TILE = 16          # batch images per grid step (multiple of 8/16 for alignment)
LANE = 128
KH = 5               # conv kernel height (= taps per deep-K fusion)
H_IN = 32            # spatial size implied by fc1 = Linear(16*5*5, 120)
OH1, OH2 = 28, 10    # conv1 / conv2 output heights (valid 5x5)


# ----------------------------------------------------------------------------
# Fused Pallas kernel: whole network for one batch tile, everything in VMEM.
# ----------------------------------------------------------------------------
def _lenet_kernel(x_ref,
                  m1_ref, b1_ref, m2_ref, b2_ref,
                  g1_ref, bg1_ref, w2t_ref, bf2_ref, w3t_ref, bf3_ref,
                  o_ref):
    f32, bf16 = jnp.float32, jnp.bfloat16
    N = N_TILE

    def conv_pool(x_bf16, m_ref, b_ref, oh):
        # Deep-K fusion: concat the KH row-shifted slabs along lanes (each slab
        # is a static, sublane-aligned slice) -> one MXU matmul with K = 5*128.
        xcat = jnp.concatenate(
            [x_bf16[i * N:(i + oh) * N, :] for i in range(KH)], axis=1)
        z = jnp.dot(xcat, m_ref[...], preferred_element_type=f32) + b_ref[...]
        # Column pool folded into the weight: output lanes = [even | odd].
        col = z.shape[1] // 2                               # 128-aligned halves
        c = jnp.maximum(jnp.maximum(z[:, :col], z[:, col:]), 0.0)   # relu(max)
        # Row pool: rows are (oh, n) h-major, so pairs are adjacent N-row
        # blocks -> layout-preserving reshape + VPU max (no MXU, stays f32).
        ph = oh // 2
        c3 = c.reshape(ph, 2 * N, col)
        return jnp.maximum(c3[:, :N, :], c3[:, N:, :]).reshape(ph * N, col)

    x = x_ref[...]                                          # (32*N, 128) bf16
    p1 = conv_pool(x, m1_ref, b1_ref, OH1)                  # (14*N, 128) f32
    p2 = conv_pool(p1.astype(bf16), m2_ref, b2_ref, OH2)    # (5*N, 128)  f32

    # fc1: NCHW flatten folded into g1; deep-K concat over the 5 h-blocks.
    p2b = p2.astype(bf16)
    xf = jnp.concatenate([p2b[h * N:(h + 1) * N, :] for h in range(5)], axis=1)
    z1 = jnp.maximum(
        jnp.dot(xf, g1_ref[...], preferred_element_type=f32) + bg1_ref[...], 0.0)
    z2 = jnp.maximum(
        jnp.dot(z1.astype(bf16), w2t_ref[...], preferred_element_type=f32)
        + bf2_ref[...], 0.0)
    out = jnp.dot(z2.astype(bf16), w3t_ref[...], preferred_element_type=f32) \
        + bf3_ref[...]
    o_ref[...] = out.astype(o_ref.dtype)                    # (N, 128) lane-dense


# ----------------------------------------------------------------------------
# One-time, batch-independent weight preparation (hoisted out of the kernel).
# ----------------------------------------------------------------------------
def prepare_lenet(params):
    def fused_conv_weight(w, b, w_in):
        # Banded conv weight per kernel row, stacked vertically (deep-K) with
        # the 2x2 column-pool even/odd selection folded into the columns.
        w_np = np.asarray(w, np.float32)                    # (cout, cin, KH, KW)
        cout, cin, kh, kw = w_np.shape
        ow = w_in - kw + 1
        pw = ow // 2
        j = np.arange(w_in)[:, None] - np.arange(ow)[None, :]
        valid = ((j >= 0) & (j < kw)).astype(np.float32)
        jc = np.clip(j, 0, kw - 1)
        m = np.zeros((kh * LANE, 2 * LANE), np.float32)
        for i in range(kh):
            wk = np.transpose(w_np[:, :, i, :], (2, 1, 0))          # (kw,cin,cout)
            band = wk[jc] * valid[:, :, None, None]                 # (win,ow,cin,cout)
            band = np.transpose(band, (0, 2, 1, 3)).reshape(w_in * cin, ow * cout)
            band4 = band.reshape(w_in * cin, pw, 2, cout)
            rows = slice(i * LANE, i * LANE + w_in * cin)
            m[rows, :pw * cout] = band4[:, :, 0, :].reshape(w_in * cin, pw * cout)
            m[rows, LANE:LANE + pw * cout] = \
                band4[:, :, 1, :].reshape(w_in * cin, pw * cout)
        bias = np.zeros((1, 2 * LANE), np.float32)
        bvec = np.tile(np.asarray(b, np.float32), pw)
        bias[0, :pw * cout] = bvec
        bias[0, LANE:LANE + pw * cout] = bvec
        return jnp.asarray(m, jnp.bfloat16), jnp.asarray(bias, jnp.float32)

    m1, b1 = fused_conv_weight(params["conv1_w"], params["conv1_b"], 32)  # (640,256)
    m2, b2 = fused_conv_weight(params["conv2_w"], params["conv2_b"], 14)  # (640,256)

    # fc1 with the torch NCHW flatten (c*25 + h*5 + w) folded in; 5 h-blocks
    # of 128 lanes stacked vertically -> single (640, 128) deep-K weight.
    c2, ph2, pw2 = 16, 5, 5
    wf1 = np.asarray(params["fc1_w"], np.float32).reshape(120, c2, ph2, pw2)
    g1 = np.zeros((ph2 * LANE, LANE), np.float32)
    for h in range(ph2):
        blk = np.transpose(wf1[:, :, h, :], (2, 1, 0)).reshape(pw2 * c2, 120)
        g1[h * LANE: h * LANE + pw2 * c2, :120] = blk
    bg1 = np.zeros((1, LANE), np.float32)
    bg1[0, :120] = np.asarray(params["fc1_b"], np.float32)

    def pad2(a, rows, cols):
        out = np.zeros((rows, cols), np.float32)
        out[:a.shape[0], :a.shape[1]] = a
        return out

    w2t = pad2(np.asarray(params["fc2_w"], np.float32).T, LANE, LANE)
    bf2 = pad2(np.asarray(params["fc2_b"], np.float32)[None, :], 1, LANE)
    w3t = pad2(np.asarray(params["fc3_w"], np.float32).T, LANE, LANE)
    bf3 = pad2(np.asarray(params["fc3_b"], np.float32)[None, :], 1, LANE)

    return (m1, b1, m2, b2,
            jnp.asarray(g1, jnp.bfloat16), jnp.asarray(bg1, jnp.float32),
            jnp.asarray(w2t, jnp.bfloat16), jnp.asarray(bf2, jnp.float32),
            jnp.asarray(w3t, jnp.bfloat16), jnp.asarray(bf3, jnp.float32))


# ----------------------------------------------------------------------------
# Forward wrapper: batch-tiled 1-D grid, weights resident via constant maps.
# ----------------------------------------------------------------------------
@jax.jit
def lenet_forward(x_nchw, ops):
    B, C, H, W = x_nchw.shape
    pad_b = (-B) % N_TILE
    xp = jnp.pad(x_nchw, ((0, pad_b), (0, 0), (0, 0), (0, 0))) if pad_b else x_nchw
    Bp = B + pad_b
    T = Bp // N_TILE

    # NCHW -> h-major / batch-minor slab: row = (tile, h, n), lane = (w, c),
    # lanes zero-padded 96 -> 128.
    x = jnp.transpose(xp, (0, 2, 3, 1)).reshape(T, N_TILE, H, W * C)
    x = jnp.transpose(x, (0, 2, 1, 3)).reshape(T * H * N_TILE, W * C)
    x = jnp.pad(x, ((0, 0), (0, LANE - W * C))).astype(jnp.bfloat16)

    def const_spec(a):
        nd = a.ndim
        return pl.BlockSpec(a.shape, lambda i, _nd=nd: (0,) * _nd)

    out = pl.pallas_call(
        _lenet_kernel,
        out_shape=jax.ShapeDtypeStruct((Bp, LANE), jnp.float32),
        grid=(T,),
        in_specs=[pl.BlockSpec((H * N_TILE, LANE), lambda i: (i, 0))]
                 + [const_spec(op) for op in ops],
        out_specs=pl.BlockSpec((N_TILE, LANE), lambda i: (i, 0)),
        compiler_params=pltpu.CompilerParams(
            dimension_semantics=("parallel",)),
    )(x, *ops)
    return out[:B, :10]


# ----------------------------------------------------------------------------
# Parameters (deterministic, PyTorch-default-style uniform init)
# ----------------------------------------------------------------------------
def _uniform(key, shape, bound):
    return jax.random.uniform(key, shape, jnp.float32, -bound, bound)


def init_params(key):
    ks = jax.random.split(key, 10)
    p = {}
    p["conv1_w"] = _uniform(ks[0], (6, 3, 5, 5), 1.0 / math.sqrt(3 * 5 * 5))
    p["conv1_b"] = _uniform(ks[1], (6,), 1.0 / math.sqrt(3 * 5 * 5))
    p["conv2_w"] = _uniform(ks[2], (16, 6, 5, 5), 1.0 / math.sqrt(6 * 5 * 5))
    p["conv2_b"] = _uniform(ks[3], (16,), 1.0 / math.sqrt(6 * 5 * 5))
    p["fc1_w"] = _uniform(ks[4], (120, 400), 1.0 / math.sqrt(400))
    p["fc1_b"] = _uniform(ks[5], (120,), 1.0 / math.sqrt(400))
    p["fc2_w"] = _uniform(ks[6], (84, 120), 1.0 / math.sqrt(120))
    p["fc2_b"] = _uniform(ks[7], (84,), 1.0 / math.sqrt(120))
    p["fc3_w"] = _uniform(ks[8], (10, 84), 1.0 / math.sqrt(84))
    p["fc3_b"] = _uniform(ks[9], (10,), 1.0 / math.sqrt(84))
    return p


# ----------------------------------------------------------------------------
# Plain-JAX reference (mirrors torch Net.forward) for validation.
# ----------------------------------------------------------------------------
def reference_forward(x_nchw, params):
    x = jnp.transpose(x_nchw, (0, 2, 3, 1)).astype(jnp.float32)   # NHWC

    def conv(x, w, b):
        oc, ic, kh, kw = w.shape
        n, h, ww, _ = x.shape
        oh, ow = h - kh + 1, ww - kw + 1
        cols = [x[:, i:i + oh, j:j + ow, :] for i in range(kh) for j in range(kw)]
        patches = jnp.concatenate(cols, axis=-1).reshape(n * oh * ow, kh * kw * ic)
        w2 = jnp.transpose(w, (2, 3, 1, 0)).reshape(kh * kw * ic, oc)
        return (patches @ w2 + b).reshape(n, oh, ow, oc)

    def pool(x):
        return jnp.maximum(
            jnp.maximum(x[:, 0::2, 0::2, :], x[:, 0::2, 1::2, :]),
            jnp.maximum(x[:, 1::2, 0::2, :], x[:, 1::2, 1::2, :]))

    x = pool(jax.nn.relu(conv(x, params["conv1_w"], params["conv1_b"])))
    x = pool(jax.nn.relu(conv(x, params["conv2_w"], params["conv2_b"])))
    n = x.shape[0]
    x = jnp.transpose(x, (0, 3, 1, 2)).reshape(n, 16 * 5 * 5)
    x = jax.nn.relu(x @ params["fc1_w"].T + params["fc1_b"])
    x = jax.nn.relu(x @ params["fc2_w"].T + params["fc2_b"])
    return x @ params["fc3_w"].T + params["fc3_b"]


if __name__ == "__main__":
    key = jax.random.PRNGKey(0)
    params = init_params(key)
    # Net's fc1 (16*5*5) implies 3x32x32 input; batch=20 exercises batch
    # padding (-> 32) and a 2-step parallel grid.
    batch = 20
    x = jax.random.normal(jax.random.fold_in(key, 123),
                          (batch, 3, 32, 32), jnp.float32)

    ops = prepare_lenet(params)                      # hoisted, batch-independent
    out = jax.block_until_ready(lenet_forward(x, ops))

    ref = jax.block_until_ready(reference_forward(x, params))
    assert out.shape == (batch, 10)
    assert bool(jnp.all(jnp.isfinite(out)))
    max_err = float(jnp.max(jnp.abs(out - ref)))
    assert max_err < 5e-2, f"mismatch vs reference: {max_err}"
    print("KERNEL_OK")
</pallas_src>

<mosaic_0001>
module attributes {stable_mosaic.version = 11 : i64} {
  func.func @_lenet_kernel(%arg0: i32, %arg1: memref<512x128xbf16, #tpu.memory_space<vmem>>, %arg2: memref<640x256xbf16, #tpu.memory_space<vmem>>, %arg3: memref<1x256xf32, #tpu.memory_space<vmem>>, %arg4: memref<640x256xbf16, #tpu.memory_space<vmem>>, %arg5: memref<1x256xf32, #tpu.memory_space<vmem>>, %arg6: memref<640x128xbf16, #tpu.memory_space<vmem>>, %arg7: memref<1x128xf32, #tpu.memory_space<vmem>>, %arg8: memref<128x128xbf16, #tpu.memory_space<vmem>>, %arg9: memref<1x128xf32, #tpu.memory_space<vmem>>, %arg10: memref<128x128xbf16, #tpu.memory_space<vmem>>, %arg11: memref<1x128xf32, #tpu.memory_space<vmem>>, %arg12: memref<16x128xf32, #tpu.memory_space<vmem>>) attributes {dimension_semantics = [#tpu.dimension_semantics<parallel>], iteration_bounds = array<i64: 2>, scalar_prefetch = 0 : i64, scratch_operands = 0 : i64, tpu.core_type = #tpu.core_type<tc>, window_params = [{transform_indices = @transform_0, window_bounds = array<i64: 512, 128>}, {pipeline_mode = #tpu.pipeline_mode<synchronous>, transform_indices = @transform_1, window_bounds = array<i64: 640, 256>}, {pipeline_mode = #tpu.pipeline_mode<synchronous>, transform_indices = @transform_2, window_bounds = array<i64: 1, 256>}, {pipeline_mode = #tpu.pipeline_mode<synchronous>, transform_indices = @transform_3, window_bounds = array<i64: 640, 256>}, {pipeline_mode = #tpu.pipeline_mode<synchronous>, transform_indices = @transform_4, window_bounds = array<i64: 1, 256>}, {pipeline_mode = #tpu.pipeline_mode<synchronous>, transform_indices = @transform_5, window_bounds = array<i64: 640, 128>}, {pipeline_mode = #tpu.pipeline_mode<synchronous>, transform_indices = @transform_6, window_bounds = array<i64: 1, 128>}, {pipeline_mode = #tpu.pipeline_mode<synchronous>, transform_indices = @transform_7, window_bounds = array<i64: 128, 128>}, {pipeline_mode = #tpu.pipeline_mode<synchronous>, transform_indices = @transform_8, window_bounds = array<i64: 1, 128>}, {pipeline_mode = #tpu.pipeline_mode<synchronous>, transform_indices = @transform_9, window_bounds = array<i64: 128, 128>}, {pipeline_mode = #tpu.pipeline_mode<synchronous>, transform_indices = @transform_10, window_bounds = array<i64: 1, 128>}, {transform_indices = @transform_11, window_bounds = array<i64: 16, 128>}]} {
    %c0 = arith.constant 0 : index
    %c0_0 = arith.constant 0 : index
    %0 = vector.load %arg1[%c0, %c0_0] : memref<512x128xbf16, #tpu.memory_space<vmem>>, vector<512x128xbf16>
    %1 = vector.extract_strided_slice %0 {offsets = [0, 0], sizes = [448, 128], strides = [1, 1]} : vector<512x128xbf16> to vector<448x128xbf16>
    %2 = vector.extract_strided_slice %0 {offsets = [16, 0], sizes = [448, 128], strides = [1, 1]} : vector<512x128xbf16> to vector<448x128xbf16>
    %3 = vector.extract_strided_slice %0 {offsets = [32, 0], sizes = [448, 128], strides = [1, 1]} : vector<512x128xbf16> to vector<448x128xbf16>
    %4 = vector.extract_strided_slice %0 {offsets = [48, 0], sizes = [448, 128], strides = [1, 1]} : vector<512x128xbf16> to vector<448x128xbf16>
    %5 = vector.extract_strided_slice %0 {offsets = [64, 0], sizes = [448, 128], strides = [1, 1]} : vector<512x128xbf16> to vector<448x128xbf16>
    %6 = tpu.concatenate %1, %2, %3, %4, %5 in 1 : vector<448x128xbf16>, vector<448x128xbf16>, vector<448x128xbf16>, vector<448x128xbf16>, vector<448x128xbf16> -> vector<448x640xbf16>
    %c0_1 = arith.constant 0 : index
    %c0_2 = arith.constant 0 : index
    %7 = vector.load %arg2[%c0_1, %c0_2] : memref<640x256xbf16, #tpu.memory_space<vmem>>, vector<640x256xbf16>
    %cst = arith.constant dense<0.000000e+00> : vector<448x256xf32>
    %8 = tpu.matmul %6, %7, %cst {dimension_numbers = #tpu.dot_dimension_numbers<[1], [0], [0], [1], [0, 0, 1, 1], [], []>} : vector<448x640xbf16>, vector<640x256xbf16>, vector<448x256xf32> -> vector<448x256xf32>
    %c0_3 = arith.constant 0 : index
    %c0_4 = arith.constant 0 : index
    %9 = vector.load %arg3[%c0_3, %c0_4] : memref<1x256xf32, #tpu.memory_space<vmem>>, vector<1x256xf32>
    %10 = vector.broadcast %9 : vector<1x256xf32> to vector<448x256xf32>
    %11 = arith.addf %8, %10 : vector<448x256xf32>
    %12 = vector.extract_strided_slice %11 {offsets = [0, 0], sizes = [448, 128], strides = [1, 1]} : vector<448x256xf32> to vector<448x128xf32>
    %13 = vector.extract_strided_slice %11 {offsets = [0, 128], sizes = [448, 128], strides = [1, 1]} : vector<448x256xf32> to vector<448x128xf32>
    %14 = arith.maximumf %12, %13 : vector<448x128xf32>
    %cst_5 = arith.constant 0.000000e+00 : f32
    %15 = vector.broadcast %cst_5 : f32 to vector<448x128xf32>
    %16 = arith.maximumf %14, %15 : vector<448x128xf32>
    %17 = vector.shape_cast %16 : vector<448x128xf32> to vector<14x32x128xf32>
    %18 = vector.extract_strided_slice %17 {offsets = [0, 0, 0], sizes = [14, 16, 128], strides = [1, 1, 1]} : vector<14x32x128xf32> to vector<14x16x128xf32>
    %19 = vector.extract_strided_slice %17 {offsets = [0, 16, 0], sizes = [14, 16, 128], strides = [1, 1, 1]} : vector<14x32x128xf32> to vector<14x16x128xf32>
    %20 = arith.maximumf %18, %19 : vector<14x16x128xf32>
    %21 = vector.shape_cast %20 : vector<14x16x128xf32> to vector<224x128xf32>
    %22 = arith.truncf %21 : vector<224x128xf32> to vector<224x128xbf16>
    %23 = vector.extract_strided_slice %22 {offsets = [0, 0], sizes = [160, 128], strides = [1, 1]} : vector<224x128xbf16> to vector<160x128xbf16>
    %24 = vector.extract_strided_slice %22 {offsets = [16, 0], sizes = [160, 128], strides = [1, 1]} : vector<224x128xbf16> to vector<160x128xbf16>
    %25 = vector.extract_strided_slice %22 {offsets = [32, 0], sizes = [160, 128], strides = [1, 1]} : vector<224x128xbf16> to vector<160x128xbf16>
    %26 = vector.extract_strided_slice %22 {offsets = [48, 0], sizes = [160, 128], strides = [1, 1]} : vector<224x128xbf16> to vector<160x128xbf16>
    %27 = vector.extract_strided_slice %22 {offsets = [64, 0], sizes = [160, 128], strides = [1, 1]} : vector<224x128xbf16> to vector<160x128xbf16>
    %28 = tpu.concatenate %23, %24, %25, %26, %27 in 1 : vector<160x128xbf16>, vector<160x128xbf16>, vector<160x128xbf16>, vector<160x128xbf16>, vector<160x128xbf16> -> vector<160x640xbf16>
    %c0_6 = arith.constant 0 : index
    %c0_7 = arith.constant 0 : index
    %29 = vector.load %arg4[%c0_6, %c0_7] : memref<640x256xbf16, #tpu.memory_space<vmem>>, vector<640x256xbf16>
    %cst_8 = arith.constant dense<0.000000e+00> : vector<160x256xf32>
    %30 = tpu.matmul %28, %29, %cst_8 {dimension_numbers = #tpu.dot_dimension_numbers<[1], [0], [0], [1], [0, 0, 1, 1], [], []>} : vector<160x640xbf16>, vector<640x256xbf16>, vector<160x256xf32> -> vector<160x256xf32>
    %c0_9 = arith.constant 0 : index
    %c0_10 = arith.constant 0 : index
    %31 = vector.load %arg5[%c0_9, %c0_10] : memref<1x256xf32, #tpu.memory_space<vmem>>, vector<1x256xf32>
    %32 = vector.broadcast %31 : vector<1x256xf32> to vector<160x256xf32>
    %33 = arith.addf %30, %32 : vector<160x256xf32>
    %34 = vector.extract_strided_slice %33 {offsets = [0, 0], sizes = [160, 128], strides = [1, 1]} : vector<160x256xf32> to vector<160x128xf32>
    %35 = vector.extract_strided_slice %33 {offsets = [0, 128], sizes = [160, 128], strides = [1, 1]} : vector<160x256xf32> to vector<160x128xf32>
    %36 = arith.maximumf %34, %35 : vector<160x128xf32>
    %cst_11 = arith.constant 0.000000e+00 : f32
    %37 = vector.broadcast %cst_11 : f32 to vector<160x128xf32>
    %38 = arith.maximumf %36, %37 : vector<160x128xf32>
    %39 = vector.shape_cast %38 : vector<160x128xf32> to vector<5x32x128xf32>
    %40 = vector.extract_strided_slice %39 {offsets = [0, 0, 0], sizes = [5, 16, 128], strides = [1, 1, 1]} : vector<5x32x128xf32> to vector<5x16x128xf32>
    %41 = vector.extract_strided_slice %39 {offsets = [0, 16, 0], sizes = [5, 16, 128], strides = [1, 1, 1]} : vector<5x32x128xf32> to vector<5x16x128xf32>
    %42 = arith.maximumf %40, %41 : vector<5x16x128xf32>
    %43 = vector.shape_cast %42 : vector<5x16x128xf32> to vector<80x128xf32>
    %44 = arith.truncf %43 : vector<80x128xf32> to vector<80x128xbf16>
    %45 = vector.extract_strided_slice %44 {offsets = [0, 0], sizes = [16, 128], strides = [1, 1]} : vector<80x128xbf16> to vector<16x128xbf16>
    %46 = vector.extract_strided_slice %44 {offsets = [16, 0], sizes = [16, 128], strides = [1, 1]} : vector<80x128xbf16> to vector<16x128xbf16>
    %47 = vector.extract_strided_slice %44 {offsets = [32, 0], sizes = [16, 128], strides = [1, 1]} : vector<80x128xbf16> to vector<16x128xbf16>
    %48 = vector.extract_strided_slice %44 {offsets = [48, 0], sizes = [16, 128], strides = [1, 1]} : vector<80x128xbf16> to vector<16x128xbf16>
    %49 = vector.extract_strided_slice %44 {offsets = [64, 0], sizes = [16, 128], strides = [1, 1]} : vector<80x128xbf16> to vector<16x128xbf16>
    %50 = tpu.concatenate %45, %46, %47, %48, %49 in 1 : vector<16x128xbf16>, vector<16x128xbf16>, vector<16x128xbf16>, vector<16x128xbf16>, vector<16x128xbf16> -> vector<16x640xbf16>
    %c0_12 = arith.constant 0 : index
    %c0_13 = arith.constant 0 : index
    %51 = vector.load %arg6[%c0_12, %c0_13] : memref<640x128xbf16, #tpu.memory_space<vmem>>, vector<640x128xbf16>
    %cst_14 = arith.constant dense<0.000000e+00> : vector<16x128xf32>
    %52 = tpu.matmul %50, %51, %cst_14 {dimension_numbers = #tpu.dot_dimension_numbers<[1], [0], [0], [1], [0, 0, 1, 1], [], []>} : vector<16x640xbf16>, vector<640x128xbf16>, vector<16x128xf32> -> vector<16x128xf32>
    %c0_15 = arith.constant 0 : index
    %c0_16 = arith.constant 0 : index
    %53 = vector.load %arg7[%c0_15, %c0_16] : memref<1x128xf32, #tpu.memory_space<vmem>>, vector<1x128xf32>
    %54 = vector.broadcast %53 : vector<1x128xf32> to vector<16x128xf32>
    %55 = arith.addf %52, %54 : vector<16x128xf32>
    %cst_17 = arith.constant 0.000000e+00 : f32
    %56 = vector.broadcast %cst_17 : f32 to vector<16x128xf32>
    %57 = arith.maximumf %55, %56 : vector<16x128xf32>
    %58 = arith.truncf %57 : vector<16x128xf32> to vector<16x128xbf16>
    %c0_18 = arith.constant 0 : index
    %c0_19 = arith.constant 0 : index
    %59 = vector.load %arg8[%c0_18, %c0_19] : memref<128x128xbf16, #tpu.memory_space<vmem>>, vector<128x128xbf16>
    %cst_20 = arith.constant dense<0.000000e+00> : vector<16x128xf32>
    %60 = tpu.matmul %58, %59, %cst_20 {dimension_numbers = #tpu.dot_dimension_numbers<[1], [0], [0], [1], [0, 0, 1, 1], [], []>} : vector<16x128xbf16>, vector<128x128xbf16>, vector<16x128xf32> -> vector<16x128xf32>
    %c0_21 = arith.constant 0 : index
    %c0_22 = arith.constant 0 : index
    %61 = vector.load %arg9[%c0_21, %c0_22] : memref<1x128xf32, #tpu.memory_space<vmem>>, vector<1x128xf32>
    %62 = vector.broadcast %61 : vector<1x128xf32> to vector<16x128xf32>
    %63 = arith.addf %60, %62 : vector<16x128xf32>
    %cst_23 = arith.constant 0.000000e+00 : f32
    %64 = vector.broadcast %cst_23 : f32 to vector<16x128xf32>
    %65 = arith.maximumf %63, %64 : vector<16x128xf32>
    %66 = arith.truncf %65 : vector<16x128xf32> to vector<16x128xbf16>
    %c0_24 = arith.constant 0 : index
    %c0_25 = arith.constant 0 : index
    %67 = vector.load %arg10[%c0_24, %c0_25] : memref<128x128xbf16, #tpu.memory_space<vmem>>, vector<128x128xbf16>
    %cst_26 = arith.constant dense<0.000000e+00> : vector<16x128xf32>
    %68 = tpu.matmul %66, %67, %cst_26 {dimension_numbers = #tpu.dot_dimension_numbers<[1], [0], [0], [1], [0, 0, 1, 1], [], []>} : vector<16x128xbf16>, vector<128x128xbf16>, vector<16x128xf32> -> vector<16x128xf32>
    %c0_27 = arith.constant 0 : index
    %c0_28 = arith.constant 0 : index
    %69 = vector.load %arg11[%c0_27, %c0_28] : memref<1x128xf32, #tpu.memory_space<vmem>>, vector<1x128xf32>
    %70 = vector.broadcast %69 : vector<1x128xf32> to vector<16x128xf32>
    %71 = arith.addf %68, %70 : vector<16x128xf32>
    %c0_29 = arith.constant 0 : index
    %c0_30 = arith.constant 0 : index
    %72 = vector.load %arg12[%c0_29, %c0_30] : memref<16x128xf32, #tpu.memory_space<vmem>>, vector<16x128xf32>
    tpu.vector_store %arg12[%c0_29, %c0_30], %71 {strides = array<i32>} : memref<16x128xf32, #tpu.memory_space<vmem>>, vector<16x128xf32>,
    return
  }
  func.func @transform_0(%arg0: i32) -> (i32, i32) {
    %c0_i32 = arith.constant 0 : i32
    %c0_i32_0 = arith.constant 0 : i32
    return %arg0, %c0_i32 : i32, i32
  }
  func.func @transform_1(%arg0: i32) -> (i32, i32) {
    %c0_i32 = arith.constant 0 : i32
    %c0_i32_0 = arith.constant 0 : i32
    %c0_i32_1 = arith.constant 0 : i32
    return %c0_i32, %c0_i32_0 : i32, i32
  }
  func.func @transform_2(%arg0: i32) -> (i32, i32) {
    %c0_i32 = arith.constant 0 : i32
    %c0_i32_0 = arith.constant 0 : i32
    %c0_i32_1 = arith.constant 0 : i32
    return %c0_i32, %c0_i32_0 : i32, i32
  }
  func.func @transform_3(%arg0: i32) -> (i32, i32) {
    %c0_i32 = arith.constant 0 : i32
    %c0_i32_0 = arith.constant 0 : i32
    %c0_i32_1 = arith.constant 0 : i32
    return %c0_i32, %c0_i32_0 : i32, i32
  }
  func.func @transform_4(%arg0: i32) -> (i32, i32) {
    %c0_i32 = arith.constant 0 : i32
    %c0_i32_0 = arith.constant 0 : i32
    %c0_i32_1 = arith.constant 0 : i32
    return %c0_i32, %c0_i32_0 : i32, i32
  }
  func.func @transform_5(%arg0: i32) -> (i32, i32) {
    %c0_i32 = arith.constant 0 : i32
    %c0_i32_0 = arith.constant 0 : i32
    %c0_i32_1 = arith.constant 0 : i32
    return %c0_i32, %c0_i32_0 : i32, i32
  }
  func.func @transform_6(%arg0: i32) -> (i32, i32) {
    %c0_i32 = arith.constant 0 : i32
    %c0_i32_0 = arith.constant 0 : i32
    %c0_i32_1 = arith.constant 0 : i32
    return %c0_i32, %c0_i32_0 : i32, i32
  }
  func.func @transform_7(%arg0: i32) -> (i32, i32) {
    %c0_i32 = arith.constant 0 : i32
    %c0_i32_0 = arith.constant 0 : i32
    %c0_i32_1 = arith.constant 0 : i32
    return %c0_i32, %c0_i32_0 : i32, i32
  }
  func.func @transform_8(%arg0: i32) -> (i32, i32) {
    %c0_i32 = arith.constant 0 : i32
    %c0_i32_0 = arith.constant 0 : i32
    %c0_i32_1 = arith.constant 0 : i32
    return %c0_i32, %c0_i32_0 : i32, i32
  }
  func.func @transform_9(%arg0: i32) -> (i32, i32) {
    %c0_i32 = arith.constant 0 : i32
    %c0_i32_0 = arith.constant 0 : i32
    %c0_i32_1 = arith.constant 0 : i32
    return %c0_i32, %c0_i32_0 : i32, i32
  }
  func.func @transform_10(%arg0: i32) -> (i32, i32) {
    %c0_i32 = arith.constant 0 : i32
    %c0_i32_0 = arith.constant 0 : i32
    %c0_i32_1 = arith.constant 0 : i32
    return %c0_i32, %c0_i32_0 : i32, i32
  }
  func.func @transform_11(%arg0: i32) -> (i32, i32) {
    %c0_i32 = arith.constant 0 : i32
    %c0_i32_0 = arith.constant 0 : i32
    return %arg0, %c0_i32 : i32, i32
  }
}

</mosaic_0001>

<bundles_post_ra>
// kernel: lenet_forward.1
= control target key start
LH: loop header
LB: loop body
LE: loop exit
PB: predicated region body
PF: predicated region fallthrough
CT: control target
= control target key end

     0   :  { %s6054_s17 = smov 0   ;;  %s8714_s0 = inlined_call_operand.vmem [shape: bf16[1024,128], index: 0, kind: input, shape index: {}]   ;;  %s8715_s1 = inlined_call_operand.vmem [shape: bf16[640,256], index: 1, kind: input, shape index: {}]   ;;  %s8716_s2 = inlined_call_operand.vmem [shape: f32[1,256], index: 2, kind: input, shape index: {}]   ;;  %s8717_s3 = inlined_call_operand.vmem [shape: bf16[640,256], index: 3, kind: input, shape index: {}]   ;;  %s8718_s4 = inlined_call_operand.vmem [shape: f32[1,256], index: 4, kind: input, shape index: {}]   ;;  %s8719_s5 = inlined_call_operand.vmem [shape: bf16[640,128], index: 5, kind: input, shape index: {}]   ;;  %s8720_s6 = inlined_call_operand.vmem [shape: f32[1,128], index: 6, kind: input, shape index: {}]   ;;  %s8721_s7 = inlined_call_operand.vmem [shape: bf16[128,128], index: 7, kind: input, shape index: {}]   ;;  %s8722_s8 = inlined_call_operand.vmem [shape: f32[1,128], index: 8, kind: input, shape index: {}]   ;;  %s8723_s9 = inlined_call_operand.vmem [shape: bf16[128,128], index: 9, kind: input, shape index: {}]   ;;  %s8724_s10 = inlined_call_operand.vmem [shape: f32[1,128], index: 10, kind: input, shape index: {}]   ;;  %s8725_s11 = inlined_call_operand.vmem [shape: f32[32,128], index: 11, kind: output, shape index: {}]  }
   0x1 LB: > { %s4662_s18 = sadd.s32 4294967295, %s5992_s17   ;;  %p4666_p0 = scmp.ge.s32.totalorder %s5992_s17, 1  ;;  %s5992_s17 = sphi %s6054_s17, %s21_s17  }
   0x2   : > { %p338_p1 = scmp.lt.s32.totalorder %s5992_s17, 3 }
   0x4   : > { %p339_p2 = pnand %p4666_p0, %p338_p1 }
   0x6   : > { %342 = sbr.rel (%p339_p2) target bundleno = 2490 (0x9ba), region = 64 }
   0xb   : > { %v4857_v0 = vld [vmem:[%s8715_s1 + $0x70] sm:$0xf]  ;;  %v5712_v1 = vld [vmem:[%s8715_s1 + $0x74] sm:$0xf0]  ;;  %v4849_v11 = vld [vmem:[%s8715_s1 + $0x60] sm:$0xf] }
   0xc   : > { %v4921_v2 = vld [vmem:[%s8715_s1 + $0xf0] sm:$0xf]  ;;  %v4858_v3 = vor.u32 %v5712_v1, %v4857_v0  ;;  %v5728_v4 = vld [vmem:[%s8715_s1 + $0xf4] sm:$0xf0]  ;;  %v5710_v13 = vld [vmem:[%s8715_s1 + $0x64] sm:$0xf0] }
   0xd   : > { %v4985_v5 = vld [vmem:[%s8715_s1 + $0x170] sm:$0xf]  ;;  %v5744_v6 = vld [vmem:[%s8715_s1 + $0x174] sm:$0xf0]  ;;  %v4922_v7 = vor.u32 %v5728_v4, %v4921_v2  ;;  %v4913_v14 = vld [vmem:[%s8715_s1 + $0xe0] sm:$0xf]  ;;  %v4850_v16 = vor.u32 %v5710_v13, %v4849_v11 }
   0xe   : > { %v4986_v8 = vor.u32 %v5744_v6, %v4985_v5  ;;  %v5049_v9 = vld [vmem:[%s8715_s1 + $0x1f0] sm:$0xf]  ;;  %v5760_v10 = vld [vmem:[%s8715_s1 + $0x1f4] sm:$0xf0]  ;;  %1132 = vmatpush.bf16.msra.mxu0 %v4858_v3  ;;  %v5726_v15 = vld [vmem:[%s8715_s1 + $0xe4] sm:$0xf0] }
   0xf   : > { %v5050_v12 = vor.u32 %v5760_v10, %v5049_v9  ;;  %1281 = vmatpush.bf16.msra.mxu1 %v4922_v7  ;;  %v4914_v17 = vor.u32 %v5726_v15, %v4913_v14  ;;  %v4977_v18 = vld [vmem:[%s8715_s1 + $0x160] sm:$0xf]  ;;  %v5742_v19 = vld [vmem:[%s8715_s1 + $0x164] sm:$0xf0]  ;;  %v4841_v23 = vld [vmem:[%s8715_s1 + $0x50] sm:$0xf] }
  0x10   : > { %1430 = vmatpush.bf16.msra.mxu2 %v4986_v8  ;;  %v5041_v20 = vld [vmem:[%s8715_s1 + $0x1e0] sm:$0xf]  ;;  %v4978_v21 = vor.u32 %v5742_v19, %v4977_v18  ;;  %v5758_v22 = vld [vmem:[%s8715_s1 + $0x1e4] sm:$0xf0]  ;;  %v5708_v24 = vld [vmem:[%s8715_s1 + $0x54] sm:$0xf0] }
  0x11   : > { %1579 = vmatpush.bf16.msra.mxu3 %v5050_v12  ;;  %v5042_v25 = vor.u32 %v5758_v22, %v5041_v20  ;;  %v4905_v26 = vld [vmem:[%s8715_s1 + $0xd0] sm:$0xf]  ;;  %v5724_v27 = vld [vmem:[%s8715_s1 + $0xd4] sm:$0xf0]  ;;  %v4842_v29 = vor.u32 %v5708_v24, %v4841_v23  ;;  %v4833_v35 = vld [vmem:[%s8715_s1 + $0x40] sm:$0xf] }
  0x12   : > { %v4969_v28 = vld [vmem:[%s8715_s1 + $0x150] sm:$0xf]  ;;  %1133 = vmatpush.bf16.msra.mxu0 %v4850_v16  ;;  %v5740_v30 = vld [vmem:[%s8715_s1 + $0x154] sm:$0xf0]  ;;  %v4906_v33 = vor.u32 %v5724_v27, %v4905_v26  ;;  %v5706_v36 = vld [vmem:[%s8715_s1 + $0x44] sm:$0xf0] }
  0x13   : > { %v5033_v31 = vld [vmem:[%s8715_s1 + $0x1d0] sm:$0xf]  ;;  %v5756_v32 = vld [vmem:[%s8715_s1 + $0x1d4] sm:$0xf0]  ;;  %1282 = vmatpush.bf16.msra.mxu1 %v4914_v17  ;;  %v4970_v34 = vor.u32 %v5740_v30, %v4969_v28  ;;  %v4897_v37 = vld [vmem:[%s8715_s1 + $0xc0] sm:$0xf]  ;;  %v4834_v44 = vor.u32 %v5706_v36, %v4833_v35 }
  0x14   : > { %1431 = vmatpush.bf16.msra.mxu2 %v4978_v21  ;;  %v5034_v38 = vor.u32 %v5756_v32, %v5033_v31  ;;  %v5722_v39 = vld [vmem:[%s8715_s1 + $0xc4] sm:$0xf0]  ;;  %v4961_v40 = vld [vmem:[%s8715_s1 + $0x140] sm:$0xf]  ;;  %v4825_v47 = vld [vmem:[%s8715_s1 + $0x30] sm:$0xf] }
  0x15   : > { %1580 = vmatpush.bf16.msra.mxu3 %v5042_v25  ;;  %v5738_v41 = vld [vmem:[%s8715_s1 + $0x144] sm:$0xf0]  ;;  %v5025_v42 = vld [vmem:[%s8715_s1 + $0x1c0] sm:$0xf]  ;;  %v4898_v45 = vor.u32 %v5722_v39, %v4897_v37  ;;  %v5704_v48 = vld [vmem:[%s8715_s1 + $0x34] sm:$0xf0] }
  0x16   : > { %v5754_v43 = vld [vmem:[%s8715_s1 + $0x1c4] sm:$0xf0]  ;;  %1134 = vmatpush.bf16.msra.mxu0 %v4842_v29  ;;  %v4962_v46 = vor.u32 %v5738_v41, %v4961_v40  ;;  %v4889_v49 = vld [vmem:[%s8715_s1 + $0xb0] sm:$0xf]  ;;  %v5720_v51 = vld [vmem:[%s8715_s1 + $0xb4] sm:$0xf0]  ;;  %v4826_v56 = vor.u32 %v5704_v48, %v4825_v47 }
  0x17   : > { %1283 = vmatpush.bf16.msra.mxu1 %v4906_v33  ;;  %v5026_v50 = vor.u32 %v5754_v43, %v5025_v42  ;;  %v4953_v52 = vld [vmem:[%s8715_s1 + $0x130] sm:$0xf]  ;;  %v5736_v53 = vld [vmem:[%s8715_s1 + $0x134] sm:$0xf0]  ;;  %v4890_v57 = vor.u32 %v5720_v51, %v4889_v49  ;;  %v4817_v59 = vld [vmem:[%s8715_s1 + $0x20] sm:$0xf] }
  0x18   : > { %1432 = vmatpush.bf16.msra.mxu2 %v4970_v34  ;;  %v5017_v54 = vld [vmem:[%s8715_s1 + $0x1b0] sm:$0xf]  ;;  %v5752_v55 = vld [vmem:[%s8715_s1 + $0x1b4] sm:$0xf0]  ;;  %v4954_v58 = vor.u32 %v5736_v53, %v4953_v52  ;;  %v5702_v60 = vld [vmem:[%s8715_s1 + $0x24] sm:$0xf0] }
  0x19   : > { %1581 = vmatpush.bf16.msra.mxu3 %v5034_v38  ;;  %v4881_v61 = vld [vmem:[%s8715_s1 + $0xa0] sm:$0xf]  ;;  %v5018_v62 = vor.u32 %v5752_v55, %v5017_v54  ;;  %v5718_v63 = vld [vmem:[%s8715_s1 + $0xa4] sm:$0xf0]  ;;  %v4818_v4 = vor.u32 %v5702_v60, %v4817_v59  ;;  %v4809_v5 = vld [vmem:[%s8715_s1 + $0x10] sm:$0xf] }
  0x1a   : > { %1135 = vmatpush.bf16.msra.mxu0 %v4834_v44  ;;  %v4945_v0 = vld [vmem:[%s8715_s1 + $0x120] sm:$0xf]  ;;  %v5734_v1 = vld [vmem:[%s8715_s1 + $0x124] sm:$0xf0]  ;;  %v5700_v6 = vld [vmem:[%s8715_s1 + $0x14] sm:$0xf0]  ;;  %v4882_v8 = vor.u32 %v5718_v63, %v4881_v61 }
  0x1b   : > { %1284 = vmatpush.bf16.msra.mxu1 %v4898_v45  ;;  %v5009_v2 = vld [vmem:[%s8715_s1 + $0x1a0] sm:$0xf]  ;;  %v5750_v3 = vld [vmem:[%s8715_s1 + $0x1a4] sm:$0xf0]  ;;  %v4873_v7 = vld [vmem:[%s8715_s1 + $0x90] sm:$0xf]  ;;  %v4946_v9 = vor.u32 %v5734_v1, %v4945_v0  ;;  %v4810_v18 = vor.u32 %v5700_v6, %v4809_v5 }
  0x1c   : > { %1433 = vmatpush.bf16.msra.mxu2 %v4962_v46  ;;  %v5716_v10 = vld [vmem:[%s8715_s1 + $0x94] sm:$0xf0]  ;;  %v4937_v11 = vld [vmem:[%s8715_s1 + $0x110] sm:$0xf]  ;;  %v5010_v13 = vor.u32 %v5750_v3, %v5009_v2  ;;  %s4667_s29 = sshll.u32 %s4662_s18, 6 }
  0x1d   : > { %1582 = vmatpush.bf16.msra.mxu3 %v5026_v50  ;;  %v5732_v12 = vld [vmem:[%s8715_s1 + $0x114] sm:$0xf0]  ;;  %v5001_v14 = vld [vmem:[%s8715_s1 + $0x190] sm:$0xf]  ;;  %v4801_v16 = vld [vmem:[%s8715_s1] sm:$0xf]  ;;  %v4874_v21 = vor.u32 %v5716_v10, %v4873_v7 }
  0x1e   : > { %1136 = vmatpush.bf16.msra.mxu0 %v4826_v56  ;;  %v5748_v15 = vld [vmem:[%s8715_s1 + $0x194] sm:$0xf0]  ;;  %v5698_v17 = vld [vmem:[%s8715_s1 + $0x4] sm:$0xf0]  ;;  %p379_p3 = scmp.lt.s32.totalorder %s4667_s29, 127  ;;  %v4938_v22 = vor.u32 %v5732_v12, %v4937_v11 }
  0x1f   : > { %1285 = vmatpush.bf16.msra.mxu1 %v4890_v57  ;;  %v4865_v19 = vld [vmem:[%s8715_s1 + $0x80] sm:$0xf]  ;;  %v5714_v20 = vld [vmem:[%s8715_s1 + $0x84] sm:$0xf0]  ;;  %v5002_v24 = vor.u32 %v5748_v15, %v5001_v14  ;;  %v5113_v28 = vld [vmem:[%s8715_s1 + $0x270] sm:$0xf]  ;;  %v4802_v30 = vor.u32 %v5698_v17, %v4801_v16 }
  0x20   : > { %1434 = vmatpush.bf16.msra.mxu2 %v4954_v58  ;;  %v4929_v23 = vld [vmem:[%s8715_s1 + $0x100] sm:$0xf]  ;;  %s8938_s29 = smov (!%p379_p3, %s4667_s29), 127  ;;  %v5730_v25 = vld [vmem:[%s8715_s1 + $0x104] sm:$0xf0]  ;;  %v4866_v33 = vor.u32 %v5714_v20, %v4865_v19 }
  0x21   : > { %1583 = vmatpush.bf16.msra.mxu3 %v5018_v62  ;;  %v4993_v26 = vld [vmem:[%s8715_s1 + $0x180] sm:$0xf]  ;;  %v5746_v27 = vld [vmem:[%s8715_s1 + $0x184] sm:$0xf0]  ;;  %s4668_s30 = sshll.u32 %s8938_s29, 2  ;;  %v4930_v34 = vor.u32 %v5730_v25, %v4929_v23 }
  0x22   : > { %1137 = vmatpush.bf16.msra.mxu0 %v4818_v4  ;;  %v5776_v29 = vld [vmem:[%s8715_s1 + $0x274] sm:$0xf0]  ;;  %s6265_s20 = scalar_lea.vmem %s8714_s0, %s4668_s30  ;;  %v5711_v31 = vld [vmem:[%s8715_s1 + $0x74] sm:$0xf]  ;;  %v4859_v32 = vld [vmem:[%s8715_s1 + $0x78] sm:$0xf0]  ;;  %v4994_v35 = vor.u32 %v5746_v27, %v4993_v26 }
  0x23   : > { %1286 = vmatpush.bf16.msra.mxu1 %v4882_v8  ;;  %v5114_v36 = vor.u32 %v5776_v29, %v5113_v28  ;;  %v5665_v37 = vld [vmem:[%s6265_s20] sm:$0xff]  ;;  %v4862_v38 = vor.u32 %v5711_v31, %v4859_v32  ;;  %v5666_v39 = vld [vmem:[%s6265_s20 + $0x8] sm:$0xff]  ;;  %v5667_v40 = vld [vmem:[%s6265_s20 + $0x10] sm:$0xff]  ;;  %s4669_s30 = sshll.u32 %s4662_s18, 1 }
  0x24   : > { %1435 = vmatpush.bf16.msra.mxu2 %v4946_v9  ;;  %v5668_v41 = vld [vmem:[%s6265_s20 + $0x18] sm:$0xff]  ;;  %v5669_v42 = vld [vmem:[%s6265_s20 + $0x20] sm:$0xff]  ;;  %v5774_v44 = vld [vmem:[%s8715_s1 + $0x264] sm:$0xf0]  ;;  %p385_p4 = scmp.lt.s32.totalorder %s4669_s30, 3 }
  0x25   : > { %1584 = vmatpush.bf16.msra.mxu3 %v5010_v13  ;;  %v5105_v43 = vld [vmem:[%s8715_s1 + $0x260] sm:$0xf]  ;;  %v5709_v45 = vld [vmem:[%s8715_s1 + $0x64] sm:$0xf]  ;;  %v4851_v47 = vld [vmem:[%s8715_s1 + $0x68] sm:$0xf0] }
  0x26   : > { %1138 = vmatpush.bf16.msra.mxu0 %v4810_v18  ;;  %v5106_v46 = vor.u32 %v5774_v44, %v5105_v43  ;;  %v4854_v48 = vor.u32 %v5709_v45, %v4851_v47  ;;  %v5670_v49 = vld [vmem:[%s6265_s20 + $0x28] sm:$0xff]  ;;  %v5671_v50 = vld [vmem:[%s6265_s20 + $0x30] sm:$0xff]  ;;  %v5672_v51 = vld [vmem:[%s6265_s20 + $0x38] sm:$0xff]  ;;  %s8940_s30 = smov (!%p385_p4, %s4669_s30), 3 }
  0x27   : > { %1287 = vmatpush.bf16.msra.mxu1 %v4874_v21  ;;  %v5673_v52 = vld [vmem:[%s6265_s20 + $0x40] sm:$0xff]  ;;  %v5097_v53 = vld [vmem:[%s8715_s1 + $0x250] sm:$0xf]  ;;  %v5772_v54 = vld [vmem:[%s8715_s1 + $0x254] sm:$0xf0] }
  0x28   : > { %1436 = vmatpush.bf16.msra.mxu2 %v4938_v22  ;;  %v5098_v55 = vor.u32 %v5772_v54, %v5097_v53  ;;  %v5707_v56 = vld [vmem:[%s8715_s1 + $0x54] sm:$0xf]  ;;  %v4843_v57 = vld [vmem:[%s8715_s1 + $0x58] sm:$0xf0]  ;;  %v5674_v59 = vld [vmem:[%s6265_s20 + $0x48] sm:$0xff] }
  0x29   : > { %1585 = vmatpush.bf16.msra.mxu3 %v5002_v24  ;;  %v4846_v58 = vor.u32 %v5707_v56, %v4843_v57  ;;  %v5675_v60 = vld [vmem:[%s6265_s20 + $0x50] sm:$0xff]  ;;  %v726_v61 = vld [vmem:[%s8716_s2] sm:$0x3]  ;;  %v6315_v2 = vld [vmem:[%s6265_s20 + $0x58] sm:$0xff] }
  0x2a   : > { %1139 = vmatpush.bf16.msra.mxu0 %v4802_v30  ;;  %v6311_v62 = vperm.slane %v726_v61, 0  ;;  %v5089_v12 = vld [vmem:[%s8715_s1 + $0x240] sm:$0xf]  ;;  %v5770_v13 = vld [vmem:[%s8715_s1 + $0x244] sm:$0xf0] }
  0x2b   : > { %1288 = vmatpush.bf16.msra.mxu1 %v4866_v33  ;;  %v5705_v14 = vld [vmem:[%s8715_s1 + $0x44] sm:$0xf]  ;;  %v5090_v15 = vor.u32 %v5770_v13, %v5089_v12  ;;  %v4835_v16 = vld [vmem:[%s8715_s1 + $0x48] sm:$0xf0]  ;;  %v6371_v13 = vld [vmem:[%s6265_s20 + $0x78] sm:$0xff] }
  0x2c   : > { %1437 = vmatpush.bf16.msra.mxu2 %v4930_v34  ;;  %v4838_v17 = vor.u32 %v5705_v14, %v4835_v16  ;;  %v6335_v24 = vld [vmem:[%s6265_s20 + $0x60] sm:$0xff]  ;;  %v5081_v16 = vld [vmem:[%s8715_s1 + $0x230] sm:$0xf] }
  0x2d   : > { %1586 = vmatpush.bf16.msra.mxu3 %v4994_v35  ;;  %1140 = vmatmul.bf16.vlgmr.msra.gmra.mxu0 %v5665_v37 }
  0x2e   : > { %1728 = vmatpush.bf16.msrb.mxu0 %v5114_v36  ;;  %1289 = vmatmul.bf16.vlgmr.msra.gmra.mxu1 %v5666_v39 }
  0x2f   : > { %1877 = vmatpush.bf16.msrb.mxu1 %v4862_v38  ;;  %1438 = vmatmul.bf16.vlgmr.msra.gmra.mxu2 %v5667_v40 }
  0x30   : > { %1587 = vmatmul.bf16.vlgmr.msra.gmra.mxu3 %v5668_v41 }
  0x32   : > { %1729 = vmatpush.bf16.msrb.mxu0 %v5106_v46 }
  0x33   : > { %1878 = vmatpush.bf16.msrb.mxu1 %v4854_v48 }
  0x36   : > { %1730 = vmatpush.bf16.msrb.mxu0 %v5098_v55 }
  0x37   : > { %1879 = vmatpush.bf16.msrb.mxu1 %v4846_v58  ;;  %v6358_v58 = vld [vmem:[%s6265_s20 + $0x70] sm:$0xff] }
  0x3a   : > { %1731 = vmatpush.bf16.msrb.mxu0 %v5090_v15 }
  0x3b   : > { %1880 = vmatpush.bf16.msrb.mxu1 %v4838_v17  ;;  %v5768_v17 = vld [vmem:[%s8715_s1 + $0x234] sm:$0xf0] }
  0x3d   : > { %1145 = vmatmul.bf16.gmra.mxu0 %v5666_v39 }
  0x3e   : > { %1294 = vmatmul.bf16.gmra.mxu1 %v5667_v40 }
  0x3f   : > { %1443 = vmatmul.bf16.gmra.mxu2 %v5668_v41 }
  0x40   : > { %1592 = vmatmul.bf16.gmra.mxu3 %v5669_v42 }
  0x4d   : > { %1150 = vmatmul.bf16.gmra.mxu0 %v5667_v40 }
  0x4e   : > { %1299 = vmatmul.bf16.gmra.mxu1 %v5668_v41 }
  0x4f   : > { %1448 = vmatmul.bf16.gmra.mxu2 %v5669_v42 }
  0x50   : > { %1597 = vmatmul.bf16.gmra.mxu3 %v5670_v49 }
  0x5d   : > { %1155 = vmatmul.bf16.gmra.mxu0 %v5668_v41  ;;  %v6346_v41 = vld [vmem:[%s6265_s20 + $0x68] sm:$0xff] }
  0x5e   : > { %1304 = vmatmul.bf16.gmra.mxu1 %v5669_v42 }
  0x5f   : > { %1453 = vmatmul.bf16.gmra.mxu2 %v5670_v49 }
  0x60   : > { %1602 = vmatmul.bf16.gmra.mxu3 %v5671_v50 }
  0x6d   : > { %1160 = vmatmul.bf16.gmra.mxu0 %v5669_v42 }
  0x6e   : > { %1309 = vmatmul.bf16.gmra.mxu1 %v5670_v49 }
  0x6f   : > { %1458 = vmatmul.bf16.gmra.mxu2 %v5671_v50 }
  0x70   : > { %1607 = vmatmul.bf16.gmra.mxu3 %v5672_v51 }
  0x7d   : > { %1165 = vmatmul.bf16.gmra.mxu0 %v5670_v49 }
  0x7e   : > { %1314 = vmatmul.bf16.gmra.mxu1 %v5671_v50 }
  0x7f   : > { %1463 = vmatmul.bf16.gmra.mxu2 %v5672_v51 }
  0x80   : > { %1612 = vmatmul.bf16.gmra.mxu3 %v5673_v52 }
  0x8d   : > { %1170 = vmatmul.bf16.gmra.mxu0 %v5671_v50 }
  0x8e   : > { %1319 = vmatmul.bf16.gmra.mxu1 %v5672_v51 }
  0x8f   : > { %1468 = vmatmul.bf16.gmra.mxu2 %v5673_v52 }
  0x90   : > { %1617 = vmatmul.bf16.gmra.mxu3 %v5674_v59 }
  0x9d   : > { %1175 = vmatmul.bf16.gmra.mxu0 %v5672_v51 }
  0x9e   : > { %1324 = vmatmul.bf16.gmra.mxu1 %v5673_v52 }
  0x9f   : > { %1473 = vmatmul.bf16.gmra.mxu2 %v5674_v59 }
  0xa0   : > { %1622 = vmatmul.bf16.gmra.mxu3 %v5675_v60 }
  0xaa   : > { %v1141_v63 = vpop.f32.mrf.mxu0 }
  0xab   : > { %v1142_v0 = vadd.f32 %v1141_v63, %v6311_v62  ;;  %v1290_v1 = vpop.f32.mrf.mxu1 }
  0xad   : > { %v1291_v3 = vadd.f32 %v1290_v1, %v1142_v0  ;;  %1180 = vmatmul.bf16.gmra.mxu0 %v5673_v52 }
  0xae   : > { %1329 = vmatmul.bf16.gmra.mxu1 %v5674_v59 }
  0xaf   : > { %1478 = vmatmul.bf16.gmra.mxu2 %v5675_v60 }
  0xb0   : > { %1627 = vmatmul.bf16.gmra.mxu3 %v6315_v2 }
  0xb2   : > { %v1439_v4 = vpop.f32.mrf.mxu2  ;;  %v1143_v6 = vpop.f32.mrf.mxu0 }
  0xb3   : > { %v1440_v5 = vadd.f32 %v1439_v4, %v1291_v3  ;;  %v1588_v7 = vpop.f32.mrf.mxu3  ;;  %v1144_v8 = vadd.f32 %v1143_v6, %v6311_v62  ;;  %v1292_v9 = vpop.f32.mrf.mxu1 }
  0xb5   : > { %v6319_v10 = vadd.f32 %v1588_v7, %v1440_v5  ;;  %v1293_v11 = vadd.f32 %v1292_v9, %v1144_v8 }
  0xba   : > { %v1441_v18 = vpop.f32.mrf.mxu2  ;;  %v1146_v20 = vpop.f32.mrf.mxu0 }
  0xbb   : > { %v1442_v19 = vadd.f32 %v1441_v18, %v1293_v11  ;;  %v1590_v21 = vpop.f32.mrf.mxu3  ;;  %v1147_v22 = vadd.f32 %v1146_v20, %v6311_v62  ;;  %v1295_v23 = vpop.f32.mrf.mxu1  ;;  %v5082_v18 = vor.u32 %v5768_v17, %v5081_v16  ;;  %v4827_v20 = vld [vmem:[%s8715_s1 + $0x38] sm:$0xf0]  ;;  %v6422_v16 = vld [vmem:[%s6265_s20 + $0x90] sm:$0xff] }
  0xbd   : > { %v6337_v25 = vadd.f32 %v1590_v21, %v1442_v19  ;;  %v1296_v26 = vadd.f32 %v1295_v23, %v1147_v22  ;;  %1185 = vmatmul.bf16.gmra.mxu0 %v5674_v59  ;;  %v5703_v19 = vld [vmem:[%s8715_s1 + $0x34] sm:$0xf] }
  0xbe   : > { %1334 = vmatmul.bf16.gmra.mxu1 %v5675_v60  ;;  %v4830_v21 = vor.u32 %v5703_v19, %v4827_v20  ;;  %1732 = vmatpush.bf16.msrb.mxu0 %v5082_v18 }
  0xbf   : > { %1483 = vmatmul.bf16.gmra.mxu2 %v6315_v2 }
  0xc0   : > { %1632 = vmatmul.bf16.gmra.mxu3 %v6335_v24  ;;  %1881 = vmatpush.bf16.msrb.mxu1 %v4830_v21 }
  0xc2   : > { %v1444_v27 = vpop.f32.mrf.mxu2  ;;  %v1148_v29 = vpop.f32.mrf.mxu0 }
  0xc3   : > { %v1445_v28 = vadd.f32 %v1444_v27, %v1296_v26  ;;  %v1593_v30 = vpop.f32.mrf.mxu3  ;;  %v1149_v31 = vadd.f32 %v1148_v29, %v6311_v62  ;;  %v1297_v32 = vpop.f32.mrf.mxu1 }
  0xc5   : > { %v6342_v33 = vadd.f32 %v1593_v30, %v1445_v28  ;;  %v1298_v34 = vadd.f32 %v1297_v32, %v1149_v31 }
  0xca   : > { %v1446_v35 = vpop.f32.mrf.mxu2  ;;  %v1151_v37 = vpop.f32.mrf.mxu0 }
  0xcb   : > { %v1447_v36 = vadd.f32 %v1446_v35, %v1298_v34  ;;  %v1595_v38 = vpop.f32.mrf.mxu3  ;;  %v1152_v39 = vadd.f32 %v1151_v37, %v6311_v62  ;;  %v1300_v40 = vpop.f32.mrf.mxu1 }
  0xcd   : > { %v6348_v42 = vadd.f32 %v1595_v38, %v1447_v36  ;;  %v1301_v43 = vadd.f32 %v1300_v40, %v1152_v39  ;;  %1190 = vmatmul.bf16.gmra.mxu0 %v5675_v60  ;;  %v6396_v38 = vld [vmem:[%s6265_s20 + $0x80] sm:$0xff] }
  0xce   : > { %1339 = vmatmul.bf16.gmra.mxu1 %v6315_v2 }
  0xcf   : > { %1488 = vmatmul.bf16.gmra.mxu2 %v6335_v24 }
  0xd0   : > { %1637 = vmatmul.bf16.gmra.mxu3 %v6346_v41 }
  0xd2   : > { %v1449_v44 = vpop.f32.mrf.mxu2  ;;  %v1153_v46 = vpop.f32.mrf.mxu0 }
  0xd3   : > { %v1450_v45 = vadd.f32 %v1449_v44, %v1301_v43  ;;  %v1598_v47 = vpop.f32.mrf.mxu3  ;;  %v1154_v48 = vadd.f32 %v1153_v46, %v6311_v62  ;;  %v1302_v49 = vpop.f32.mrf.mxu1 }
  0xd5   : > { %v6354_v50 = vadd.f32 %v1598_v47, %v1450_v45  ;;  %v1303_v51 = vadd.f32 %v1302_v49, %v1154_v48 }
  0xda   : > { %v1451_v52 = vpop.f32.mrf.mxu2  ;;  %v1156_v54 = vpop.f32.mrf.mxu0 }
  0xdb   : > { %v1452_v53 = vadd.f32 %v1451_v52, %v1303_v51  ;;  %v1600_v55 = vpop.f32.mrf.mxu3  ;;  %v1157_v56 = vadd.f32 %v1156_v54, %v6311_v62  ;;  %v1305_v57 = vpop.f32.mrf.mxu1 }
  0xdd   : > { %v6360_v59 = vadd.f32 %v1600_v55, %v1452_v53  ;;  %v1306_v60 = vadd.f32 %v1305_v57, %v1157_v56  ;;  %1195 = vmatmul.bf16.gmra.mxu0 %v6315_v2  ;;  %v6409_v57 = vld [vmem:[%s6265_s20 + $0x88] sm:$0xff] }
  0xde   : > { %1344 = vmatmul.bf16.gmra.mxu1 %v6335_v24 }
  0xdf   : > { %1493 = vmatmul.bf16.gmra.mxu2 %v6346_v41 }
  0xe0   : > { %1642 = vmatmul.bf16.gmra.mxu3 %v6358_v58 }
  0xe2   : > { %v1454_v61 = vpop.f32.mrf.mxu2  ;;  %v1158_v0 = vpop.f32.mrf.mxu0 }
  0xe3   : > { %v1455_v63 = vadd.f32 %v1454_v61, %v1306_v60  ;;  %v1603_v1 = vpop.f32.mrf.mxu3  ;;  %v1159_v3 = vadd.f32 %v1158_v0, %v6311_v62  ;;  %v1307_v4 = vpop.f32.mrf.mxu1 }
  0xe5   : > { %v6367_v5 = vadd.f32 %v1603_v1, %v1455_v63  ;;  %v1308_v6 = vadd.f32 %v1307_v4, %v1159_v3 }
  0xea   : > { %v1456_v7 = vpop.f32.mrf.mxu2  ;;  %v1161_v2 = vpop.f32.mrf.mxu0 }
  0xeb   : > { %v1457_v8 = vadd.f32 %v1456_v7, %v1308_v6  ;;  %v1605_v9 = vpop.f32.mrf.mxu3  ;;  %v1162_v11 = vadd.f32 %v1161_v2, %v6311_v62  ;;  %v1310_v12 = vpop.f32.mrf.mxu1 }
  0xed   : > { %v6373_v14 = vadd.f32 %v1605_v9, %v1457_v8  ;;  %v1311_v15 = vadd.f32 %v1310_v12, %v1162_v11  ;;  %1200 = vmatmul.bf16.gmra.mxu0 %v6335_v24 }
  0xee   : > { %1349 = vmatmul.bf16.gmra.mxu1 %v6346_v41 }
  0xef   : > { %1498 = vmatmul.bf16.gmra.mxu2 %v6358_v58 }
  0xf0   : > { %1647 = vmatmul.bf16.gmra.mxu3 %v6371_v13 }
  0xf2   : > { %v1459_v22 = vpop.f32.mrf.mxu2  ;;  %v1163_v24 = vpop.f32.mrf.mxu0 }
  0xf3   : > { %v1460_v23 = vadd.f32 %v1459_v22, %v1311_v15  ;;  %v1608_v26 = vpop.f32.mrf.mxu3  ;;  %v1164_v27 = vadd.f32 %v1163_v24, %v6311_v62  ;;  %v1312_v28 = vpop.f32.mrf.mxu1 }
  0xf5   : > { %v6392_v29 = vadd.f32 %v1608_v26, %v1460_v23  ;;  %v1313_v30 = vadd.f32 %v1312_v28, %v1164_v27  ;;  %v5766_v28 = vld [vmem:[%s8715_s1 + $0x224] sm:$0xf0] }
  0xfa   : > { %v1461_v31 = vpop.f32.mrf.mxu2  ;;  %v1166_v34 = vpop.f32.mrf.mxu0 }
  0xfb   : > { %v1462_v32 = vadd.f32 %v1461_v31, %v1313_v30  ;;  %v1610_v35 = vpop.f32.mrf.mxu3  ;;  %v1167_v36 = vadd.f32 %v1166_v34, %v6311_v62  ;;  %v1315_v37 = vpop.f32.mrf.mxu1  ;;  %v5701_v30 = vld [vmem:[%s8715_s1 + $0x24] sm:$0xf] }
  0xfd   : > { %v6398_v39 = vadd.f32 %v1610_v35, %v1462_v32  ;;  %v1316_v40 = vadd.f32 %v1315_v37, %v1167_v36  ;;  %1205 = vmatmul.bf16.gmra.mxu0 %v6346_v41  ;;  %v4819_v32 = vld [vmem:[%s8715_s1 + $0x28] sm:$0xf0] }
  0xfe   : > { %1354 = vmatmul.bf16.gmra.mxu1 %v6358_v58  ;;  %v4822_v34 = vor.u32 %v5701_v30, %v4819_v32 }
  0xff   : > { %1503 = vmatmul.bf16.gmra.mxu2 %v6371_v13 }
 0x100   : > { %1652 = vmatmul.bf16.gmra.mxu3 %v6396_v38  ;;  %1882 = vmatpush.bf16.msrb.mxu1 %v4822_v34 }
 0x102   : > { %v1464_v43 = vpop.f32.mrf.mxu2  ;;  %v1168_v45 = vpop.f32.mrf.mxu0 }
 0x103   : > { %v1465_v44 = vadd.f32 %v1464_v43, %v1316_v40  ;;  %v1613_v46 = vpop.f32.mrf.mxu3  ;;  %v1169_v47 = vadd.f32 %v1168_v45, %v6311_v62  ;;  %v1317_v48 = vpop.f32.mrf.mxu1  ;;  %v6447_v45 = vld [vmem:[%s6265_s20 + $0x98] sm:$0xff] }
 0x105   : > { %v6405_v49 = vadd.f32 %v1613_v46, %v1465_v44  ;;  %v1318_v51 = vadd.f32 %v1317_v48, %v1169_v47 }
 0x10a   : > { %v1466_v52 = vpop.f32.mrf.mxu2  ;;  %v1171_v41 = vpop.f32.mrf.mxu0 }
 0x10b   : > { %v1467_v53 = vadd.f32 %v1466_v52, %v1318_v51  ;;  %v1615_v54 = vpop.f32.mrf.mxu3  ;;  %v1172_v55 = vadd.f32 %v1171_v41, %v6311_v62  ;;  %v1320_v56 = vpop.f32.mrf.mxu1 }
 0x10d   : > { %v6411_v60 = vadd.f32 %v1615_v54, %v1467_v53  ;;  %v1321_v61 = vadd.f32 %v1320_v56, %v1172_v55  ;;  %1210 = vmatmul.bf16.gmra.mxu0 %v6358_v58 }
 0x10e   : > { %1359 = vmatmul.bf16.gmra.mxu1 %v6371_v13 }
 0x10f   : > { %1508 = vmatmul.bf16.gmra.mxu2 %v6396_v38 }
 0x110   : > { %1657 = vmatmul.bf16.gmra.mxu3 %v6409_v57 }
 0x112   : > { %v1469_v63 = vpop.f32.mrf.mxu2  ;;  %v1173_v1 = vpop.f32.mrf.mxu0 }
 0x113   : > { %v1470_v0 = vadd.f32 %v1469_v63, %v1321_v61  ;;  %v1618_v3 = vpop.f32.mrf.mxu3  ;;  %v1174_v4 = vadd.f32 %v1173_v1, %v6311_v62  ;;  %v1322_v6 = vpop.f32.mrf.mxu1 }
 0x115   : > { %v6418_v7 = vadd.f32 %v1618_v3, %v1470_v0  ;;  %v1323_v8 = vadd.f32 %v1322_v6, %v1174_v4  ;;  %v6460_v4 = vld [vmem:[%s6265_s20 + $0xa0] sm:$0xff] }
 0x11a   : > { %v1471_v2 = vpop.f32.mrf.mxu2  ;;  %v1176_v58 = vpop.f32.mrf.mxu0 }
 0x11b   : > { %v1472_v9 = vadd.f32 %v1471_v2, %v1323_v8  ;;  %v1620_v11 = vpop.f32.mrf.mxu3  ;;  %v1177_v12 = vadd.f32 %v1176_v58, %v6311_v62  ;;  %v1325_v15 = vpop.f32.mrf.mxu1 }
 0x11d   : > { %v6424_v17 = vadd.f32 %v1620_v11, %v1472_v9  ;;  %v1326_v18 = vadd.f32 %v1325_v15, %v1177_v12  ;;  %1215 = vmatmul.bf16.gmra.mxu0 %v6371_v13  ;;  %v5073_v13 = vld [vmem:[%s8715_s1 + $0x220] sm:$0xf] }
 0x11e   : > { %1364 = vmatmul.bf16.gmra.mxu1 %v6396_v38  ;;  %v5074_v31 = vor.u32 %v5766_v28, %v5073_v13 }
 0x11f   : > { %1513 = vmatmul.bf16.gmra.mxu2 %v6409_v57 }
 0x120   : > { %1662 = vmatmul.bf16.gmra.mxu3 %v6422_v16  ;;  %1733 = vmatpush.bf16.msrb.mxu0 %v5074_v31 }
 0x122   : > { %v1474_v19 = vpop.f32.mrf.mxu2  ;;  %v1178_v21 = vpop.f32.mrf.mxu0 }
 0x123   : > { %v1475_v20 = vadd.f32 %v1474_v19, %v1326_v18  ;;  %v1623_v22 = vpop.f32.mrf.mxu3  ;;  %v1179_v23 = vadd.f32 %v1178_v21, %v6311_v62  ;;  %v1327_v24 = vpop.f32.mrf.mxu1 }
 0x125   : > { %v6431_v26 = vadd.f32 %v1623_v22, %v1475_v20  ;;  %v1328_v27 = vadd.f32 %v1327_v24, %v1179_v23 }
 0x12a   : > { %v1476_v35 = vpop.f32.mrf.mxu2  ;;  %v1181_v37 = vpop.f32.mrf.mxu0 }
 0x12b   : > { %v1477_v36 = vadd.f32 %v1476_v35, %v1328_v27  ;;  %v1625_v40 = vpop.f32.mrf.mxu3  ;;  %v1182_v43 = vadd.f32 %v1181_v37, %v6311_v62  ;;  %v1330_v44 = vpop.f32.mrf.mxu1  ;;  %v6473_v27 = vld [vmem:[%s6265_s20 + $0xa8] sm:$0xff] }
 0x12d   : > { %v6449_v46 = vadd.f32 %v1625_v40, %v1477_v36  ;;  %v1331_v47 = vadd.f32 %v1330_v44, %v1182_v43  ;;  %1220 = vmatmul.bf16.gmra.mxu0 %v6396_v38 }
 0x12e   : > { %1369 = vmatmul.bf16.gmra.mxu1 %v6409_v57 }
 0x12f   : > { %1518 = vmatmul.bf16.gmra.mxu2 %v6422_v16 }
 0x130   : > { %1667 = vmatmul.bf16.gmra.mxu3 %v6447_v45 }
 0x132   : > { %v1479_v48 = vpop.f32.mrf.mxu2  ;;  %v1183_v52 = vpop.f32.mrf.mxu0 }
 0x133   : > { %v1480_v51 = vadd.f32 %v1479_v48, %v1331_v47  ;;  %v1628_v53 = vpop.f32.mrf.mxu3  ;;  %v1184_v41 = vadd.f32 %v1183_v52, %v6311_v62  ;;  %v1332_v54 = vpop.f32.mrf.mxu1  ;;  %v6486_v52 = vld [vmem:[%s6265_s20 + $0xb0] sm:$0xff] }
 0x135   : > { %v6456_v55 = vadd.f32 %v1628_v53, %v1480_v51  ;;  %v1333_v56 = vadd.f32 %v1332_v54, %v1184_v41  ;;  %v5065_v54 = vld [vmem:[%s8715_s1 + $0x210] sm:$0xf] }
 0x13a   : > { %v1481_v61 = vpop.f32.mrf.mxu2  ;;  %v1186_v38 = vpop.f32.mrf.mxu0 }
 0x13b   : > { %v1482_v63 = vadd.f32 %v1481_v61, %v1333_v56  ;;  %v1630_v0 = vpop.f32.mrf.mxu3  ;;  %v1187_v1 = vadd.f32 %v1186_v38, %v6311_v62  ;;  %v1335_v3 = vpop.f32.mrf.mxu1  ;;  %v5764_v56 = vld [vmem:[%s8715_s1 + $0x214] sm:$0xf0] }
 0x13c   : > { %v5066_v61 = vor.u32 %v5764_v56, %v5065_v54 }
 0x13d   : > { %v6462_v6 = vadd.f32 %v1630_v0, %v1482_v63  ;;  %v1336_v8 = vadd.f32 %v1335_v3, %v1187_v1  ;;  %1225 = vmatmul.bf16.gmra.mxu0 %v6409_v57  ;;  %v5699_v63 = vld [vmem:[%s8715_s1 + $0x14] sm:$0xf] }
 0x13e   : > { %1374 = vmatmul.bf16.gmra.mxu1 %v6422_v16  ;;  %1734 = vmatpush.bf16.msrb.mxu0 %v5066_v61 }
 0x13f   : > { %1523 = vmatmul.bf16.gmra.mxu2 %v6447_v45 }
 0x140   : > { %1672 = vmatmul.bf16.gmra.mxu3 %v6460_v4 }
 0x142   : > { %v1484_v2 = vpop.f32.mrf.mxu2  ;;  %v1188_v58 = vpop.f32.mrf.mxu0 }
 0x143   : > { %v1485_v9 = vadd.f32 %v1484_v2, %v1336_v8  ;;  %v1633_v11 = vpop.f32.mrf.mxu3  ;;  %v1189_v12 = vadd.f32 %v1188_v58, %v6311_v62  ;;  %v1337_v15 = vpop.f32.mrf.mxu1  ;;  %v5727_v2 = vld [vmem:[%s8715_s1 + $0xf4] sm:$0xf] }
 0x145   : > { %v6469_v18 = vadd.f32 %v1633_v11, %v1485_v9  ;;  %v1338_v19 = vadd.f32 %v1337_v15, %v1189_v12  ;;  %v4923_v9 = vld [vmem:[%s8715_s1 + $0xf8] sm:$0xf0] }
 0x146   : > { %v4926_v12 = vor.u32 %v5727_v2, %v4923_v9 }
 0x148   : > { %2026 = vmatpush.bf16.msrb.mxu2 %v4926_v12 }
 0x14a   : > { %v1486_v20 = vpop.f32.mrf.mxu2  ;;  %v1191_v57 = vpop.f32.mrf.mxu0 }
 0x14b   : > { %v1487_v21 = vadd.f32 %v1486_v20, %v1338_v19  ;;  %v1635_v22 = vpop.f32.mrf.mxu3  ;;  %v1192_v23 = vadd.f32 %v1191_v57, %v6311_v62  ;;  %v1340_v24 = vpop.f32.mrf.mxu1  ;;  %v5743_v20 = vld [vmem:[%s8715_s1 + $0x174] sm:$0xf] }
 0x14d   : > { %v6475_v13 = vadd.f32 %v1635_v22, %v1487_v21  ;;  %v1341_v28 = vadd.f32 %v1340_v24, %v1192_v23  ;;  %1230 = vmatmul.bf16.gmra.mxu0 %v6422_v16  ;;  %v4987_v21 = vld [vmem:[%s8715_s1 + $0x178] sm:$0xf0] }
 0x14e   : > { %1379 = vmatmul.bf16.gmra.mxu1 %v6447_v45  ;;  %v4990_v57 = vor.u32 %v5743_v20, %v4987_v21 }
 0x14f   : > { %1528 = vmatmul.bf16.gmra.mxu2 %v6460_v4 }
 0x150   : > { %1677 = vmatmul.bf16.gmra.mxu3 %v6473_v27 }
 0x151   : > { %2175 = vmatpush.bf16.msrb.mxu3 %v4990_v57 }
 0x152   : > { %v1489_v30 = vpop.f32.mrf.mxu2  ;;  %v1193_v32 = vpop.f32.mrf.mxu0 }
 0x153   : > { %v1490_v31 = vadd.f32 %v1489_v30, %v1341_v28  ;;  %v1638_v34 = vpop.f32.mrf.mxu3  ;;  %v1194_v35 = vadd.f32 %v1193_v32, %v6311_v62  ;;  %v1342_v36 = vpop.f32.mrf.mxu1  ;;  %v6523_v32 = vld [vmem:[%s6265_s20 + $0xb8] sm:$0xff] }
 0x155   : > { %v6482_v37 = vadd.f32 %v1638_v34, %v1490_v31  ;;  %v1343_v40 = vadd.f32 %v1342_v36, %v1194_v35 }
 0x15a   : > { %v1491_v43 = vpop.f32.mrf.mxu2  ;;  %v1196_v16 = vpop.f32.mrf.mxu0 }
 0x15b   : > { %v1492_v44 = vadd.f32 %v1491_v43, %v1343_v40  ;;  %v1640_v47 = vpop.f32.mrf.mxu3  ;;  %v1197_v48 = vadd.f32 %v1196_v16, %v6311_v62  ;;  %v1345_v51 = vpop.f32.mrf.mxu1 }
 0x15d   : > { %v6488_v53 = vadd.f32 %v1640_v47, %v1492_v44  ;;  %v1346_v41 = vadd.f32 %v1345_v51, %v1197_v48  ;;  %1235 = vmatmul.bf16.gmra.mxu0 %v6447_v45  ;;  %v4811_v45 = vld [vmem:[%s8715_s1 + $0x18] sm:$0xf0] }
 0x15e   : > { %1384 = vmatmul.bf16.gmra.mxu1 %v6460_v4  ;;  %v4814_v38 = vor.u32 %v5699_v63, %v4811_v45  ;;  %v6536_v45 = vld [vmem:[%s6265_s20 + $0xc0] sm:$0xff] }
 0x15f   : > { %1533 = vmatmul.bf16.gmra.mxu2 %v6473_v27 }
 0x160   : > { %1682 = vmatmul.bf16.gmra.mxu3 %v6486_v52  ;;  %1883 = vmatpush.bf16.msrb.mxu1 %v4814_v38 }
 0x162   : > { %v1494_v0 = vpop.f32.mrf.mxu2  ;;  %v1198_v3 = vpop.f32.mrf.mxu0 }
 0x163   : > { %v1495_v1 = vadd.f32 %v1494_v0, %v1346_v41  ;;  %v1643_v8 = vpop.f32.mrf.mxu3  ;;  %v1199_v58 = vadd.f32 %v1198_v3, %v6311_v62  ;;  %v1347_v11 = vpop.f32.mrf.mxu1 }
 0x165   : > { %v6513_v15 = vadd.f32 %v1643_v8, %v1495_v1  ;;  %v1348_v19 = vadd.f32 %v1347_v11, %v1199_v58 }
 0x16a   : > { %v1496_v22 = vpop.f32.mrf.mxu2  ;;  %v1201_v24 = vpop.f32.mrf.mxu0 }
 0x16b   : > { %v1497_v23 = vadd.f32 %v1496_v22, %v1348_v19  ;;  %v1645_v28 = vpop.f32.mrf.mxu3  ;;  %v1202_v30 = vadd.f32 %v1201_v24, %v6311_v62  ;;  %v1350_v31 = vpop.f32.mrf.mxu1 }
 0x16d   : > { %v6525_v34 = vadd.f32 %v1645_v28, %v1497_v23  ;;  %v1351_v35 = vadd.f32 %v1350_v31, %v1202_v30  ;;  %1240 = vmatmul.bf16.gmra.mxu0 %v6460_v4  ;;  %v6549_v23 = vld [vmem:[%s6265_s20 + $0xc8] sm:$0xff] }
 0x16e   : > { %1389 = vmatmul.bf16.gmra.mxu1 %v6473_v27 }
 0x16f   : > { %1538 = vmatmul.bf16.gmra.mxu2 %v6486_v52 }
 0x170   : > { %1687 = vmatmul.bf16.gmra.mxu3 %v6523_v32 }
 0x172   : > { %v1499_v36 = vpop.f32.mrf.mxu2  ;;  %v1203_v43 = vpop.f32.mrf.mxu0 }
 0x173   : > { %v1500_v40 = vadd.f32 %v1499_v36, %v1351_v35  ;;  %v1648_v44 = vpop.f32.mrf.mxu3  ;;  %v1204_v16 = vadd.f32 %v1203_v43, %v6311_v62  ;;  %v1352_v47 = vpop.f32.mrf.mxu1 }
 0x175   : > { %v6532_v48 = vadd.f32 %v1648_v44, %v1500_v40  ;;  %v1353_v51 = vadd.f32 %v1352_v47, %v1204_v16  ;;  %v5762_v47 = vld [vmem:[%s8715_s1 + $0x204] sm:$0xf0] }
 0x17a   : > { %v1501_v41 = vpop.f32.mrf.mxu2  ;;  %v1206_v4 = vpop.f32.mrf.mxu0 }
 0x17b   : > { %v1502_v54 = vadd.f32 %v1501_v41, %v1353_v51  ;;  %v1650_v56 = vpop.f32.mrf.mxu3  ;;  %v1207_v61 = vadd.f32 %v1206_v4, %v6311_v62  ;;  %v1355_v63 = vpop.f32.mrf.mxu1  ;;  %v5697_v51 = vld [vmem:[%s8715_s1 + $0x4] sm:$0xf] }
 0x17d   : > { %v6538_v38 = vadd.f32 %v1650_v56, %v1502_v54  ;;  %v1356_v0 = vadd.f32 %v1355_v63, %v1207_v61  ;;  %1245 = vmatmul.bf16.gmra.mxu0 %v6473_v27  ;;  %v4803_v54 = vld [vmem:[%s8715_s1 + $0x8] sm:$0xf0] }
 0x17e   : > { %1394 = vmatmul.bf16.gmra.mxu1 %v6486_v52  ;;  %v4806_v4 = vor.u32 %v5697_v51, %v4803_v54 }
 0x17f   : > { %1543 = vmatmul.bf16.gmra.mxu2 %v6523_v32 }
 0x180   : > { %1692 = vmatmul.bf16.gmra.mxu3 %v6536_v45  ;;  %1884 = vmatpush.bf16.msrb.mxu1 %v4806_v4 }
 0x182   : > { %v1504_v1 = vpop.f32.mrf.mxu2  ;;  %v1208_v8 = vpop.f32.mrf.mxu0 }
 0x183   : > { %v1505_v3 = vadd.f32 %v1504_v1, %v1356_v0  ;;  %v1653_v2 = vpop.f32.mrf.mxu3  ;;  %v1209_v9 = vadd.f32 %v1208_v8, %v6311_v62  ;;  %v1357_v58 = vpop.f32.mrf.mxu1  ;;  %v5725_v1 = vld [vmem:[%s8715_s1 + $0xe4] sm:$0xf] }
 0x185   : > { %v6545_v11 = vadd.f32 %v1653_v2, %v1505_v3  ;;  %v1358_v12 = vadd.f32 %v1357_v58, %v1209_v9  ;;  %v4915_v3 = vld [vmem:[%s8715_s1 + $0xe8] sm:$0xf0]  ;;  %v6580_v9 = vld [vmem:[%s6265_s20 + $0xd0] sm:$0xff] }
 0x186   : > { %v4918_v58 = vor.u32 %v5725_v1, %v4915_v3 }
 0x188   : > { %2027 = vmatpush.bf16.msrb.mxu2 %v4918_v58 }
 0x18a   : > { %v1506_v19 = vpop.f32.mrf.mxu2  ;;  %v1211_v27 = vpop.f32.mrf.mxu0 }
 0x18b   : > { %v1507_v20 = vadd.f32 %v1506_v19, %v1358_v12  ;;  %v1655_v21 = vpop.f32.mrf.mxu3  ;;  %v1212_v57 = vadd.f32 %v1211_v27, %v6311_v62  ;;  %v1360_v22 = vpop.f32.mrf.mxu1  ;;  %v4979_v27 = vld [vmem:[%s8715_s1 + $0x168] sm:$0xf0] }
 0x18d   : > { %v6551_v24 = vadd.f32 %v1655_v21, %v1507_v20  ;;  %v1361_v28 = vadd.f32 %v1360_v22, %v1212_v57  ;;  %1250 = vmatmul.bf16.gmra.mxu0 %v6486_v52  ;;  %v5057_v52 = vld [vmem:[%s8715_s1 + $0x200] sm:$0xf]  ;;  %v5741_v20 = vld [vmem:[%s8715_s1 + $0x164] sm:$0xf] }
 0x18e   : > { %1399 = vmatmul.bf16.gmra.mxu1 %v6523_v32  ;;  %v5058_v41 = vor.u32 %v5762_v47, %v5057_v52  ;;  %v4982_v21 = vor.u32 %v5741_v20, %v4979_v27  ;;  %v5739_v20 = vld [vmem:[%s8715_s1 + $0x154] sm:$0xf]  ;;  %v4971_v27 = vld [vmem:[%s8715_s1 + $0x158] sm:$0xf0] }
 0x18f   : > { %1548 = vmatmul.bf16.gmra.mxu2 %v6536_v45 }
 0x190   : > { %1697 = vmatmul.bf16.gmra.mxu3 %v6549_v23  ;;  %1735 = vmatpush.bf16.msrb.mxu0 %v5058_v41  ;;  %v6599_v41 = vld [vmem:[%s6265_s20 + $0xd8] sm:$0xff] }
 0x191   : > { %2176 = vmatpush.bf16.msrb.mxu3 %v4982_v21  ;;  %v4974_v21 = vor.u32 %v5739_v20, %v4971_v27 }
 0x192   : > { %v1509_v30 = vpop.f32.mrf.mxu2  ;;  %v1213_v35 = vpop.f32.mrf.mxu0 }
 0x193   : > { %v1510_v31 = vadd.f32 %v1509_v30, %v1361_v28  ;;  %v1658_v36 = vpop.f32.mrf.mxu3  ;;  %v1214_v40 = vadd.f32 %v1213_v35, %v6311_v62  ;;  %v1362_v43 = vpop.f32.mrf.mxu1 }
 0x195   : > { %v6558_v44 = vadd.f32 %v1658_v36, %v1510_v31  ;;  %v1363_v16 = vadd.f32 %v1362_v43, %v1214_v40  ;;  %2177 = vmatpush.bf16.msrb.mxu3 %v4974_v21 }
 0x19a   : > { %v1511_v56 = vpop.f32.mrf.mxu2  ;;  %v1216_v63 = vpop.f32.mrf.mxu0 }
 0x19b   : > { %v1512_v61 = vadd.f32 %v1511_v56, %v1363_v16  ;;  %v1660_v0 = vpop.f32.mrf.mxu3  ;;  %v1217_v8 = vadd.f32 %v1216_v63, %v6311_v62  ;;  %v1365_v2 = vpop.f32.mrf.mxu1 }
 0x19d   : > { %v6582_v12 = vadd.f32 %v1660_v0, %v1512_v61  ;;  %v1366_v19 = vadd.f32 %v1365_v2, %v1217_v8  ;;  %1255 = vmatmul.bf16.gmra.mxu0 %v6523_v32  ;;  %v5723_v2 = vld [vmem:[%s8715_s1 + $0xd4] sm:$0xf] }
 0x19e   : > { %1404 = vmatmul.bf16.gmra.mxu1 %v6536_v45 }
 0x19f   : > { %1553 = vmatmul.bf16.gmra.mxu2 %v6549_v23 }
 0x1a0   : > { %1702 = vmatmul.bf16.gmra.mxu3 %v6580_v9 }
 0x1a2   : > { %v1514_v57 = vpop.f32.mrf.mxu2  ;;  %v1218_v22 = vpop.f32.mrf.mxu0 }
 0x1a3   : > { %v1515_v32 = vadd.f32 %v1514_v57, %v1366_v19  ;;  %v1663_v28 = vpop.f32.mrf.mxu3  ;;  %v1219_v30 = vadd.f32 %v1218_v22, %v6311_v62  ;;  %v1367_v31 = vpop.f32.mrf.mxu1  ;;  %v5721_v57 = vld [vmem:[%s8715_s1 + $0xc4] sm:$0xf] }
 0x1a5   : > { %v6595_v35 = vadd.f32 %v1663_v28, %v1515_v32  ;;  %v1368_v36 = vadd.f32 %v1367_v31, %v1219_v30  ;;  %v4899_v32 = vld [vmem:[%s8715_s1 + $0xc8] sm:$0xf0] }
 0x1a6   : > { %v4902_v28 = vor.u32 %v5721_v57, %v4899_v32  ;;  %v5733_v57 = vld [vmem:[%s8715_s1 + $0x124] sm:$0xf]  ;;  %v4947_v32 = vld [vmem:[%s8715_s1 + $0x128] sm:$0xf0] }
 0x1aa   : > { %v1516_v40 = vpop.f32.mrf.mxu2  ;;  %v1221_v16 = vpop.f32.mrf.mxu0 }
 0x1ab   : > { %v1517_v43 = vadd.f32 %v1516_v40, %v1368_v36  ;;  %v1665_v52 = vpop.f32.mrf.mxu3  ;;  %v1222_v47 = vadd.f32 %v1221_v16, %v6311_v62  ;;  %v1370_v51 = vpop.f32.mrf.mxu1  ;;  %v5737_v40 = vld [vmem:[%s8715_s1 + $0x144] sm:$0xf] }
 0x1ad   : > { %v6601_v54 = vadd.f32 %v1665_v52, %v1517_v43  ;;  %v1371_v4 = vadd.f32 %v1370_v51, %v1222_v47  ;;  %1260 = vmatmul.bf16.gmra.mxu0 %v6536_v45  ;;  %v4907_v45 = vld [vmem:[%s8715_s1 + $0xd8] sm:$0xf0]  ;;  %v4963_v43 = vld [vmem:[%s8715_s1 + $0x148] sm:$0xf0]  ;;  %v6636_v47 = vld [vmem:[%s6265_s20 + $0xe0] sm:$0xff] }
 0x1ae   : > { %1409 = vmatmul.bf16.gmra.mxu1 %v6549_v23  ;;  %v4910_v19 = vor.u32 %v5723_v2, %v4907_v45  ;;  %v4966_v51 = vor.u32 %v5737_v40, %v4963_v43  ;;  %v4883_v45 = vld [vmem:[%s8715_s1 + $0xa8] sm:$0xf0]  ;;  %v4875_v40 = vld [vmem:[%s8715_s1 + $0x98] sm:$0xf0] }
 0x1af   : > { %1558 = vmatmul.bf16.gmra.mxu2 %v6580_v9 }
 0x1b0   : > { %1707 = vmatmul.bf16.gmra.mxu3 %v6599_v41  ;;  %2028 = vmatpush.bf16.msrb.mxu2 %v4910_v19 }
 0x1b1   : > { %2178 = vmatpush.bf16.msrb.mxu3 %v4966_v51  ;;  %v4939_v51 = vld [vmem:[%s8715_s1 + $0x118] sm:$0xf0] }
 0x1b2   : > { %v1519_v56 = vpop.f32.mrf.mxu2  ;;  %v1223_v63 = vpop.f32.mrf.mxu0 }
 0x1b3   : > { %v1520_v61 = vadd.f32 %v1519_v56, %v1371_v4  ;;  %v1668_v0 = vpop.f32.mrf.mxu3  ;;  %v1224_v1 = vadd.f32 %v1223_v63, %v6311_v62  ;;  %v1372_v3 = vpop.f32.mrf.mxu1  ;;  %v5719_v56 = vld [vmem:[%s8715_s1 + $0xb4] sm:$0xf] }
 0x1b4   : > { %2029 = vmatpush.bf16.msrb.mxu2 %v4902_v28 }
 0x1b5   : > { %v6608_v8 = vadd.f32 %v1668_v0, %v1520_v61  ;;  %v1373_v58 = vadd.f32 %v1372_v3, %v1224_v1  ;;  %v4891_v61 = vld [vmem:[%s8715_s1 + $0xb8] sm:$0xf0]  ;;  %v5735_v1 = vld [vmem:[%s8715_s1 + $0x134] sm:$0xf] }
 0x1b6   : > { %v4894_v0 = vor.u32 %v5719_v56, %v4891_v61  ;;  %v4955_v3 = vld [vmem:[%s8715_s1 + $0x138] sm:$0xf0]  ;;  %v5713_v61 = vld [vmem:[%s8715_s1 + $0x84] sm:$0xf] }
 0x1b7   : > { %v4958_v2 = vor.u32 %v5735_v1, %v4955_v3 }
 0x1b8   : > { %2030 = vmatpush.bf16.msrb.mxu2 %v4894_v0 }
 0x1b9   : > { %2179 = vmatpush.bf16.msrb.mxu3 %v4958_v2 }
 0x1ba   : > { %v1521_v22 = vpop.f32.mrf.mxu2  ;;  %v1226_v31 = vpop.f32.mrf.mxu0 }
 0x1bb   : > { %v1522_v30 = vadd.f32 %v1521_v22, %v1373_v58  ;;  %v1670_v36 = vpop.f32.mrf.mxu3  ;;  %v1227_v16 = vadd.f32 %v1226_v31, %v6311_v62  ;;  %v1375_v52 = vpop.f32.mrf.mxu1 }
 0x1bd   : > { %v6638_v4 = vadd.f32 %v1670_v36, %v1522_v30  ;;  %v1376_v63 = vadd.f32 %v1375_v52, %v1227_v16  ;;  %1265 = vmatmul.bf16.gmra.mxu0 %v6549_v23  ;;  %v5717_v23 = vld [vmem:[%s8715_s1 + $0xa4] sm:$0xf]  ;;  %v4950_v30 = vor.u32 %v5733_v57, %v4947_v32  ;;  %v5715_v36 = vld [vmem:[%s8715_s1 + $0x94] sm:$0xf] }
 0x1be   : > { %1414 = vmatmul.bf16.gmra.mxu1 %v6580_v9  ;;  %v4886_v19 = vor.u32 %v5717_v23, %v4883_v45  ;;  %v4878_v16 = vor.u32 %v5715_v36, %v4875_v40  ;;  %v5731_v52 = vld [vmem:[%s8715_s1 + $0x114] sm:$0xf]  ;;  %v5729_v45 = vld [vmem:[%s8715_s1 + $0x104] sm:$0xf] }
 0x1bf   : > { %1563 = vmatmul.bf16.gmra.mxu2 %v6599_v41  ;;  %2180 = vmatpush.bf16.msrb.mxu3 %v4950_v30  ;;  %v4942_v56 = vor.u32 %v5731_v52, %v4939_v51  ;;  %v5775_v36 = vld [vmem:[%s8715_s1 + $0x274] sm:$0xf] }
 0x1c0   : > { %1712 = vmatmul.bf16.gmra.mxu3 %v6636_v47  ;;  %2031 = vmatpush.bf16.msrb.mxu2 %v4886_v19 }
 0x1c2   : > { %v1524_v58 = vpop.f32.mrf.mxu2  ;;  %v1228_v27 = vpop.f32.mrf.mxu0 }
 0x1c3   : > { %v1525_v20 = vadd.f32 %v1524_v58, %v1376_v63  ;;  %v1673_v21 = vpop.f32.mrf.mxu3  ;;  %v1229_v22 = vadd.f32 %v1228_v27, %v6311_v62  ;;  %v1377_v28 = vpop.f32.mrf.mxu1  ;;  %v4867_v63 = vld [vmem:[%s8715_s1 + $0x88] sm:$0xf0]  ;;  %2181 = vmatpush.bf16.msrb.mxu3 %v4942_v56 }
 0x1c4   : > { %2032 = vmatpush.bf16.msrb.mxu2 %v4878_v16  ;;  %v4870_v1 = vor.u32 %v5713_v61, %v4867_v63  ;;  %v4931_v58 = vld [vmem:[%s8715_s1 + $0x108] sm:$0xf0] }
 0x1c5   : > { %v6669_v31 = vadd.f32 %v1673_v21, %v1525_v20  ;;  %v1378_v43 = vadd.f32 %v1377_v28, %v1229_v22  ;;  %v5694_v27 = vld [vmem:[%s6265_s20 + $0xe8] sm:$0xff]  ;;  %v4934_v21 = vor.u32 %v5729_v45, %v4931_v58  ;;  %v5759_v22 = vld [vmem:[%s8715_s1 + $0x1f4] sm:$0xf]  ;;  %v5051_v28 = vld [vmem:[%s8715_s1 + $0x1f8] sm:$0xf0] }
 0x1c6   : > { %v5054_v30 = vor.u32 %v5759_v22, %v5051_v28 }
 0x1c7   : > { %2182 = vmatpush.bf16.msrb.mxu3 %v4934_v21 }
 0x1c8   : > { %2033 = vmatpush.bf16.msrb.mxu2 %v4870_v1  ;;  %2324 = vmatpush.bf16.msra.mxu0 %v5054_v30 }
 0x1ca   : > { %v1526_v0 = vpop.f32.mrf.mxu2  ;;  %v1231_v2 = vpop.f32.mrf.mxu0 }
 0x1cb   : > { %v1527_v3 = vadd.f32 %v1526_v0, %v1378_v43  ;;  %v1675_v23 = vpop.f32.mrf.mxu3  ;;  %v1232_v19 = vadd.f32 %v1231_v2, %v6311_v62  ;;  %v1380_v20 = vpop.f32.mrf.mxu1 }
 0x1cd   : > { %v6697_v57 = vadd.f32 %v1675_v23, %v1527_v3  ;;  %v1381_v32 = vadd.f32 %v1380_v20, %v1232_v19  ;;  %1270 = vmatmul.bf16.gmra.mxu0 %v6580_v9  ;;  %v5115_v9 = vld [vmem:[%s8715_s1 + $0x278] sm:$0xf0]  ;;  %v5695_v19 = vld [vmem:[%s6265_s20 + $0xf0] sm:$0xff] }
 0x1ce   : > { %1419 = vmatmul.bf16.gmra.mxu1 %v6599_v41  ;;  %v5118_v40 = vor.u32 %v5775_v36, %v5115_v9 }
 0x1cf   : > { %1568 = vmatmul.bf16.gmra.mxu2 %v6636_v47 }
 0x1d0   : > { %1717 = vmatmul.bf16.gmra.mxu3 %v5694_v27  ;;  %2473 = vmatpush.bf16.msra.mxu1 %v5118_v40 }
 0x1d2   : > { %v1529_v43 = vpop.f32.mrf.mxu2  ;;  %v1233_v52 = vpop.f32.mrf.mxu0 }
 0x1d3   : > { %v1530_v16 = vadd.f32 %v1529_v43, %v1381_v32  ;;  %v1678_v51 = vpop.f32.mrf.mxu3  ;;  %v1234_v56 = vadd.f32 %v1233_v52, %v6311_v62  ;;  %v1382_v61 = vpop.f32.mrf.mxu1 }
 0x1d5   : > { %v6715_v63 = vadd.f32 %v1678_v51, %v1530_v16  ;;  %v1383_v0 = vadd.f32 %v1382_v61, %v1234_v56 }
 0x1da   : > { %v1531_v1 = vpop.f32.mrf.mxu2  ;;  %v1236_v2 = vpop.f32.mrf.mxu0 }
 0x1db   : > { %v1532_v3 = vadd.f32 %v1531_v1, %v1383_v0  ;;  %v1680_v23 = vpop.f32.mrf.mxu3  ;;  %v1237_v45 = vadd.f32 %v1236_v2, %v6311_v62  ;;  %v1385_v58 = vpop.f32.mrf.mxu1  ;;  %v6730_v0 = vld [vmem:[%s6265_s20 + $0x20] sm:$0xff]  ;;  %v5927_v2 = vld [vmem:[%s6265_s20 + $0x10] sm:$0xff] }
 0x1dc   : > { %v5925_v1 = vld [vmem:[%s6265_s20] sm:$0xff] }
 0x1dd   : > { %v6719_v20 = vadd.f32 %v1680_v23, %v1532_v3  ;;  %v1386_v21 = vadd.f32 %v1385_v58, %v1237_v45  ;;  %1275 = vmatmul.bf16.gmra.mxu0 %v6599_v41  ;;  %v5926_v3 = vld [vmem:[%s6265_s20 + $0x8] sm:$0xff] }
 0x1de   : > { %1424 = vmatmul.bf16.gmra.mxu1 %v6636_v47 }
 0x1df   : > { %1573 = vmatmul.bf16.gmra.mxu2 %v5694_v27 }
 0x1e0   : > { %1722 = vmatmul.bf16.gmra.mxu3 %v5695_v19 }
 0x1e2   : > { %v1534_v32 = vpop.f32.mrf.mxu2  ;;  %v1238_v28 = vpop.f32.mrf.mxu0 }
 0x1e3   : > { %v1535_v22 = vadd.f32 %v1534_v32, %v1386_v21  ;;  %v1683_v30 = vpop.f32.mrf.mxu3  ;;  %v1239_v36 = vadd.f32 %v1238_v28, %v6311_v62  ;;  %v1387_v9 = vpop.f32.mrf.mxu1 }
 0x1e5   : > { %v6724_v40 = vadd.f32 %v1683_v30, %v1535_v22  ;;  %v1388_v43 = vadd.f32 %v1387_v9, %v1239_v36 }
 0x1ea   : > { %v1536_v16 = vpop.f32.mrf.mxu2  ;;  %v1241_v52 = vpop.f32.mrf.mxu0 }
 0x1eb   : > { %v1537_v41 = vadd.f32 %v1536_v16, %v1388_v43  ;;  %v1685_v47 = vpop.f32.mrf.mxu3  ;;  %v1242_v27 = vadd.f32 %v1241_v52, %v6311_v62  ;;  %v1390_v51 = vpop.f32.mrf.mxu1 }
 0x1ed   : > { %v6727_v56 = vadd.f32 %v1685_v47, %v1537_v41  ;;  %v1391_v61 = vadd.f32 %v1390_v51, %v1242_v27  ;;  %1736 = vmatmul.bf16.vlgmr.msrb.gmra.mxu0 %v6730_v0  ;;  %v6743_v27 = vld [vmem:[%s6265_s20 + $0x28] sm:$0xff]  ;;  %v5929_v51 = vld [vmem:[%s6265_s20 + $0x18] sm:$0xff] }
 0x1ee   : > { %1885 = vmatmul.bf16.vlgmr.msrb.gmra.mxu1 %v5925_v1 }
 0x1ef   : > { %2034 = vmatmul.bf16.vlgmr.msrb.gmra.mxu2 %v5926_v3 }
 0x1f0   : > { %2183 = vmatmul.bf16.vlgmr.msrb.gmra.mxu3 %v5927_v2 }
 0x1f2   : > { %v1539_v23 = vpop.f32.mrf.mxu2  ;;  %v1243_v58 = vpop.f32.mrf.mxu0 }
 0x1f3   : > { %v1540_v45 = vadd.f32 %v1539_v23, %v1391_v61  ;;  %v1688_v19 = vpop.f32.mrf.mxu3  ;;  %v1244_v21 = vadd.f32 %v1243_v58, %v6311_v62  ;;  %v1392_v32 = vpop.f32.mrf.mxu1 }
 0x1f5   : > { %v6737_v22 = vadd.f32 %v1688_v19, %v1540_v45  ;;  %v1393_v28 = vadd.f32 %v1392_v32, %v1244_v21 }
 0x1fa   : > { %v1541_v30 = vpop.f32.mrf.mxu2  ;;  %v1246_v9 = vpop.f32.mrf.mxu0 }
 0x1fb   : > { %v1542_v36 = vadd.f32 %v1541_v30, %v1393_v28  ;;  %v1690_v43 = vpop.f32.mrf.mxu3  ;;  %v1247_v16 = vadd.f32 %v1246_v9, %v6311_v62  ;;  %v1395_v41 = vpop.f32.mrf.mxu1  ;;  %v5757_v28 = vld [vmem:[%s8715_s1 + $0x1e4] sm:$0xf]  ;;  %v5107_v9 = vld [vmem:[%s8715_s1 + $0x268] sm:$0xf0] }
 0x1fc   : > { %v5773_v30 = vld [vmem:[%s8715_s1 + $0x264] sm:$0xf] }
 0x1fd   : > { %v6740_v52 = vadd.f32 %v1690_v43, %v1542_v36  ;;  %v1396_v47 = vadd.f32 %v1395_v41, %v1247_v16  ;;  %1741 = vmatmul.bf16.gmra.mxu0 %v6743_v27  ;;  %v5110_v43 = vor.u32 %v5773_v30, %v5107_v9 }
 0x1fe   : > { %1890 = vmatmul.bf16.gmra.mxu1 %v5926_v3  ;;  %v5043_v3 = vld [vmem:[%s8715_s1 + $0x1e8] sm:$0xf0] }
 0x1ff   : > { %8727 = vst [vmem:[#allocation2_spill] sm:$0xff] %v6740_v52  ;;  %2039 = vmatmul.bf16.gmra.mxu2 %v5927_v2  ;;  %v5046_v36 = vor.u32 %v5757_v28, %v5043_v3  ;;  %2474 = vmatpush.bf16.msra.mxu1 %v5110_v43  ;;  %v6777_v52 = vld [vmem:[%s6265_s20 + $0x38] sm:$0xff] }
 0x200   : > { %2188 = vmatmul.bf16.gmra.mxu3 %v5929_v51 }
 0x201   : > { %2325 = vmatpush.bf16.msra.mxu0 %v5046_v36 }
 0x202   : > { %v1544_v61 = vpop.f32.mrf.mxu2  ;;  %v1248_v23 = vpop.f32.mrf.mxu0 }
 0x203   : > { %v1545_v1 = vadd.f32 %v1544_v61, %v1396_v47  ;;  %v1693_v45 = vpop.f32.mrf.mxu3  ;;  %v1249_v58 = vadd.f32 %v1248_v23, %v6311_v62  ;;  %v1397_v19 = vpop.f32.mrf.mxu1 }
 0x205   : > { %v6748_v21 = vadd.f32 %v1693_v45, %v1545_v1  ;;  %v1398_v32 = vadd.f32 %v1397_v19, %v1249_v58  ;;  %v6766_v19 = vld [vmem:[%s6265_s20 + $0x30] sm:$0xff] }
 0x207   : > { %8728 = vst [vmem:[#allocation3_spill] sm:$0xff] %v6748_v21 }
 0x20a   : > { %v1546_v16 = vpop.f32.mrf.mxu2  ;;  %v1251_v47 = vpop.f32.mrf.mxu0 }
 0x20b   : > { %v1547_v41 = vadd.f32 %v1546_v16, %v1398_v32  ;;  %v1695_v61 = vpop.f32.mrf.mxu3  ;;  %v1252_v1 = vadd.f32 %v1251_v47, %v6311_v62  ;;  %v1400_v23 = vpop.f32.mrf.mxu1 }
 0x20d   : > { %v6763_v45 = vadd.f32 %v1695_v61, %v1547_v41  ;;  %v1401_v58 = vadd.f32 %v1400_v23, %v1252_v1  ;;  %1746 = vmatmul.bf16.gmra.mxu0 %v6766_v19 }
 0x20e   : > { %1895 = vmatmul.bf16.gmra.mxu1 %v5927_v2 }
 0x20f   : > { %8729 = vst [vmem:[#allocation4_spill] sm:$0xff] %v6763_v45  ;;  %2044 = vmatmul.bf16.gmra.mxu2 %v5929_v51 }
 0x210   : > { %2193 = vmatmul.bf16.gmra.mxu3 %v6730_v0 }
 0x212   : > { %v1549_v28 = vpop.f32.mrf.mxu2  ;;  %v1253_v32 = vpop.f32.mrf.mxu0 }
 0x213   : > { %v1550_v3 = vadd.f32 %v1549_v28, %v1401_v58  ;;  %v1698_v30 = vpop.f32.mrf.mxu3  ;;  %v1254_v36 = vadd.f32 %v1253_v32, %v6311_v62  ;;  %v1402_v9 = vpop.f32.mrf.mxu1 }
 0x215   : > { %v6771_v43 = vadd.f32 %v1698_v30, %v1550_v3  ;;  %v1403_v16 = vadd.f32 %v1402_v9, %v1254_v36 }
 0x217   : > { %8730 = vst [vmem:[#allocation5_spill] sm:$0xff] %v6771_v43  ;;  %v6789_v43 = vld [vmem:[%s6265_s20 + $0x40] sm:$0xff] }
 0x21a   : > { %v1551_v41 = vpop.f32.mrf.mxu2  ;;  %v1256_v61 = vpop.f32.mrf.mxu0 }
 0x21b   : > { %v1552_v47 = vadd.f32 %v1551_v41, %v1403_v16  ;;  %v1700_v1 = vpop.f32.mrf.mxu3  ;;  %v1257_v2 = vadd.f32 %v1256_v61, %v6311_v62  ;;  %v1405_v23 = vpop.f32.mrf.mxu1 }
 0x21d   : > { %v6774_v45 = vadd.f32 %v1700_v1, %v1552_v47  ;;  %v1406_v21 = vadd.f32 %v1405_v23, %v1257_v2  ;;  %1751 = vmatmul.bf16.gmra.mxu0 %v6777_v52 }
 0x21e   : > { %1900 = vmatmul.bf16.gmra.mxu1 %v5929_v51 }
 0x21f   : > { %8731 = vst [vmem:[#allocation6_spill] sm:$0xff] %v6774_v45  ;;  %2049 = vmatmul.bf16.gmra.mxu2 %v6730_v0 }
 0x220   : > { %2198 = vmatmul.bf16.gmra.mxu3 %v6743_v27 }
 0x222   : > { %v1554_v58 = vpop.f32.mrf.mxu2  ;;  %v1258_v3 = vpop.f32.mrf.mxu0 }
 0x223   : > { %v1555_v28 = vadd.f32 %v1554_v58, %v1406_v21  ;;  %v1703_v32 = vpop.f32.mrf.mxu3  ;;  %v1259_v30 = vadd.f32 %v1258_v3, %v6311_v62  ;;  %v1407_v36 = vpop.f32.mrf.mxu1 }
 0x225   : > { %v6783_v9 = vadd.f32 %v1703_v32, %v1555_v28  ;;  %v1408_v16 = vadd.f32 %v1407_v36, %v1259_v30 }
 0x227   : > { %8732 = vst [vmem:[#allocation7_spill] sm:$0xff] %v6783_v9  ;;  %v6802_v9 = vld [vmem:[%s6265_s20 + $0x48] sm:$0xff] }
 0x22a   : > { %v1556_v41 = vpop.f32.mrf.mxu2  ;;  %v1261_v61 = vpop.f32.mrf.mxu0 }
 0x22b   : > { %v1557_v47 = vadd.f32 %v1556_v41, %v1408_v16  ;;  %v1705_v1 = vpop.f32.mrf.mxu3  ;;  %v1262_v51 = vadd.f32 %v1261_v61, %v6311_v62  ;;  %v1410_v2 = vpop.f32.mrf.mxu1 }
 0x22d   : > { %v6786_v23 = vadd.f32 %v1705_v1, %v1557_v47  ;;  %v1411_v45 = vadd.f32 %v1410_v2, %v1262_v51  ;;  %1756 = vmatmul.bf16.gmra.mxu0 %v6789_v43 }
 0x22e   : > { %1905 = vmatmul.bf16.gmra.mxu1 %v6730_v0 }
 0x22f   : > { %8733 = vst [vmem:[#allocation8_spill] sm:$0xff] %v6786_v23  ;;  %2054 = vmatmul.bf16.gmra.mxu2 %v6743_v27 }
 0x230   : > { %2203 = vmatmul.bf16.gmra.mxu3 %v6766_v19 }
 0x232   : > { %v1559_v21 = vpop.f32.mrf.mxu2  ;;  %v1263_v28 = vpop.f32.mrf.mxu0 }
 0x233   : > { %v1560_v58 = vadd.f32 %v1559_v21, %v1411_v45  ;;  %v1708_v3 = vpop.f32.mrf.mxu3  ;;  %v1264_v32 = vadd.f32 %v1263_v28, %v6311_v62  ;;  %v1412_v30 = vpop.f32.mrf.mxu1  ;;  %v5755_v45 = vld [vmem:[%s8715_s1 + $0x1d4] sm:$0xf]  ;;  %v5035_v21 = vld [vmem:[%s8715_s1 + $0x1d8] sm:$0xf0] }
 0x234   : > { %v5771_v28 = vld [vmem:[%s8715_s1 + $0x254] sm:$0xf] }
 0x235   : > { %v6796_v36 = vadd.f32 %v1708_v3, %v1560_v58  ;;  %v1413_v16 = vadd.f32 %v1412_v30, %v1264_v32  ;;  %v5038_v58 = vor.u32 %v5755_v45, %v5035_v21 }
 0x237   : > { %8734 = vst [vmem:[#allocation9_spill] sm:$0xff] %v6796_v36  ;;  %2326 = vmatpush.bf16.msra.mxu0 %v5038_v58  ;;  %v6827_v58 = vld [vmem:[%s6265_s20 + $0x50] sm:$0xff] }
 0x23a   : > { %v1561_v41 = vpop.f32.mrf.mxu2  ;;  %v1266_v61 = vpop.f32.mrf.mxu0 }
 0x23b   : > { %v1562_v47 = vadd.f32 %v1561_v41, %v1413_v16  ;;  %v1710_v1 = vpop.f32.mrf.mxu3  ;;  %v1267_v0 = vadd.f32 %v1266_v61, %v6311_v62  ;;  %v1415_v51 = vpop.f32.mrf.mxu1 }
 0x23d   : > { %v6799_v2 = vadd.f32 %v1710_v1, %v1562_v47  ;;  %v1416_v23 = vadd.f32 %v1415_v51, %v1267_v0  ;;  %1761 = vmatmul.bf16.gmra.mxu0 %v6802_v9 }
 0x23e   : > { %1910 = vmatmul.bf16.gmra.mxu1 %v6743_v27  ;;  %v5099_v27 = vld [vmem:[%s8715_s1 + $0x258] sm:$0xf0] }
 0x23f   : > { %8735 = vst [vmem:[#allocation10_spill] sm:$0xff] %v6799_v2  ;;  %2059 = vmatmul.bf16.gmra.mxu2 %v6766_v19  ;;  %v5102_v3 = vor.u32 %v5771_v28, %v5099_v27 }
 0x240   : > { %2208 = vmatmul.bf16.gmra.mxu3 %v6777_v52 }
 0x241   : > { %2475 = vmatpush.bf16.msra.mxu1 %v5102_v3 }
 0x242   : > { %v1564_v32 = vpop.f32.mrf.mxu2  ;;  %v1268_v16 = vpop.f32.mrf.mxu0 }
 0x243   : > { %v1565_v30 = vadd.f32 %v1564_v32, %v1416_v23  ;;  %v1713_v41 = vpop.f32.mrf.mxu3  ;;  %v1269_v47 = vadd.f32 %v1268_v16, %v6311_v62  ;;  %v1417_v61 = vpop.f32.mrf.mxu1 }
 0x245   : > { %v6821_v1 = vadd.f32 %v1713_v41, %v1565_v30  ;;  %v1418_v0 = vadd.f32 %v1417_v61, %v1269_v47 }
 0x247   : > { %8736 = vst [vmem:[#allocation11_spill] sm:$0xff] %v6821_v1  ;;  %v6840_v1 = vld [vmem:[%s6265_s20 + $0x58] sm:$0xff] }
 0x24a   : > { %v1566_v51 = vpop.f32.mrf.mxu2  ;;  %v1271_v21 = vpop.f32.mrf.mxu0 }
 0x24b   : > { %v1567_v45 = vadd.f32 %v1566_v51, %v1418_v0  ;;  %v1715_v2 = vpop.f32.mrf.mxu3  ;;  %v1272_v36 = vadd.f32 %v1271_v21, %v6311_v62  ;;  %v1420_v28 = vpop.f32.mrf.mxu1 }
 0x24d   : > { %v6824_v27 = vadd.f32 %v1715_v2, %v1567_v45  ;;  %v1421_v23 = vadd.f32 %v1420_v28, %v1272_v36  ;;  %1766 = vmatmul.bf16.gmra.mxu0 %v6827_v58 }
 0x24e   : > { %1915 = vmatmul.bf16.gmra.mxu1 %v6766_v19 }
 0x24f   : > { %8737 = vst [vmem:[#allocation12_spill] sm:$0xff] %v6824_v27  ;;  %2064 = vmatmul.bf16.gmra.mxu2 %v6777_v52 }
 0x250   : > { %2213 = vmatmul.bf16.gmra.mxu3 %v6789_v43 }
 0x252   : > { %v1569_v3 = vpop.f32.mrf.mxu2  ;;  %v1273_v30 = vpop.f32.mrf.mxu0 }
 0x253   : > { %v1570_v32 = vadd.f32 %v1569_v3, %v1421_v23  ;;  %v1718_v16 = vpop.f32.mrf.mxu3  ;;  %v1274_v41 = vadd.f32 %v1273_v30, %v6311_v62  ;;  %v1422_v2 = vpop.f32.mrf.mxu1 }
 0x255   : > { %v6834_v47 = vadd.f32 %v1718_v16, %v1570_v32  ;;  %v1423_v36 = vadd.f32 %v1422_v2, %v1274_v41 }
 0x25a   : > { %v1571_v61 = vpop.f32.mrf.mxu2  ;;  %v1276_v51 = vpop.f32.mrf.mxu0 }
 0x25b   : > { %v1572_v0 = vadd.f32 %v1571_v61, %v1423_v36  ;;  %v1720_v45 = vpop.f32.mrf.mxu3  ;;  %v1277_v19 = vadd.f32 %v1276_v51, %v6311_v62  ;;  %v1425_v21 = vpop.f32.mrf.mxu1 }
 0x25d   : > { %v6837_v28 = vadd.f32 %v1720_v45, %v1572_v0  ;;  %v1426_v27 = vadd.f32 %v1425_v21, %v1277_v19  ;;  %1771 = vmatmul.bf16.gmra.mxu0 %v6840_v1 }
 0x25e   : > { %1920 = vmatmul.bf16.gmra.mxu1 %v6777_v52 }
 0x25f   : > { %2069 = vmatmul.bf16.gmra.mxu2 %v6789_v43 }
 0x260   : > { %2218 = vmatmul.bf16.gmra.mxu3 %v6802_v9 }
 0x262   : > { %v1574_v23 = vpop.f32.mrf.mxu2  ;;  %v1278_v32 = vpop.f32.mrf.mxu0 }
 0x263   : > { %v1575_v3 = vadd.f32 %v1574_v23, %v1426_v27  ;;  %v1723_v30 = vpop.f32.mrf.mxu3  ;;  %v1279_v16 = vadd.f32 %v1278_v32, %v6311_v62  ;;  %v1427_v41 = vpop.f32.mrf.mxu1  ;;  %v5936_v27 = vld [vmem:[%s8716_s2] sm:$0x3] }
 0x264   : > { %v6857_v23 = vperm.slane %v5936_v27, 1  ;;  %v6860_v62 = vld [vmem:[%s6265_s20 + $0x60] sm:$0xff] }
 0x265   : > { %v6847_v2 = vadd.f32 %v1723_v30, %v1575_v3  ;;  %v1428_v36 = vadd.f32 %v1427_v41, %v1279_v16 }
 0x26a   : > { %v1576_v61 = vpop.f32.mrf.mxu2  ;;  %v1737_v45 = vpop.f32.mrf.mxu0 }
 0x26b   : > { %v1577_v0 = vadd.f32 %v1576_v61, %v1428_v36  ;;  %v1725_v51 = vpop.f32.mrf.mxu3  ;;  %v6850_v52 = vadd.f32 %v1737_v45, %v6319_v10  ;;  %v1886_v19 = vpop.f32.mrf.mxu1 }
 0x26c   : > { %v1887_v10 = vadd.f32 %v1886_v19, %v6857_v23 }
 0x26d   : > { %8738 = vst [vmem:[#allocation13_spill] sm:$0xff] %v6850_v52  ;;  %v6852_v21 = vadd.f32 %v1725_v51, %v1577_v0  ;;  %1776 = vmatmul.bf16.gmra.mxu0 %v6860_v62  ;;  %v5027_v0 = vld [vmem:[%s8715_s1 + $0x1c8] sm:$0xf0]  ;;  %v5769_v51 = vld [vmem:[%s8715_s1 + $0x244] sm:$0xf] }
 0x26e   : > { %1925 = vmatmul.bf16.gmra.mxu1 %v6789_v43  ;;  %v5753_v43 = vld [vmem:[%s8715_s1 + $0x1c4] sm:$0xf] }
 0x26f   : > { %2074 = vmatmul.bf16.gmra.mxu2 %v6802_v9  ;;  %v5030_v45 = vor.u32 %v5753_v43, %v5027_v0  ;;  %v6891_v43 = vld [vmem:[%s6265_s20 + $0x68] sm:$0xff] }
 0x270   : > { %2223 = vmatmul.bf16.gmra.mxu3 %v6827_v58 }
 0x271   : > { %2327 = vmatpush.bf16.msra.mxu0 %v5030_v45 }
 0x272   : > { %v2035_v3 = vpop.f32.mrf.mxu2  ;;  %v1739_v30 = vpop.f32.mrf.mxu0 }
 0x273   : > { %v2036_v32 = vadd.f32 %v2035_v3, %v1887_v10  ;;  %v2184_v16 = vpop.f32.mrf.mxu3  ;;  %v6868_v41 = vadd.f32 %v1739_v30, %v6337_v25  ;;  %v1888_v36 = vpop.f32.mrf.mxu1  ;;  %v5091_v25 = vld [vmem:[%s8715_s1 + $0x248] sm:$0xf0] }
 0x274   : > { %v5094_v19 = vor.u32 %v5769_v51, %v5091_v25  ;;  %v1889_v27 = vadd.f32 %v1888_v36, %v6857_v23 }
 0x275   : > { %8739 = vst [vmem:[#allocation14_spill] sm:$0xff] %v6868_v41  ;;  %v6870_v61 = vadd.f32 %v2184_v16, %v2036_v32 }
 0x276   : > { %2476 = vmatpush.bf16.msra.mxu1 %v5094_v19 }
 0x27a   : > { %v2037_v10 = vpop.f32.mrf.mxu2  ;;  %v1742_v32 = vpop.f32.mrf.mxu0 }
 0x27b   : > { %v2038_v3 = vadd.f32 %v2037_v10, %v1889_v27  ;;  %v2186_v30 = vpop.f32.mrf.mxu3  ;;  %v6886_v16 = vadd.f32 %v1742_v32, %v6342_v33  ;;  %v1891_v41 = vpop.f32.mrf.mxu1 }
 0x27c   : > { %v1892_v36 = vadd.f32 %v1891_v41, %v6857_v23 }
 0x27d   : > { %8740 = vst [vmem:[#allocation15_spill] sm:$0xff] %v6886_v16  ;;  %v6888_v52 = vadd.f32 %v2186_v30, %v2038_v3  ;;  %1781 = vmatmul.bf16.gmra.mxu0 %v6891_v43 }
 0x27e   : > { %1930 = vmatmul.bf16.gmra.mxu1 %v6802_v9 }
 0x27f   : > { %8741 = vst [vmem:[#allocation16_spill] sm:$0xff] %v6888_v52  ;;  %2079 = vmatmul.bf16.gmra.mxu2 %v6827_v58 }
 0x280   : > { %2228 = vmatmul.bf16.gmra.mxu3 %v6840_v1 }
 0x282   : > { %v2040_v0 = vpop.f32.mrf.mxu2  ;;  %v1744_v33 = vpop.f32.mrf.mxu0 }
 0x283   : > { %v2041_v51 = vadd.f32 %v2040_v0, %v1892_v36  ;;  %v2189_v45 = vpop.f32.mrf.mxu3  ;;  %v6899_v25 = vadd.f32 %v1744_v33, %v6348_v42  ;;  %v1893_v19 = vpop.f32.mrf.mxu1  ;;  %v6910_v36 = vld [vmem:[%s6265_s20 + $0x70] sm:$0xff] }
 0x284   : > { %v1894_v10 = vadd.f32 %v1893_v19, %v6857_v23 }
 0x285   : > { %8742 = vst [vmem:[#allocation17_spill] sm:$0xff] %v6899_v25  ;;  %v6901_v27 = vadd.f32 %v2189_v45, %v2041_v51 }
 0x28a   : > { %v2042_v9 = vpop.f32.mrf.mxu2  ;;  %v1747_v32 = vpop.f32.mrf.mxu0 }
 0x28b   : > { %v2043_v3 = vadd.f32 %v2042_v9, %v1894_v10  ;;  %v2191_v30 = vpop.f32.mrf.mxu3  ;;  %v6905_v16 = vadd.f32 %v1747_v32, %v6354_v50  ;;  %v1896_v41 = vpop.f32.mrf.mxu1 }
 0x28c   : > { %v1897_v42 = vadd.f32 %v1896_v41, %v6857_v23 }
 0x28d   : > { %8743 = vst [vmem:[#allocation18_spill] sm:$0xff] %v6905_v16  ;;  %v6907_v52 = vadd.f32 %v2191_v30, %v2043_v3  ;;  %1786 = vmatmul.bf16.gmra.mxu0 %v6910_v36 }
 0x28e   : > { %1935 = vmatmul.bf16.gmra.mxu1 %v6827_v58 }
 0x28f   : > { %2084 = vmatmul.bf16.gmra.mxu2 %v6840_v1 }
 0x290   : > { %2233 = vmatmul.bf16.gmra.mxu3 %v6860_v62 }
 0x292   : > { %v2045_v0 = vpop.f32.mrf.mxu2  ;;  %v1749_v50 = vpop.f32.mrf.mxu0 }
 0x293   : > { %v2046_v51 = vadd.f32 %v2045_v0, %v1897_v42  ;;  %v2194_v33 = vpop.f32.mrf.mxu3  ;;  %v6918_v45 = vadd.f32 %v1749_v50, %v6360_v59  ;;  %v1898_v19 = vpop.f32.mrf.mxu1  ;;  %v6929_v42 = vld [vmem:[%s6265_s20 + $0x78] sm:$0xff] }
 0x294   : > { %v1899_v9 = vadd.f32 %v1898_v19, %v6857_v23 }
 0x295   : > { %8744 = vst [vmem:[#allocation19_spill] sm:$0xff] %v6918_v45  ;;  %v6920_v10 = vadd.f32 %v2194_v33, %v2046_v51 }
 0x29a   : > { %v2047_v58 = vpop.f32.mrf.mxu2  ;;  %v1752_v32 = vpop.f32.mrf.mxu0 }
 0x29b   : > { %v2048_v3 = vadd.f32 %v2047_v58, %v1899_v9  ;;  %v2196_v30 = vpop.f32.mrf.mxu3  ;;  %v6924_v16 = vadd.f32 %v1752_v32, %v6367_v5  ;;  %v1901_v41 = vpop.f32.mrf.mxu1 }
 0x29c   : > { %v1902_v59 = vadd.f32 %v1901_v41, %v6857_v23 }
 0x29d   : > { %8745 = vst [vmem:[#allocation20_spill] sm:$0xff] %v6924_v16  ;;  %v6926_v25 = vadd.f32 %v2196_v30, %v2048_v3  ;;  %1791 = vmatmul.bf16.gmra.mxu0 %v6929_v42 }
 0x29e   : > { %1940 = vmatmul.bf16.gmra.mxu1 %v6840_v1 }
 0x29f   : > { %2089 = vmatmul.bf16.gmra.mxu2 %v6860_v62 }
 0x2a0   : > { %2238 = vmatmul.bf16.gmra.mxu3 %v6891_v43 }
 0x2a2   : > { %v2050_v0 = vpop.f32.mrf.mxu2  ;;  %v1754_v5 = vpop.f32.mrf.mxu0 }
 0x2a3   : > { %v2051_v51 = vadd.f32 %v2050_v0, %v1902_v59  ;;  %v2199_v50 = vpop.f32.mrf.mxu3  ;;  %v6937_v33 = vadd.f32 %v1754_v5, %v6373_v14  ;;  %v1903_v19 = vpop.f32.mrf.mxu1  ;;  %v6948_v59 = vld [vmem:[%s6265_s20 + $0x80] sm:$0xff]  ;;  %v5751_v14 = vld [vmem:[%s8715_s1 + $0x1b4] sm:$0xf] }
 0x2a4   : > { %v1904_v58 = vadd.f32 %v1903_v19, %v6857_v23 }
 0x2a5   : > { %8746 = vst [vmem:[#allocation21_spill] sm:$0xff] %v6937_v33  ;;  %v6939_v9 = vadd.f32 %v2199_v50, %v2051_v51  ;;  %v5767_v51 = vld [vmem:[%s8715_s1 + $0x234] sm:$0xf] }
 0x2aa   : > { %v2052_v1 = vpop.f32.mrf.mxu2  ;;  %v1757_v32 = vpop.f32.mrf.mxu0 }
 0x2ab   : > { %v2053_v3 = vadd.f32 %v2052_v1, %v1904_v58  ;;  %v2201_v30 = vpop.f32.mrf.mxu3  ;;  %v6943_v16 = vadd.f32 %v1757_v32, %v6392_v29  ;;  %v1906_v41 = vpop.f32.mrf.mxu1  ;;  %v5019_v29 = vld [vmem:[%s8715_s1 + $0x1b8] sm:$0xf0] }
 0x2ac   : > { %v5022_v0 = vor.u32 %v5751_v14, %v5019_v29  ;;  %v1907_v5 = vadd.f32 %v1906_v41, %v6857_v23 }
 0x2ad   : > { %8747 = vst [vmem:[#allocation22_spill] sm:$0xff] %v6943_v16  ;;  %v6945_v45 = vadd.f32 %v2201_v30, %v2053_v3  ;;  %1796 = vmatmul.bf16.gmra.mxu0 %v6948_v59 }
 0x2ae   : > { %1945 = vmatmul.bf16.gmra.mxu1 %v6860_v62  ;;  %v5083_v62 = vld [vmem:[%s8715_s1 + $0x238] sm:$0xf0]  ;;  %2328 = vmatpush.bf16.msra.mxu0 %v5022_v0 }
 0x2af   : > { %8748 = vst [vmem:[#allocation23_spill] sm:$0xff] %v6945_v45  ;;  %2094 = vmatmul.bf16.gmra.mxu2 %v6891_v43  ;;  %v5086_v50 = vor.u32 %v5767_v51, %v5083_v62 }
 0x2b0   : > { %2243 = vmatmul.bf16.gmra.mxu3 %v6910_v36 }
 0x2b1   : > { %2477 = vmatpush.bf16.msra.mxu1 %v5086_v50 }
 0x2b2   : > { %v2055_v19 = vpop.f32.mrf.mxu2  ;;  %v1759_v1 = vpop.f32.mrf.mxu0 }
 0x2b3   : > { %v2056_v58 = vadd.f32 %v2055_v19, %v1907_v5  ;;  %v2204_v3 = vpop.f32.mrf.mxu3  ;;  %v6968_v32 = vadd.f32 %v1759_v1, %v6398_v39  ;;  %v1908_v30 = vpop.f32.mrf.mxu1  ;;  %v6979_v5 = vld [vmem:[%s6265_s20 + $0x88] sm:$0xff] }
 0x2b4   : > { %v1909_v29 = vadd.f32 %v1908_v30, %v6857_v23 }
 0x2b5   : > { %v6970_v14 = vadd.f32 %v2204_v3, %v2056_v58 }
 0x2ba   : > { %v2057_v16 = vpop.f32.mrf.mxu2  ;;  %v1762_v45 = vpop.f32.mrf.mxu0 }
 0x2bb   : > { %v2058_v33 = vadd.f32 %v2057_v16, %v1909_v29  ;;  %v2206_v41 = vpop.f32.mrf.mxu3  ;;  %v6974_v51 = vadd.f32 %v1762_v45, %v6405_v49  ;;  %v1911_v0 = vpop.f32.mrf.mxu1 }
 0x2bc   : > { %v1912_v39 = vadd.f32 %v1911_v0, %v6857_v23 }
 0x2bd   : > { %8749 = vst [vmem:[#allocation24_spill] sm:$0xff] %v6974_v51  ;;  %v6976_v62 = vadd.f32 %v2206_v41, %v2058_v33  ;;  %1801 = vmatmul.bf16.gmra.mxu0 %v6979_v5 }
 0x2be   : > { %1950 = vmatmul.bf16.gmra.mxu1 %v6891_v43 }
 0x2bf   : > { %2099 = vmatmul.bf16.gmra.mxu2 %v6910_v36 }
 0x2c0   : > { %2248 = vmatmul.bf16.gmra.mxu3 %v6929_v42 }
 0x2c2   : > { %v2060_v16 = vpop.f32.mrf.mxu2  ;;  %v1764_v49 = vpop.f32.mrf.mxu0 }
 0x2c3   : > { %v2061_v50 = vadd.f32 %v2060_v16, %v1912_v39  ;;  %v2209_v45 = vpop.f32.mrf.mxu3  ;;  %v6987_v33 = vadd.f32 %v1764_v49, %v6411_v60  ;;  %v1913_v19 = vpop.f32.mrf.mxu1  ;;  %v6998_v39 = vld [vmem:[%s6265_s20 + $0x90] sm:$0xff] }
 0x2c4   : > { %v1914_v1 = vadd.f32 %v1913_v19, %v6857_v23 }
 0x2c5   : > { %8750 = vst [vmem:[#allocation25_spill] sm:$0xff] %v6987_v33  ;;  %v6989_v58 = vadd.f32 %v2209_v45, %v2061_v50 }
 0x2ca   : > { %v2062_v43 = vpop.f32.mrf.mxu2  ;;  %v1767_v30 = vpop.f32.mrf.mxu0 }
 0x2cb   : > { %v2063_v3 = vadd.f32 %v2062_v43, %v1914_v1  ;;  %v2211_v29 = vpop.f32.mrf.mxu3  ;;  %v6993_v41 = vadd.f32 %v1767_v30, %v6418_v7  ;;  %v1916_v0 = vpop.f32.mrf.mxu1 }
 0x2cc   : > { %v1917_v60 = vadd.f32 %v1916_v0, %v6857_v23 }
 0x2cd   : > { %8751 = vst [vmem:[#allocation26_spill] sm:$0xff] %v6993_v41  ;;  %v6995_v51 = vadd.f32 %v2211_v29, %v2063_v3  ;;  %1806 = vmatmul.bf16.gmra.mxu0 %v6998_v39 }
 0x2ce   : > { %1955 = vmatmul.bf16.gmra.mxu1 %v6910_v36 }
 0x2cf   : > { %2104 = vmatmul.bf16.gmra.mxu2 %v6929_v42 }
 0x2d0   : > { %2253 = vmatmul.bf16.gmra.mxu3 %v6948_v59 }
 0x2d2   : > { %v2065_v16 = vpop.f32.mrf.mxu2  ;;  %v1769_v7 = vpop.f32.mrf.mxu0 }
 0x2d3   : > { %v2066_v50 = vadd.f32 %v2065_v16, %v1917_v60  ;;  %v2214_v49 = vpop.f32.mrf.mxu3  ;;  %v7006_v45 = vadd.f32 %v1769_v7, %v6424_v17  ;;  %v1918_v19 = vpop.f32.mrf.mxu1  ;;  %v7017_v60 = vld [vmem:[%s6265_s20 + $0x98] sm:$0xff] }
 0x2d4   : > { %v1919_v43 = vadd.f32 %v1918_v19, %v6857_v23 }
 0x2d5   : > { %v7008_v1 = vadd.f32 %v2214_v49, %v2066_v50 }
 0x2da   : > { %v2067_v36 = vpop.f32.mrf.mxu2  ;;  %v1772_v30 = vpop.f32.mrf.mxu0 }
 0x2db   : > { %v2068_v3 = vadd.f32 %v2067_v36, %v1919_v43  ;;  %v2216_v29 = vpop.f32.mrf.mxu3  ;;  %v7012_v41 = vadd.f32 %v1772_v30, %v6431_v26  ;;  %v1921_v0 = vpop.f32.mrf.mxu1  ;;  %v5011_v36 = vld [vmem:[%s8715_s1 + $0x1a8] sm:$0xf0] }
 0x2dc   : > { %v1922_v17 = vadd.f32 %v1921_v0, %v6857_v23 }
 0x2dd   : > { %8752 = vst [vmem:[#allocation27_spill] sm:$0xff] %v7012_v41  ;;  %v7014_v33 = vadd.f32 %v2216_v29, %v2068_v3  ;;  %1811 = vmatmul.bf16.gmra.mxu0 %v7017_v60  ;;  %v5765_v3 = vld [vmem:[%s8715_s1 + $0x224] sm:$0xf] }
 0x2de   : > { %1960 = vmatmul.bf16.gmra.mxu1 %v6929_v42  ;;  %v5749_v42 = vld [vmem:[%s8715_s1 + $0x1a4] sm:$0xf] }
 0x2df   : > { %2109 = vmatmul.bf16.gmra.mxu2 %v6948_v59  ;;  %v5014_v30 = vor.u32 %v5749_v42, %v5011_v36  ;;  %v7048_v42 = vld [vmem:[%s6265_s20 + $0xa0] sm:$0xff] }
 0x2e0   : > { %2258 = vmatmul.bf16.gmra.mxu3 %v6979_v5 }
 0x2e1   : > { %2329 = vmatpush.bf16.msra.mxu0 %v5014_v30 }
 0x2e2   : > { %v2070_v16 = vpop.f32.mrf.mxu2  ;;  %v1774_v7 = vpop.f32.mrf.mxu0 }
 0x2e3   : > { %v2071_v50 = vadd.f32 %v2070_v16, %v1922_v17  ;;  %v2219_v26 = vpop.f32.mrf.mxu3  ;;  %v7025_v49 = vadd.f32 %v1774_v7, %v6449_v46  ;;  %v1923_v19 = vpop.f32.mrf.mxu1  ;;  %v5075_v46 = vld [vmem:[%s8715_s1 + $0x228] sm:$0xf0] }
 0x2e4   : > { %v5078_v29 = vor.u32 %v5765_v3, %v5075_v46  ;;  %v1924_v0 = vadd.f32 %v1923_v19, %v6857_v23 }
 0x2e5   : > { %8753 = vst [vmem:[#allocation28_spill] sm:$0xff] %v7025_v49  ;;  %v7027_v43 = vadd.f32 %v2219_v26, %v2071_v50 }
 0x2e6   : > { %2478 = vmatpush.bf16.msra.mxu1 %v5078_v29 }
 0x2ea   : > { %v2072_v17 = vpop.f32.mrf.mxu2  ;;  %v1777_v50 = vpop.f32.mrf.mxu0 }
 0x2eb   : > { %v2073_v16 = vadd.f32 %v2072_v17, %v1924_v0  ;;  %v2221_v7 = vpop.f32.mrf.mxu3  ;;  %v7043_v26 = vadd.f32 %v1777_v50, %v6456_v55  ;;  %v1926_v49 = vpop.f32.mrf.mxu1 }
 0x2ec   : > { %v1927_v19 = vadd.f32 %v1926_v49, %v6857_v23 }
 0x2ed   : > { %8754 = vst [vmem:[#allocation29_spill] sm:$0xff] %v7043_v26  ;;  %v7045_v41 = vadd.f32 %v2221_v7, %v2073_v16  ;;  %1816 = vmatmul.bf16.gmra.mxu0 %v7048_v42 }
 0x2ee   : > { %1965 = vmatmul.bf16.gmra.mxu1 %v6948_v59 }
 0x2ef   : > { %8755 = vst [vmem:[#allocation30_spill] sm:$0xff] %v7045_v41  ;;  %2114 = vmatmul.bf16.gmra.mxu2 %v6979_v5 }
 0x2f0   : > { %2263 = vmatmul.bf16.gmra.mxu3 %v6998_v39 }
 0x2f2   : > { %v2075_v36 = vpop.f32.mrf.mxu2  ;;  %v1779_v55 = vpop.f32.mrf.mxu0 }
 0x2f3   : > { %v2076_v3 = vadd.f32 %v2075_v36, %v1927_v19  ;;  %v2224_v30 = vpop.f32.mrf.mxu3  ;;  %v7056_v46 = vadd.f32 %v1779_v55, %v6462_v6  ;;  %v1928_v29 = vpop.f32.mrf.mxu1  ;;  %v7067_v19 = vld [vmem:[%s6265_s20 + $0xa8] sm:$0xff] }
 0x2f4   : > { %v1929_v17 = vadd.f32 %v1928_v29, %v6857_v23 }
 0x2f5   : > { %8756 = vst [vmem:[#allocation31_spill] sm:$0xff] %v7056_v46  ;;  %v7058_v0 = vadd.f32 %v2224_v30, %v2076_v3 }
 0x2fa   : > { %v2077_v59 = vpop.f32.mrf.mxu2  ;;  %v1782_v50 = vpop.f32.mrf.mxu0 }
 0x2fb   : > { %v2078_v16 = vadd.f32 %v2077_v59, %v1929_v17  ;;  %v2226_v7 = vpop.f32.mrf.mxu3  ;;  %v7062_v26 = vadd.f32 %v1782_v50, %v6469_v18  ;;  %v1931_v49 = vpop.f32.mrf.mxu1 }
 0x2fc   : > { %v1932_v6 = vadd.f32 %v1931_v49, %v6857_v23 }
 0x2fd   : > { %8757 = vst [vmem:[#allocation32_spill] sm:$0xff] %v7062_v26  ;;  %v7064_v41 = vadd.f32 %v2226_v7, %v2078_v16  ;;  %1821 = vmatmul.bf16.gmra.mxu0 %v7067_v19 }
 0x2fe   : > { %1970 = vmatmul.bf16.gmra.mxu1 %v6979_v5 }
 0x2ff   : > { %2119 = vmatmul.bf16.gmra.mxu2 %v6998_v39 }
 0x300   : > { %2268 = vmatmul.bf16.gmra.mxu3 %v7017_v60 }
 0x302   : > { %v2080_v36 = vpop.f32.mrf.mxu2  ;;  %v1784_v18 = vpop.f32.mrf.mxu0 }
 0x303   : > { %v2081_v3 = vadd.f32 %v2080_v36, %v1932_v6  ;;  %v2229_v55 = vpop.f32.mrf.mxu3  ;;  %v7075_v30 = vadd.f32 %v1784_v18, %v6475_v13  ;;  %v1933_v29 = vpop.f32.mrf.mxu1  ;;  %v7086_v6 = vld [vmem:[%s6265_s20 + $0xb0] sm:$0xff] }
 0x304   : > { %v1934_v59 = vadd.f32 %v1933_v29, %v6857_v23 }
 0x305   : > { %8758 = vst [vmem:[#allocation33_spill] sm:$0xff] %v7075_v30  ;;  %v7077_v17 = vadd.f32 %v2229_v55, %v2081_v3 }
 0x30a   : > { %v2082_v5 = vpop.f32.mrf.mxu2  ;;  %v1787_v50 = vpop.f32.mrf.mxu0 }
 0x30b   : > { %v2083_v16 = vadd.f32 %v2082_v5, %v1934_v59  ;;  %v2231_v7 = vpop.f32.mrf.mxu3  ;;  %v7081_v26 = vadd.f32 %v1787_v50, %v6482_v37  ;;  %v1936_v49 = vpop.f32.mrf.mxu1 }
 0x30c   : > { %v1937_v13 = vadd.f32 %v1936_v49, %v6857_v23 }
 0x30d   : > { %8759 = vst [vmem:[#allocation34_spill] sm:$0xff] %v7081_v26  ;;  %v7083_v46 = vadd.f32 %v2231_v7, %v2083_v16  ;;  %1826 = vmatmul.bf16.gmra.mxu0 %v7086_v6 }
 0x30e   : > { %1975 = vmatmul.bf16.gmra.mxu1 %v6998_v39 }
 0x30f   : > { %2124 = vmatmul.bf16.gmra.mxu2 %v7017_v60 }
 0x310   : > { %2273 = vmatmul.bf16.gmra.mxu3 %v7048_v42 }
 0x312   : > { %v2085_v36 = vpop.f32.mrf.mxu2  ;;  %v1789_v37 = vpop.f32.mrf.mxu0 }
 0x313   : > { %v2086_v3 = vadd.f32 %v2085_v36, %v1937_v13  ;;  %v2234_v18 = vpop.f32.mrf.mxu3  ;;  %v7094_v55 = vadd.f32 %v1789_v37, %v6488_v53  ;;  %v1938_v29 = vpop.f32.mrf.mxu1  ;;  %v7105_v13 = vld [vmem:[%s6265_s20 + $0xb8] sm:$0xff]  ;;  %v5747_v53 = vld [vmem:[%s8715_s1 + $0x194] sm:$0xf] }
 0x314   : > { %v1939_v5 = vadd.f32 %v1938_v29, %v6857_v23 }
 0x315   : > { %v7096_v59 = vadd.f32 %v2234_v18, %v2086_v3  ;;  %v5763_v3 = vld [vmem:[%s8715_s1 + $0x214] sm:$0xf] }
 0x31a   : > { %v2087_v39 = vpop.f32.mrf.mxu2  ;;  %v1792_v50 = vpop.f32.mrf.mxu0 }
 0x31b   : > { %v2088_v16 = vadd.f32 %v2087_v39, %v1939_v5  ;;  %v2236_v7 = vpop.f32.mrf.mxu3  ;;  %v7100_v26 = vadd.f32 %v1792_v50, %v6513_v15  ;;  %v1941_v49 = vpop.f32.mrf.mxu1  ;;  %v5003_v15 = vld [vmem:[%s8715_s1 + $0x198] sm:$0xf0]  ;;  %v5177_v50 = vld [vmem:[%s8717_s3 + $0x70] sm:$0xf] }
 0x31c   : > { %v5006_v36 = vor.u32 %v5747_v53, %v5003_v15  ;;  %v1942_v37 = vadd.f32 %v1941_v49, %v6857_v23 }
 0x31d   : > { %8760 = vst [vmem:[#allocation35_spill] sm:$0xff] %v7100_v26  ;;  %v7102_v30 = vadd.f32 %v2236_v7, %v2088_v16  ;;  %1831 = vmatmul.bf16.gmra.mxu0 %v7105_v13  ;;  %v5792_v7 = vld [vmem:[%s8717_s3 + $0x74] sm:$0xf0] }
 0x31e   : > { %1980 = vmatmul.bf16.gmra.mxu1 %v7017_v60  ;;  %v5067_v60 = vld [vmem:[%s8715_s1 + $0x218] sm:$0xf0]  ;;  %2330 = vmatpush.bf16.msra.mxu0 %v5006_v36  ;;  %v5178_v49 = vor.u32 %v5792_v7, %v5177_v50  ;;  %v5241_v36 = vld [vmem:[%s8717_s3 + $0xf0] sm:$0xf]  ;;  %v7148_v7 = vld [vmem:[%s6265_s20 + $0xc0] sm:$0xff] }
 0x31f   : > { %2129 = vmatmul.bf16.gmra.mxu2 %v7048_v42  ;;  %v5070_v18 = vor.u32 %v5763_v3, %v5067_v60  ;;  %v5808_v60 = vld [vmem:[%s8717_s3 + $0xf4] sm:$0xf0] }
 0x320   : > { %2278 = vmatmul.bf16.gmra.mxu3 %v7067_v19  ;;  %3360 = vmatpush.bf16.msra.mxu2 %v5178_v49 }
 0x321   : > { %2479 = vmatpush.bf16.msra.mxu1 %v5070_v18 }
 0x322   : > { %v2090_v29 = vpop.f32.mrf.mxu2  ;;  %v1794_v39 = vpop.f32.mrf.mxu0 }
 0x323   : > { %v2091_v5 = vadd.f32 %v2090_v29, %v1942_v37  ;;  %v2239_v16 = vpop.f32.mrf.mxu3  ;;  %v7131_v53 = vadd.f32 %v1794_v39, %v6525_v34  ;;  %v1943_v15 = vpop.f32.mrf.mxu1  ;;  %v5242_v37 = vor.u32 %v5808_v60, %v5241_v36 }
 0x324   : > { %v1944_v18 = vadd.f32 %v1943_v15, %v6857_v23 }
 0x325   : > { %8761 = vst [vmem:[#allocation36_spill] sm:$0xff] %v7131_v53  ;;  %v7133_v3 = vadd.f32 %v2239_v16, %v2091_v5  ;;  %3419 = vmatpush.bf16.msra.mxu3 %v5242_v37 }
 0x32a   : > { %v2092_v34 = vpop.f32.mrf.mxu2  ;;  %v1797_v39 = vpop.f32.mrf.mxu0 }
 0x32b   : > { %v2093_v29 = vadd.f32 %v2092_v34, %v1944_v18  ;;  %v2241_v53 = vpop.f32.mrf.mxu3  ;;  %v7143_v5 = vadd.f32 %v1797_v39, %v6532_v48  ;;  %v1946_v16 = vpop.f32.mrf.mxu1 }
 0x32c   : > { %v1947_v15 = vadd.f32 %v1946_v16, %v6857_v23 }
 0x32d   : > { %8762 = vst [vmem:[#allocation37_spill] sm:$0xff] %v7143_v5  ;;  %v7145_v50 = vadd.f32 %v2241_v53, %v2093_v29  ;;  %1836 = vmatmul.bf16.gmra.mxu0 %v7148_v7 }
 0x32e   : > { %1985 = vmatmul.bf16.gmra.mxu1 %v7048_v42 }
 0x32f   : > { %8763 = vst [vmem:[#allocation38_spill] sm:$0xff] %v7145_v50  ;;  %2134 = vmatmul.bf16.gmra.mxu2 %v7067_v19 }
 0x330   : > { %2283 = vmatmul.bf16.gmra.mxu3 %v7086_v6 }
 0x332   : > { %v2095_v49 = vpop.f32.mrf.mxu2  ;;  %v1799_v48 = vpop.f32.mrf.mxu0 }
 0x333   : > { %v2096_v36 = vadd.f32 %v2095_v49, %v1947_v15  ;;  %v2244_v60 = vpop.f32.mrf.mxu3  ;;  %v7156_v53 = vadd.f32 %v1799_v48, %v6538_v38  ;;  %v1948_v37 = vpop.f32.mrf.mxu1  ;;  %v7167_v15 = vld [vmem:[%s6265_s20 + $0xc8] sm:$0xff] }
 0x334   : > { %v1949_v34 = vadd.f32 %v1948_v37, %v6857_v23 }
 0x335   : > { %8764 = vst [vmem:[#allocation39_spill] sm:$0xff] %v7156_v53  ;;  %v7158_v18 = vadd.f32 %v2244_v60, %v2096_v36 }
 0x33a   : > { %v2097_v42 = vpop.f32.mrf.mxu2  ;;  %v1802_v39 = vpop.f32.mrf.mxu0 }
 0x33b   : > { %v2098_v29 = vadd.f32 %v2097_v42, %v1949_v34  ;;  %v2246_v5 = vpop.f32.mrf.mxu3  ;;  %v7162_v50 = vadd.f32 %v1802_v39, %v6545_v11  ;;  %v1951_v16 = vpop.f32.mrf.mxu1 }
 0x33c   : > { %v1952_v38 = vadd.f32 %v1951_v16, %v6857_v23 }
 0x33d   : > { %8765 = vst [vmem:[#allocation40_spill] sm:$0xff] %v7162_v50  ;;  %v7164_v26 = vadd.f32 %v2246_v5, %v2098_v29  ;;  %1841 = vmatmul.bf16.gmra.mxu0 %v7167_v15 }
 0x33e   : > { %1990 = vmatmul.bf16.gmra.mxu1 %v7067_v19 }
 0x33f   : > { %2139 = vmatmul.bf16.gmra.mxu2 %v7086_v6 }
 0x340   : > { %2288 = vmatmul.bf16.gmra.mxu3 %v7105_v13 }
 0x342   : > { %v2100_v49 = vpop.f32.mrf.mxu2  ;;  %v1804_v11 = vpop.f32.mrf.mxu0 }
 0x343   : > { %v2101_v36 = vadd.f32 %v2100_v49, %v1952_v38  ;;  %v2249_v48 = vpop.f32.mrf.mxu3  ;;  %v7175_v5 = vadd.f32 %v1804_v11, %v6551_v24  ;;  %v1953_v60 = vpop.f32.mrf.mxu1  ;;  %v7186_v38 = vld [vmem:[%s6265_s20 + $0xd0] sm:$0xff] }
 0x344   : > { %v1954_v34 = vadd.f32 %v1953_v60, %v6857_v23 }
 0x345   : > { %v7177_v37 = vadd.f32 %v2249_v48, %v2101_v36 }
 0x34a   : > { %v2102_v19 = vpop.f32.mrf.mxu2  ;;  %v1807_v29 = vpop.f32.mrf.mxu0 }
 0x34b   : > { %v2103_v42 = vadd.f32 %v2102_v19, %v1954_v34  ;;  %v2251_v39 = vpop.f32.mrf.mxu3  ;;  %v7181_v50 = vadd.f32 %v1807_v29, %v6558_v44  ;;  %v1956_v16 = vpop.f32.mrf.mxu1  ;;  %v4995_v19 = vld [vmem:[%s8715_s1 + $0x188] sm:$0xf0] }
 0x34c   : > { %v1957_v24 = vadd.f32 %v1956_v16, %v6857_v23 }
 0x34d   : > { %8766 = vst [vmem:[#allocation41_spill] sm:$0xff] %v7181_v50  ;;  %v7183_v53 = vadd.f32 %v2251_v39, %v2103_v42  ;;  %1846 = vmatmul.bf16.gmra.mxu0 %v7186_v38  ;;  %v5761_v42 = vld [vmem:[%s8715_s1 + $0x204] sm:$0xf] }
 0x34e   : > { %1995 = vmatmul.bf16.gmra.mxu1 %v7086_v6  ;;  %v5745_v6 = vld [vmem:[%s8715_s1 + $0x184] sm:$0xf] }
 0x34f   : > { %2144 = vmatmul.bf16.gmra.mxu2 %v7105_v13  ;;  %v4998_v29 = vor.u32 %v5745_v6, %v4995_v19  ;;  %v5790_v6 = vld [vmem:[%s8717_s3 + $0x64] sm:$0xf0] }
 0x350   : > { %2293 = vmatmul.bf16.gmra.mxu3 %v7148_v7 }
 0x351   : > { %2331 = vmatpush.bf16.msra.mxu0 %v4998_v29 }
 0x352   : > { %v2105_v49 = vpop.f32.mrf.mxu2  ;;  %v1809_v11 = vpop.f32.mrf.mxu0 }
 0x353   : > { %v2106_v36 = vadd.f32 %v2105_v49, %v1957_v24  ;;  %v2254_v44 = vpop.f32.mrf.mxu3  ;;  %v7194_v48 = vadd.f32 %v1809_v11, %v6582_v12  ;;  %v1958_v60 = vpop.f32.mrf.mxu1  ;;  %v5059_v12 = vld [vmem:[%s8715_s1 + $0x208] sm:$0xf0] }
 0x354   : > { %v5062_v39 = vor.u32 %v5761_v42, %v5059_v12  ;;  %v1959_v16 = vadd.f32 %v1958_v60, %v6857_v23  ;;  %v5233_v60 = vld [vmem:[%s8717_s3 + $0xe0] sm:$0xf] }
 0x355   : > { %8767 = vst [vmem:[#allocation42_spill] sm:$0xff] %v7194_v48  ;;  %v7196_v34 = vadd.f32 %v2254_v44, %v2106_v36  ;;  %v5169_v44 = vld [vmem:[%s8717_s3 + $0x60] sm:$0xf] }
 0x356   : > { %2480 = vmatpush.bf16.msra.mxu1 %v5062_v39  ;;  %v5170_v29 = vor.u32 %v5790_v6, %v5169_v44  ;;  %v5806_v39 = vld [vmem:[%s8717_s3 + $0xe4] sm:$0xf0] }
 0x358   : > { %3361 = vmatpush.bf16.msra.mxu2 %v5170_v29 }
 0x35a   : > { %v2107_v24 = vpop.f32.mrf.mxu2  ;;  %v1812_v36 = vpop.f32.mrf.mxu0 }
 0x35b   : > { %v2108_v49 = vadd.f32 %v2107_v24, %v1959_v16  ;;  %v2256_v11 = vpop.f32.mrf.mxu3  ;;  %v7218_v19 = vadd.f32 %v1812_v36, %v6595_v35  ;;  %v1961_v42 = vpop.f32.mrf.mxu1  ;;  %v7229_v16 = vld [vmem:[%s6265_s20 + $0xd8] sm:$0xff]  ;;  %v5234_v24 = vor.u32 %v5806_v39, %v5233_v60 }
 0x35c   : > { %v1962_v35 = vadd.f32 %v1961_v42, %v6857_v23 }
 0x35d   : > { %8768 = vst [vmem:[#allocation43_spill] sm:$0xff] %v7218_v19  ;;  %v7220_v12 = vadd.f32 %v2256_v11, %v2108_v49  ;;  %1851 = vmatmul.bf16.gmra.mxu0 %v7229_v16  ;;  %3420 = vmatpush.bf16.msra.mxu3 %v5234_v24 }
 0x35e   : > { %2000 = vmatmul.bf16.gmra.mxu1 %v7105_v13 }
 0x35f   : > { %8769 = vst [vmem:[#allocation44_spill] sm:$0xff] %v7220_v12  ;;  %2149 = vmatmul.bf16.gmra.mxu2 %v7148_v7 }
 0x360   : > { %2298 = vmatmul.bf16.gmra.mxu3 %v7167_v15 }
 0x362   : > { %v2110_v49 = vpop.f32.mrf.mxu2  ;;  %v1814_v11 = vpop.f32.mrf.mxu0 }
 0x363   : > { %v2111_v36 = vadd.f32 %v2110_v49, %v1962_v35  ;;  %v2259_v44 = vpop.f32.mrf.mxu3  ;;  %v7237_v6 = vadd.f32 %v1814_v11, %v6601_v54  ;;  %v1963_v19 = vpop.f32.mrf.mxu1  ;;  %v7248_v35 = vld [vmem:[%s6265_s20 + $0xe0] sm:$0xff] }
 0x364   : > { %v1964_v13 = vadd.f32 %v1963_v19, %v6857_v23 }
 0x365   : > { %v7239_v29 = vadd.f32 %v2259_v44, %v2111_v36 }
 0x36a   : > { %v2112_v60 = vpop.f32.mrf.mxu2  ;;  %v1817_v48 = vpop.f32.mrf.mxu0 }
 0x36b   : > { %v2113_v39 = vadd.f32 %v2112_v60, %v1964_v13  ;;  %v2261_v12 = vpop.f32.mrf.mxu3  ;;  %v7243_v42 = vadd.f32 %v1817_v48, %v6608_v8  ;;  %v1966_v24 = vpop.f32.mrf.mxu1 }
 0x36c   : > { %v1967_v54 = vadd.f32 %v1966_v24, %v6857_v23  ;;  %v5954_v24 = vld [vmem:[%s6265_s20 + $0xe8] sm:$0xff] }
 0x36d   : > { %8770 = vst [vmem:[#allocation45_spill] sm:$0xff] %v7243_v42  ;;  %v7245_v50 = vadd.f32 %v2261_v12, %v2113_v39  ;;  %1856 = vmatmul.bf16.gmra.mxu0 %v7248_v35  ;;  %v5955_v42 = vld [vmem:[%s6265_s20 + $0xf0] sm:$0xff] }
 0x36e   : > { %2005 = vmatmul.bf16.gmra.mxu1 %v7148_v7 }
 0x36f   : > { %2154 = vmatmul.bf16.gmra.mxu2 %v7167_v15 }
 0x370   : > { %2303 = vmatmul.bf16.gmra.mxu3 %v7186_v38 }
 0x372   : > { %v2115_v19 = vpop.f32.mrf.mxu2  ;;  %v1819_v8 = vpop.f32.mrf.mxu0 }
 0x373   : > { %v2116_v49 = vadd.f32 %v2115_v19, %v1967_v54  ;;  %v2264_v48 = vpop.f32.mrf.mxu3  ;;  %v7256_v12 = vadd.f32 %v1819_v8, %v6638_v4  ;;  %v7258_v36 = vpop.f32.mrf.mxu1 }
 0x375   : > { %8771 = vst [vmem:[#allocation46_spill] sm:$0xff] %v7256_v12  ;;  %v7260_v11 = vadd.f32 %v2264_v48, %v2116_v49 }
 0x37a   : > { %v7262_v44 = vpop.f32.mrf.mxu2  ;;  %v1822_v7 = vpop.f32.mrf.mxu0 }
 0x37b   : > { %v7264_v13 = vpop.f32.mrf.mxu3  ;;  %v7267_v60 = vadd.f32 %v1822_v7, %v6669_v31  ;;  %v1971_v39 = vpop.f32.mrf.mxu1 }
 0x37c   : > { %8772 = vst [vmem:[#allocation47_spill] sm:$0xff] %v7264_v13  ;;  %v1972_v4 = vadd.f32 %v1971_v39, %v6857_v23 }
 0x37d   : > { %8773 = vst [vmem:[#allocation48_spill] sm:$0xff] %v7267_v60  ;;  %1861 = vmatmul.bf16.gmra.mxu0 %v5954_v24 }
 0x37e   : > { %2010 = vmatmul.bf16.gmra.mxu1 %v7167_v15 }
 0x37f   : > { %2159 = vmatmul.bf16.gmra.mxu2 %v7186_v38 }
 0x380   : > { %2308 = vmatmul.bf16.gmra.mxu3 %v7229_v16 }
 0x382   : > { %v2120_v54 = vpop.f32.mrf.mxu2  ;;  %v1824_v49 = vpop.f32.mrf.mxu0 }
 0x383   : > { %v2121_v19 = vadd.f32 %v2120_v54, %v1972_v4  ;;  %v2269_v8 = vpop.f32.mrf.mxu3  ;;  %v7275_v48 = vadd.f32 %v1824_v49, %v6697_v57  ;;  %v7277_v31 = vpop.f32.mrf.mxu1 }
 0x385   : > { %8774 = vst [vmem:[#allocation49_spill] sm:$0xff] %v7275_v48  ;;  %v7279_v7 = vadd.f32 %v2269_v8, %v2121_v19 }
 0x38a   : > { %v7281_v60 = vpop.f32.mrf.mxu2  ;;  %v1827_v15 = vpop.f32.mrf.mxu0 }
 0x38b   : > { %v7283_v12 = vpop.f32.mrf.mxu3  ;;  %v7286_v13 = vadd.f32 %v1827_v15, %v6715_v63  ;;  %v1976_v39 = vpop.f32.mrf.mxu1  ;;  %v5161_v63 = vld [vmem:[%s8717_s3 + $0x50] sm:$0xf] }
 0x38c   : > { %v1977_v57 = vadd.f32 %v1976_v39, %v6857_v23 }
 0x38d   : > { %8775 = vst [vmem:[#allocation50_spill] sm:$0xff] %v7286_v13  ;;  %1866 = vmatmul.bf16.gmra.mxu0 %v5955_v42  ;;  %v5788_v42 = vld [vmem:[%s8717_s3 + $0x54] sm:$0xf0] }
 0x38e   : > { %2015 = vmatmul.bf16.gmra.mxu1 %v7186_v38  ;;  %v5162_v15 = vor.u32 %v5788_v42, %v5161_v63 }
 0x38f   : > { %2164 = vmatmul.bf16.gmra.mxu2 %v7229_v16 }
 0x390   : > { %2313 = vmatmul.bf16.gmra.mxu3 %v7248_v35  ;;  %3362 = vmatpush.bf16.msra.mxu2 %v5162_v15 }
 0x392   : > { %v2125_v4 = vpop.f32.mrf.mxu2  ;;  %v1829_v19 = vpop.f32.mrf.mxu0 }
 0x393   : > { %v2126_v54 = vadd.f32 %v2125_v4, %v1977_v57  ;;  %v2274_v49 = vpop.f32.mrf.mxu3  ;;  %v7300_v38 = vadd.f32 %v1829_v19, %v6719_v20  ;;  %v7302_v8 = vpop.f32.mrf.mxu1  ;;  %v5225_v57 = vld [vmem:[%s8717_s3 + $0xd0] sm:$0xf]  ;;  %v5804_v4 = vld [vmem:[%s8717_s3 + $0xd4] sm:$0xf0] }
 0x394   : > { %v5226_v13 = vor.u32 %v5804_v4, %v5225_v57  ;;  %v5696_v20 = vld [vmem:[%s6265_s20 + $0xf8] sm:$0xff] }
 0x395   : > { %8776 = vst [vmem:[#allocation51_spill] sm:$0xff] %v7300_v38  ;;  %v7304_v39 = vadd.f32 %v2274_v49, %v2126_v54 }
 0x396   : > { %3421 = vmatpush.bf16.msra.mxu3 %v5226_v13 }
 0x39a   : > { %v7312_v48 = vpop.f32.mrf.mxu2  ;;  %v1832_v19 = vpop.f32.mrf.mxu0 }
 0x39b   : > { %v7315_v38 = vpop.f32.mrf.mxu3  ;;  %v7318_v54 = vadd.f32 %v1832_v19, %v6724_v40  ;;  %v1981_v49 = vpop.f32.mrf.mxu1 }
 0x39c   : > { %v1982_v13 = vadd.f32 %v1981_v49, %v6857_v23  ;;  %v5956_v49 = vld [vmem:[%s6265_s20 + $0x18] sm:$0xff] }
 0x39d   : > { %8777 = vst [vmem:[#allocation52_spill] sm:$0xff] %v7318_v54  ;;  %1871 = vmatmul.bf16.gmra.mxu0 %v5696_v20 }
 0x39e   : > { %2020 = vmatmul.bf16.gmra.mxu1 %v7229_v16 }
 0x39f   : > { %2169 = vmatmul.bf16.gmra.mxu2 %v7248_v35 }
 0x3a0   : > { %2318 = vmatmul.bf16.gmra.mxu3 %v5954_v24 }
 0x3a2   : > { %v2130_v63 = vpop.f32.mrf.mxu2  ;;  %v1834_v15 = vpop.f32.mrf.mxu0 }
 0x3a3   : > { %v2131_v42 = vadd.f32 %v2130_v63, %v1982_v13  ;;  %v2279_v57 = vpop.f32.mrf.mxu3  ;;  %v7324_v4 = vadd.f32 %v1834_v15, %v6727_v56  ;;  %v7326_v40 = vpop.f32.mrf.mxu1  ;;  %v5957_v13 = vld [vmem:[%s6265_s20 + $0x20] sm:$0xff] }
 0x3a4   : > { %8779 = vst [vmem:[#allocation54_spill] sm:$0xff] %v7326_v40 }
 0x3a5   : > { %8778 = vst [vmem:[#allocation53_spill] sm:$0xff] %v7324_v4  ;;  %v7328_v19 = vadd.f32 %v2279_v57, %v2131_v42  ;;  %v8784_v4 = vld [vmem:[#allocation2_spill] sm:$0xff] }
 0x3a7   : > { %8780 = vst [vmem:[#allocation55_spill] sm:$0xff] %v7328_v19 }
 0x3aa   : > { %v7330_v20 = vpop.f32.mrf.mxu2  ;;  %v1837_v16 = vpop.f32.mrf.mxu0 }
 0x3ab   : > { %8781 = vst [vmem:[#allocation56_spill] sm:$0xff] %v7330_v20  ;;  %v7332_v54 = vpop.f32.mrf.mxu3  ;;  %v7335_v35 = vadd.f32 %v1837_v16, %v6737_v22  ;;  %v1986_v24 = vpop.f32.mrf.mxu1 }
 0x3ac   : > { %8782 = vst [vmem:[#allocation57_spill] sm:$0xff] %v7332_v54  ;;  %v1987_v56 = vadd.f32 %v1986_v24, %v6857_v23 }
 0x3ad   : > { %8783 = vst [vmem:[#allocation58_spill] sm:$0xff] %v7335_v35  ;;  %2332 = vmatmul.bf16.vlgmr.msra.gmra.mxu0 %v5956_v49  ;;  %v8790_v35 = vld [vmem:[#allocation3_spill] sm:$0xff] }
 0x3ae   : > { %2481 = vmatmul.bf16.vlgmr.msra.gmra.mxu1 %v5957_v13 }
 0x3b2   : > { %v2135_v63 = vpop.f32.mrf.mxu2  ;;  %v1839_v42 = vpop.f32.mrf.mxu0 }
 0x3b3   : > { %v2136_v15 = vadd.f32 %v2135_v63, %v1987_v56  ;;  %v2284_v57 = vpop.f32.mrf.mxu3  ;;  %v7341_v20 = vadd.f32 %v1839_v42, %v8784_v4  ;;  %v7343_v19 = vpop.f32.mrf.mxu1  ;;  %v5958_v56 = vld [vmem:[%s6265_s20 + $0x28] sm:$0xff] }
 0x3b4   : > { %8786 = vst [vmem:[#allocation59_spill] sm:$0xff] %v7343_v19 }
 0x3b5   : > { %8785 = vst [vmem:[#allocation2_spill] sm:$0xff] %v7341_v20  ;;  %v7345_v54 = vadd.f32 %v2284_v57, %v2136_v15  ;;  %v8792_v15 = vld [vmem:[#allocation4_spill] sm:$0xff] }
 0x3b7   : > { %8787 = vst [vmem:[#allocation60_spill] sm:$0xff] %v7345_v54 }
 0x3ba   : > { %v7347_v22 = vpop.f32.mrf.mxu2  ;;  %v1842_v16 = vpop.f32.mrf.mxu0 }
 0x3bb   : > { %8788 = vst [vmem:[#allocation61_spill] sm:$0xff] %v7347_v22  ;;  %v7349_v49 = vpop.f32.mrf.mxu3  ;;  %v7352_v40 = vadd.f32 %v1842_v16, %v8790_v35  ;;  %v1991_v24 = vpop.f32.mrf.mxu1 }
 0x3bc   : > { %8789 = vst [vmem:[#allocation62_spill] sm:$0xff] %v7349_v49  ;;  %v1992_v63 = vadd.f32 %v1991_v24, %v6857_v23  ;;  %v5153_v24 = vld [vmem:[%s8717_s3 + $0x40] sm:$0xf] }
 0x3bd   : > { %8791 = vst [vmem:[#allocation3_spill] sm:$0xff] %v7352_v40  ;;  %2337 = vmatmul.bf16.gmra.mxu0 %v5957_v13  ;;  %v5959_v40 = vld [vmem:[%s6265_s20 + $0x30] sm:$0xff] }
 0x3be   : > { %2486 = vmatmul.bf16.gmra.mxu1 %v5958_v56 }
 0x3c2   : > { %v2140_v4 = vpop.f32.mrf.mxu2  ;;  %v1844_v20 = vpop.f32.mrf.mxu0 }
 0x3c3   : > { %v2141_v42 = vadd.f32 %v2140_v4, %v1992_v63  ;;  %v2289_v19 = vpop.f32.mrf.mxu3  ;;  %v7357_v57 = vadd.f32 %v1844_v20, %v8792_v15  ;;  %v7359_v22 = vpop.f32.mrf.mxu1  ;;  %v5786_v63 = vld [vmem:[%s8717_s3 + $0x44] sm:$0xf0]  ;;  %v8798_v20 = vld [vmem:[#allocation5_spill] sm:$0xff] }
 0x3c4   : > { %8794 = vst [vmem:[#allocation63_spill] sm:$0xff] %v7359_v22 }
 0x3c5   : > { %8793 = vst [vmem:[#allocation4_spill] sm:$0xff] %v7357_v57  ;;  %v7361_v49 = vadd.f32 %v2289_v19, %v2141_v42  ;;  %v5154_v57 = vor.u32 %v5786_v63, %v5153_v24  ;;  %v5217_v19 = vld [vmem:[%s8717_s3 + $0xc0] sm:$0xf]  ;;  %v5802_v42 = vld [vmem:[%s8717_s3 + $0xc4] sm:$0xf0] }
 0x3c7   : > { %8795 = vst [vmem:[#allocation64_spill] sm:$0xff] %v7361_v49  ;;  %3363 = vmatpush.bf16.msra.mxu2 %v5154_v57 }
 0x3ca   : > { %v7363_v35 = vpop.f32.mrf.mxu2  ;;  %v1847_v16 = vpop.f32.mrf.mxu0 }
 0x3cb   : > { %8796 = vst [vmem:[#allocation65_spill] sm:$0xff] %v7363_v35  ;;  %v7365_v13 = vpop.f32.mrf.mxu3  ;;  %v7374_v4 = vadd.f32 %v1847_v16, %v8798_v20  ;;  %v1996_v15 = vpop.f32.mrf.mxu1  ;;  %v8800_v35 = vld [vmem:[#allocation6_spill] sm:$0xff] }
 0x3cc   : > { %8797 = vst [vmem:[#allocation66_spill] sm:$0xff] %v7365_v13  ;;  %v5218_v13 = vor.u32 %v5802_v42, %v5217_v19  ;;  %v1997_v16 = vadd.f32 %v1996_v15, %v6857_v23  ;;  %v8806_v42 = vld [vmem:[#allocation7_spill] sm:$0xff] }
 0x3cd   : > { %8799 = vst [vmem:[#allocation5_spill] sm:$0xff] %v7374_v4  ;;  %2342 = vmatmul.bf16.gmra.mxu0 %v5958_v56 }
 0x3ce   : > { %2491 = vmatmul.bf16.gmra.mxu1 %v5959_v40  ;;  %3422 = vmatpush.bf16.msra.mxu3 %v5218_v13 }
 0x3d2   : > { %v2145_v20 = vpop.f32.mrf.mxu2  ;;  %v1849_v24 = vpop.f32.mrf.mxu0 }
 0x3d3   : > { %v2146_v4 = vadd.f32 %v2145_v20, %v1997_v16  ;;  %v2294_v63 = vpop.f32.mrf.mxu3  ;;  %v7385_v49 = vadd.f32 %v1849_v24, %v8800_v35  ;;  %v7387_v22 = vpop.f32.mrf.mxu1  ;;  %v5960_v16 = vld [vmem:[%s6265_s20 + $0x38] sm:$0xff] }
 0x3d4   : > { %8802 = vst [vmem:[#allocation67_spill] sm:$0xff] %v7387_v22 }
 0x3d5   : > { %8801 = vst [vmem:[#allocation6_spill] sm:$0xff] %v7385_v49  ;;  %v7389_v54 = vadd.f32 %v2294_v63, %v2146_v4  ;;  %v8808_v63 = vld [vmem:[#allocation8_spill] sm:$0xff] }
 0x3d7   : > { %8803 = vst [vmem:[#allocation68_spill] sm:$0xff] %v7389_v54 }
 0x3da   : > { %v7391_v56 = vpop.f32.mrf.mxu2  ;;  %v1852_v57 = vpop.f32.mrf.mxu0 }
 0x3db   : > { %8804 = vst [vmem:[#allocation69_spill] sm:$0xff] %v7391_v56  ;;  %v7393_v19 = vpop.f32.mrf.mxu3  ;;  %v7396_v13 = vadd.f32 %v1852_v57, %v8806_v42  ;;  %v2001_v15 = vpop.f32.mrf.mxu1 }
 0x3dc   : > { %8805 = vst [vmem:[#allocation70_spill] sm:$0xff] %v7393_v19  ;;  %v2002_v35 = vadd.f32 %v2001_v15, %v6857_v23 }
 0x3dd   : > { %8807 = vst [vmem:[#allocation7_spill] sm:$0xff] %v7396_v13  ;;  %2347 = vmatmul.bf16.gmra.mxu0 %v5959_v40  ;;  %v8814_v13 = vld [vmem:[#allocation9_spill] sm:$0xff] }
 0x3de   : > { %2496 = vmatmul.bf16.gmra.mxu1 %v5960_v16 }
 0x3e2   : > { %v2150_v20 = vpop.f32.mrf.mxu2  ;;  %v1854_v49 = vpop.f32.mrf.mxu0 }
 0x3e3   : > { %v2151_v24 = vadd.f32 %v2150_v20, %v2002_v35  ;;  %v2299_v4 = vpop.f32.mrf.mxu3  ;;  %v7401_v54 = vadd.f32 %v1854_v49, %v8808_v63  ;;  %v7403_v56 = vpop.f32.mrf.mxu1  ;;  %v5961_v35 = vld [vmem:[%s6265_s20 + $0x40] sm:$0xff] }
 0x3e4   : > { %8810 = vst [vmem:[#allocation71_spill] sm:$0xff] %v7403_v56 }
 0x3e5   : > { %8809 = vst [vmem:[#allocation8_spill] sm:$0xff] %v7401_v54  ;;  %v7405_v19 = vadd.f32 %v2299_v4, %v2151_v24  ;;  %v8816_v4 = vld [vmem:[#allocation10_spill] sm:$0xff] }
 0x3e7   : > { %8811 = vst [vmem:[#allocation72_spill] sm:$0xff] %v7405_v19 }
 0x3ea   : > { %v7407_v57 = vpop.f32.mrf.mxu2  ;;  %v1857_v42 = vpop.f32.mrf.mxu0 }
 0x3eb   : > { %8812 = vst [vmem:[#allocation73_spill] sm:$0xff] %v7407_v57  ;;  %v7409_v40 = vpop.f32.mrf.mxu3  ;;  %v7412_v22 = vadd.f32 %v1857_v42, %v8814_v13  ;;  %v2006_v15 = vpop.f32.mrf.mxu1 }
 0x3ec   : > { %8813 = vst [vmem:[#allocation74_spill] sm:$0xff] %v7409_v40  ;;  %v2007_v49 = vadd.f32 %v2006_v15, %v6857_v23 }
 0x3ed   : > { %8815 = vst [vmem:[#allocation9_spill] sm:$0xff] %v7412_v22  ;;  %2352 = vmatmul.bf16.gmra.mxu0 %v5960_v16  ;;  %v8822_v22 = vld [vmem:[#allocation11_spill] sm:$0xff] }
 0x3ee   : > { %2501 = vmatmul.bf16.gmra.mxu1 %v5961_v35 }
 0x3f2   : > { %v2155_v20 = vpop.f32.mrf.mxu2  ;;  %v1859_v54 = vpop.f32.mrf.mxu0 }
 0x3f3   : > { %v2156_v63 = vadd.f32 %v2155_v20, %v2007_v49  ;;  %v2304_v24 = vpop.f32.mrf.mxu3  ;;  %v7417_v19 = vadd.f32 %v1859_v54, %v8816_v4  ;;  %v7419_v57 = vpop.f32.mrf.mxu1  ;;  %v5962_v49 = vld [vmem:[%s6265_s20 + $0x48] sm:$0xff] }
 0x3f4   : > { %8818 = vst [vmem:[#allocation75_spill] sm:$0xff] %v7419_v57 }
 0x3f5   : > { %8817 = vst [vmem:[#allocation10_spill] sm:$0xff] %v7417_v19  ;;  %v7421_v40 = vadd.f32 %v2304_v24, %v2156_v63  ;;  %v5145_v63 = vld [vmem:[%s8717_s3 + $0x30] sm:$0xf]  ;;  %v5784_v24 = vld [vmem:[%s8717_s3 + $0x34] sm:$0xf0] }
 0x3f7   : > { %8819 = vst [vmem:[#allocation76_spill] sm:$0xff] %v7421_v40 }
 0x3fa   : > { %v7423_v13 = vpop.f32.mrf.mxu2  ;;  %v1862_v42 = vpop.f32.mrf.mxu0 }
 0x3fb   : > { %8820 = vst [vmem:[#allocation77_spill] sm:$0xff] %v7423_v13  ;;  %v7425_v16 = vpop.f32.mrf.mxu3  ;;  %v7428_v56 = vadd.f32 %v1862_v42, %v8822_v22  ;;  %v2011_v15 = vpop.f32.mrf.mxu1  ;;  %v8824_v22 = vld [vmem:[#allocation12_spill] sm:$0xff] }
 0x3fc   : > { %8821 = vst [vmem:[#allocation78_spill] sm:$0xff] %v7425_v16  ;;  %v2012_v20 = vadd.f32 %v2011_v15, %v6857_v23 }
 0x3fd   : > { %8823 = vst [vmem:[#allocation11_spill] sm:$0xff] %v7428_v56  ;;  %2357 = vmatmul.bf16.gmra.mxu0 %v5961_v35  ;;  %v5146_v56 = vor.u32 %v5784_v24, %v5145_v63 }
 0x3fe   : > { %2506 = vmatmul.bf16.gmra.mxu1 %v5962_v49 }
 0x3ff   : > { %3364 = vmatpush.bf16.msra.mxu2 %v5146_v56 }
 0x402   : > { %v2160_v54 = vpop.f32.mrf.mxu2  ;;  %v1864_v19 = vpop.f32.mrf.mxu0 }
 0x403   : > { %v2161_v4 = vadd.f32 %v2160_v54, %v2012_v20  ;;  %v2309_v57 = vpop.f32.mrf.mxu3  ;;  %v7439_v42 = vadd.f32 %v1864_v19, %v8824_v22  ;;  %v7441_v35 = vpop.f32.mrf.mxu1  ;;  %v5209_v20 = vld [vmem:[%s8717_s3 + $0xb0] sm:$0xf]  ;;  %v5800_v54 = vld [vmem:[%s8717_s3 + $0xb4] sm:$0xf0] }
 0x404   : > { %8826 = vst [vmem:[#allocation79_spill] sm:$0xff] %v7441_v35  ;;  %v5210_v16 = vor.u32 %v5800_v54, %v5209_v20  ;;  %v8843_v35 = vld [vmem:[#allocation15_spill] sm:$0xff] }
 0x405   : > { %8825 = vst [vmem:[#allocation12_spill] sm:$0xff] %v7439_v42  ;;  %v7443_v15 = vadd.f32 %v2309_v57, %v2161_v4  ;;  %v5963_v4 = vld [vmem:[%s6265_s20 + $0x50] sm:$0xff] }
 0x406   : > { %3423 = vmatpush.bf16.msra.mxu3 %v5210_v16 }
 0x407   : > { %8827 = vst [vmem:[#allocation80_spill] sm:$0xff] %v7443_v15 }
 0x40a   : > { %v7451_v13 = vpop.f32.mrf.mxu2  ;;  %v1867_v19 = vpop.f32.mrf.mxu0 }
 0x40b   : > { %8828 = vst [vmem:[#allocation81_spill] sm:$0xff] %v7451_v13  ;;  %v7453_v22 = vpop.f32.mrf.mxu3  ;;  %v7456_v63 = vadd.f32 %v1867_v19, %v6834_v47  ;;  %v2016_v57 = vpop.f32.mrf.mxu1  ;;  %v5966_v13 = vld [vmem:[%s6265_s20 + $0x68] sm:$0xff] }
 0x40c   : > { %8829 = vst [vmem:[#allocation82_spill] sm:$0xff] %v7453_v22  ;;  %v2017_v24 = vadd.f32 %v2016_v57, %v6857_v23 }
 0x40d   : > { %8830 = vst [vmem:[#allocation83_spill] sm:$0xff] %v7456_v63  ;;  %2362 = vmatmul.bf16.gmra.mxu0 %v5962_v49 }
 0x40e   : > { %2511 = vmatmul.bf16.gmra.mxu1 %v5963_v4 }
 0x412   : > { %v2165_v42 = vpop.f32.mrf.mxu2  ;;  %v1869_v56 = vpop.f32.mrf.mxu0 }
 0x413   : > { %v2166_v15 = vadd.f32 %v2165_v42, %v2017_v24  ;;  %v2314_v20 = vpop.f32.mrf.mxu3  ;;  %v7461_v16 = vadd.f32 %v1869_v56, %v6837_v28  ;;  %v7463_v54 = vpop.f32.mrf.mxu1  ;;  %v5964_v42 = vld [vmem:[%s6265_s20 + $0x58] sm:$0xff] }
 0x414   : > { %8832 = vst [vmem:[#allocation85_spill] sm:$0xff] %v7463_v54 }
 0x415   : > { %8831 = vst [vmem:[#allocation84_spill] sm:$0xff] %v7461_v16  ;;  %v7465_v22 = vadd.f32 %v2314_v20, %v2166_v15 }
 0x417   : > { %8833 = vst [vmem:[#allocation86_spill] sm:$0xff] %v7465_v22 }
 0x41a   : > { %v7467_v47 = vpop.f32.mrf.mxu2  ;;  %v1872_v19 = vpop.f32.mrf.mxu0 }
 0x41b   : > { %8834 = vst [vmem:[#allocation87_spill] sm:$0xff] %v7467_v47  ;;  %v7469_v49 = vpop.f32.mrf.mxu3  ;;  %v7472_v63 = vadd.f32 %v1872_v19, %v6847_v2  ;;  %v2021_v57 = vpop.f32.mrf.mxu1  ;;  %v5137_v2 = vld [vmem:[%s8717_s3 + $0x20] sm:$0xf] }
 0x41c   : > { %8835 = vst [vmem:[#allocation88_spill] sm:$0xff] %v7469_v49  ;;  %v2022_v24 = vadd.f32 %v2021_v57, %v6857_v23 }
 0x41d   : > { %8836 = vst [vmem:[#allocation89_spill] sm:$0xff] %v7472_v63  ;;  %2367 = vmatmul.bf16.gmra.mxu0 %v5963_v4  ;;  %v5782_v4 = vld [vmem:[%s8717_s3 + $0x24] sm:$0xf0] }
 0x41e   : > { %2516 = vmatmul.bf16.gmra.mxu1 %v5964_v42  ;;  %v5138_v19 = vor.u32 %v5782_v4, %v5137_v2  ;;  %v5121_v2 = vld [vmem:[%s8717_s3] sm:$0xf]  ;;  %v5778_v4 = vld [vmem:[%s8717_s3 + $0x4] sm:$0xf0] }
 0x420   : > { %3365 = vmatpush.bf16.msra.mxu2 %v5138_v19  ;;  %v8840_v19 = vld [vmem:[#allocation13_spill] sm:$0xff] }
 0x422   : > { %v2170_v28 = vpop.f32.mrf.mxu2  ;;  %v1874_v16 = vpop.f32.mrf.mxu0 }
 0x423   : > { %v2171_v56 = vadd.f32 %v2170_v28, %v2022_v24  ;;  %v2319_v54 = vpop.f32.mrf.mxu3  ;;  %v7477_v15 = vadd.f32 %v1874_v16, %v6852_v21  ;;  %v7479_v20 = vpop.f32.mrf.mxu1  ;;  %v5129_v21 = vld [vmem:[%s8717_s3 + $0x10] sm:$0xf]  ;;  %v5780_v16 = vld [vmem:[%s8717_s3 + $0x14] sm:$0xf0] }
 0x424   : > { %8838 = vst [vmem:[#allocation91_spill] sm:$0xff] %v7479_v20  ;;  %v5130_v28 = vor.u32 %v5780_v16, %v5129_v21 }
 0x425   : > { %8837 = vst [vmem:[#allocation90_spill] sm:$0xff] %v7477_v15  ;;  %v7481_v49 = vadd.f32 %v2319_v54, %v2171_v56  ;;  %v5965_v15 = vld [vmem:[%s6265_s20 + $0x60] sm:$0xff] }
 0x426   : > { %3366 = vmatpush.bf16.msra.mxu2 %v5130_v28 }
 0x427   : > { %8839 = vst [vmem:[#allocation92_spill] sm:$0xff] %v7481_v49  ;;  %v5122_v49 = vor.u32 %v5778_v4, %v5121_v2 }
 0x42a   : > { %v2333_v57 = vpop.f32.mrf.mxu0  ;;  %3367 = vmatpush.bf16.msra.mxu2 %v5122_v49 }
 0x42b   : > { %v2334_v54 = vadd.f32 %v2333_v57, %v6870_v61  ;;  %v2482_v24 = vpop.f32.mrf.mxu1  ;;  %v8841_v57 = vld [vmem:[#allocation16_spill] sm:$0xff] }
 0x42d   : > { %v2483_v56 = vadd.f32 %v2482_v24, %v2334_v54  ;;  %2372 = vmatmul.bf16.gmra.mxu0 %v5964_v42  ;;  %v8842_v54 = vld [vmem:[#allocation14_spill] sm:$0xff] }
 0x42e   : > { %2521 = vmatmul.bf16.gmra.mxu1 %v5965_v15 }
 0x42f   : > { %v2622_v63 = vmax.f32 %v8840_v19, %v2483_v56 }
 0x431   : > { %v2678_v56 = vmax.f32 %v2622_v63, 0.0  ;;  %v5796_v63 = vld [vmem:[%s8717_s3 + $0x94] sm:$0xf0] }
 0x432   : > { %v2335_v61 = vpop.f32.mrf.mxu0 }
 0x433   : > { %v2336_v21 = vadd.f32 %v2335_v61, %v8841_v57  ;;  %v2484_v42 = vpop.f32.mrf.mxu1 }
 0x435   : > { %v2485_v16 = vadd.f32 %v2484_v42, %v2336_v21  ;;  %v5201_v21 = vld [vmem:[%s8717_s3 + $0xa0] sm:$0xf] }
 0x437   : > { %v2623_v24 = vmax.f32 %v8842_v54, %v2485_v16 }
 0x43a   : > { %v2338_v28 = vpop.f32.mrf.mxu0 }
 0x43b   : > { %v2339_v20 = vadd.f32 %v2338_v28, %v6901_v27  ;;  %v2487_v47 = vpop.f32.mrf.mxu1  ;;  %v5798_v27 = vld [vmem:[%s8717_s3 + $0xa4] sm:$0xf0] }
 0x43d   : > { %v2488_v22 = vadd.f32 %v2487_v47, %v2339_v20  ;;  %2377 = vmatmul.bf16.gmra.mxu0 %v5965_v15  ;;  %v8844_v47 = vld [vmem:[#allocation17_spill] sm:$0xff]  ;;  %v5202_v20 = vor.u32 %v5798_v27, %v5201_v21  ;;  %v8845_v21 = vld [vmem:[#allocation18_spill] sm:$0xff] }
 0x43e   : > { %2526 = vmatmul.bf16.gmra.mxu1 %v5966_v13 }
 0x43f   : > { %v2624_v40 = vmax.f32 %v8843_v35, %v2488_v22  ;;  %v2679_v35 = vmax.f32 %v2623_v24, 0.0  ;;  %3424 = vmatpush.bf16.msra.mxu3 %v5202_v20  ;;  %v5967_v24 = vld [vmem:[%s6265_s20 + $0x70] sm:$0xff] }
 0x441   : > { %v2680_v2 = vmax.f32 %v2624_v40, 0.0 }
 0x442   : > { %v2340_v49 = vpop.f32.mrf.mxu0 }
 0x443   : > { %v2734_v4 = vmax.f32 %v2678_v56, %v2680_v2  ;;  %v2341_v19 = vadd.f32 %v2340_v49, %v6907_v52  ;;  %v2489_v61 = vpop.f32.mrf.mxu1  ;;  %v5193_v52 = vld [vmem:[%s8717_s3 + $0x90] sm:$0xf] }
 0x444   : > { %v5194_v56 = vor.u32 %v5796_v63, %v5193_v52 }
 0x445   : > { %v2490_v57 = vadd.f32 %v2489_v61, %v2341_v19  ;;  %v2762_v42 = vpack.c.bf16 %v2734_v4, %v2734_v4  ;;  %v5185_v19 = vld [vmem:[%s8717_s3 + $0x80] sm:$0xf]  ;;  %v5794_v61 = vld [vmem:[%s8717_s3 + $0x84] sm:$0xf0] }
 0x446   : > { %3425 = vmatpush.bf16.msra.mxu3 %v5194_v56  ;;  %v5186_v27 = vor.u32 %v5794_v61, %v5185_v19  ;;  %v8848_v61 = vld [vmem:[#allocation23_spill] sm:$0xff] }
 0x447   : > { %v2625_v15 = vmax.f32 %v8844_v47, %v2490_v57  ;;  %v2810_v4 = vunpack.c.l.b16 %v2762_v42 }
 0x449   : > { %v2681_v40 = vmax.f32 %v2625_v15, 0.0 }
 0x44a   : > { %v2343_v22 = vpop.f32.mrf.mxu0  ;;  %3426 = vmatpush.bf16.msra.mxu3 %v5186_v27  ;;  %v8849_v27 = vld [vmem:[#allocation21_spill] sm:$0xff] }
 0x44b   : > { %v2735_v16 = vmax.f32 %v2679_v35, %v2681_v40  ;;  %v2344_v54 = vadd.f32 %v2343_v22, %v6920_v10  ;;  %v2492_v28 = vpop.f32.mrf.mxu1  ;;  %v8846_v40 = vld [vmem:[#allocation19_spill] sm:$0xff] }
 0x44d   : > { %v2763_v2 = vpack.c.bf16 %v2735_v16, %v2735_v16  ;;  %v2493_v49 = vadd.f32 %v2492_v28, %v2344_v54  ;;  %2382 = vmatmul.bf16.gmra.mxu0 %v5966_v13  ;;  %v5968_v54 = vld [vmem:[%s6265_s20 + $0x78] sm:$0xff]  ;;  %v8847_v28 = vld [vmem:[#allocation20_spill] sm:$0xff] }
 0x44e   : > { %2531 = vmatmul.bf16.gmra.mxu1 %v5967_v24 }
 0x44f   : > { %v2811_v57 = vunpack.c.l.b16 %v2763_v2  ;;  %v2626_v10 = vmax.f32 %v8845_v21, %v2493_v49 }
 0x451   : > { %v7532_v47 = vpack.c.b16 %v2811_v57, %v2810_v4  ;;  %v2682_v2 = vmax.f32 %v2626_v10, 0.0 }
 0x452   : > { %v2345_v13 = vpop.f32.mrf.mxu0 }
 0x453   : > { %v2346_v15 = vadd.f32 %v2345_v13, %v6926_v25  ;;  %v2494_v20 = vpop.f32.mrf.mxu1  ;;  %3368 = vmatmul.bf16.vlgmr.msra.gmra.mxu2 %v7532_v47 }
 0x455   : > { %v2495_v35 = vadd.f32 %v2494_v20, %v2346_v15 }
 0x457   : > { %v2627_v22 = vmax.f32 %v8846_v40, %v2495_v35 }
 0x459   : > { %v2683_v15 = vmax.f32 %v2627_v22, 0.0 }
 0x45a   : > { %v2348_v52 = vpop.f32.mrf.mxu0 }
 0x45b   : > { %v2349_v63 = vadd.f32 %v2348_v52, %v6939_v9  ;;  %v2497_v42 = vpop.f32.mrf.mxu1 }
 0x45d   : > { %v2498_v16 = vadd.f32 %v2497_v42, %v2349_v63  ;;  %2387 = vmatmul.bf16.gmra.mxu0 %v5967_v24  ;;  %v5969_v42 = vld [vmem:[%s6265_s20 + $0x80] sm:$0xff] }
 0x45e   : > { %2536 = vmatmul.bf16.gmra.mxu1 %v5968_v54 }
 0x45f   : > { %v2628_v56 = vmax.f32 %v8847_v28, %v2498_v16 }
 0x461   : > { %v2684_v49 = vmax.f32 %v2628_v56, 0.0  ;;  %v8850_v56 = vld [vmem:[#allocation22_spill] sm:$0xff] }
 0x462   : > { %v2350_v19 = vpop.f32.mrf.mxu0 }
 0x463   : > { %v2736_v25 = vmax.f32 %v2682_v2, %v2684_v49  ;;  %v2351_v4 = vadd.f32 %v2350_v19, %v8848_v61  ;;  %v2499_v57 = vpop.f32.mrf.mxu1 }
 0x465   : > { %v2500_v21 = vadd.f32 %v2499_v57, %v2351_v4  ;;  %v2764_v35 = vpack.c.bf16 %v2736_v25, %v2736_v25 }
 0x467   : > { %v2629_v13 = vmax.f32 %v8849_v27, %v2500_v21  ;;  %v2812_v16 = vunpack.c.l.b16 %v2764_v35  ;;  %v5970_v27 = vld [vmem:[%s6265_s20 + $0x88] sm:$0xff] }
 0x469   : > { %v2685_v9 = vmax.f32 %v2629_v13, 0.0  ;;  %v8851_v13 = vld [vmem:[#allocation24_spill] sm:$0xff] }
 0x46a   : > { %v2353_v20 = vpop.f32.mrf.mxu0 }
 0x46b   : > { %v2737_v24 = vmax.f32 %v2683_v15, %v2685_v9  ;;  %v2354_v40 = vadd.f32 %v2353_v20, %v6970_v14  ;;  %v2502_v52 = vpop.f32.mrf.mxu1 }
 0x46d   : > { %v2765_v63 = vpack.c.bf16 %v2737_v24, %v2737_v24  ;;  %v2503_v10 = vadd.f32 %v2502_v52, %v2354_v40  ;;  %2392 = vmatmul.bf16.gmra.mxu0 %v5968_v54 }
 0x46e   : > { %2541 = vmatmul.bf16.gmra.mxu1 %v5969_v42 }
 0x46f   : > { %v2813_v28 = vunpack.c.l.b16 %v2765_v63  ;;  %v2630_v2 = vmax.f32 %v8850_v56, %v2503_v10 }
 0x471   : > { %v7545_v49 = vpack.c.b16 %v2813_v28, %v2812_v16  ;;  %v2686_v9 = vmax.f32 %v2630_v2, 0.0 }
 0x472   : > { %v2355_v22 = vpop.f32.mrf.mxu0 }
 0x473   : > { %v2356_v19 = vadd.f32 %v2355_v22, %v6976_v62  ;;  %v2504_v25 = vpop.f32.mrf.mxu1  ;;  %3373 = vmatmul.bf16.gmra.mxu2 %v7545_v49  ;;  %3427 = vmatmul.bf16.vlgmr.msra.gmra.mxu3 %v7545_v49 }
 0x475   : > { %v2505_v14 = vadd.f32 %v2504_v25, %v2356_v19  ;;  %v5971_v25 = vld [vmem:[%s6265_s20 + $0x90] sm:$0xff] }
 0x477   : > { %v2631_v54 = vmax.f32 %v6968_v32, %v2505_v14  ;;  %v8852_v32 = vld [vmem:[#allocation25_spill] sm:$0xff] }
 0x479   : > { %v2687_v10 = vmax.f32 %v2631_v54, 0.0 }
 0x47a   : > { %v2358_v61 = vpop.f32.mrf.mxu0 }
 0x47b   : > { %v2359_v4 = vadd.f32 %v2358_v61, %v6989_v58  ;;  %v2507_v57 = vpop.f32.mrf.mxu1  ;;  %v8853_v61 = vld [vmem:[#allocation26_spill] sm:$0xff] }
 0x47d   : > { %v2508_v21 = vadd.f32 %v2507_v57, %v2359_v4  ;;  %2397 = vmatmul.bf16.gmra.mxu0 %v5969_v42 }
 0x47e   : > { %2546 = vmatmul.bf16.gmra.mxu1 %v5970_v27 }
 0x47f   : > { %v2632_v15 = vmax.f32 %v8851_v13, %v2508_v21 }
 0x481   : > { %v2688_v62 = vmax.f32 %v2632_v15, 0.0 }
 0x482   : > { %v2360_v20 = vpop.f32.mrf.mxu0 }
 0x483   : > { %v2738_v35 = vmax.f32 %v2686_v9, %v2688_v62  ;;  %v2361_v24 = vadd.f32 %v2360_v20, %v6995_v51  ;;  %v2509_v40 = vpop.f32.mrf.mxu1 }
 0x485   : > { %v2510_v52 = vadd.f32 %v2509_v40, %v2361_v24  ;;  %v2766_v28 = vpack.c.bf16 %v2738_v35, %v2738_v35  ;;  %v5972_v35 = vld [vmem:[%s6265_s20 + $0x98] sm:$0xff]  ;;  %v8854_v24 = vld [vmem:[#allocation27_spill] sm:$0xff] }
 0x487   : > { %v2633_v63 = vmax.f32 %v8852_v32, %v2510_v52  ;;  %v2814_v14 = vunpack.c.l.b16 %v2766_v28 }
 0x489   : > { %v2689_v58 = vmax.f32 %v2633_v63, 0.0 }
 0x48a   : > { %v2363_v16 = vpop.f32.mrf.mxu0 }
 0x48b   : > { %v2739_v42 = vmax.f32 %v2687_v10, %v2689_v58  ;;  %v2364_v56 = vadd.f32 %v2363_v16, %v7008_v1  ;;  %v2512_v22 = vpop.f32.mrf.mxu1  ;;  %v8855_v10 = vld [vmem:[#allocation30_spill] sm:$0xff] }
 0x48d   : > { %v2767_v19 = vpack.c.bf16 %v2739_v42, %v2739_v42  ;;  %v2513_v2 = vadd.f32 %v2512_v22, %v2364_v56  ;;  %2402 = vmatmul.bf16.gmra.mxu0 %v5970_v27 }
 0x48e   : > { %2551 = vmatmul.bf16.gmra.mxu1 %v5971_v25 }
 0x48f   : > { %v2815_v51 = vunpack.c.l.b16 %v2767_v19  ;;  %v2634_v4 = vmax.f32 %v8853_v61, %v2513_v2 }
 0x491   : > { %v7559_v57 = vpack.c.b16 %v2815_v51, %v2814_v14  ;;  %v2690_v52 = vmax.f32 %v2634_v4, 0.0  ;;  %v5973_v4 = vld [vmem:[%s6265_s20 + $0xa0] sm:$0xff] }
 0x492   : > { %v2365_v54 = vpop.f32.mrf.mxu0 }
 0x493   : > { %v2366_v21 = vadd.f32 %v2365_v54, %v7014_v33  ;;  %v2514_v13 = vpop.f32.mrf.mxu1  ;;  %3378 = vmatmul.bf16.gmra.mxu2 %v7559_v57  ;;  %3432 = vmatmul.bf16.gmra.mxu3 %v7559_v57 }
 0x495   : > { %v2515_v1 = vadd.f32 %v2514_v13, %v2366_v21  ;;  %v8857_v13 = vld [vmem:[#allocation29_spill] sm:$0xff] }
 0x497   : > { %v2635_v27 = vmax.f32 %v7006_v45, %v2515_v1  ;;  %v8856_v45 = vld [vmem:[#allocation28_spill] sm:$0xff] }
 0x499   : > { %v2691_v56 = vmax.f32 %v2635_v27, 0.0 }
 0x49a   : > { %v2368_v15 = vpop.f32.mrf.mxu0 }
 0x49b   : > { %v2369_v9 = vadd.f32 %v2368_v15, %v7027_v43  ;;  %v2517_v62 = vpop.f32.mrf.mxu1 }
 0x49d   : > { %v2518_v20 = vadd.f32 %v2517_v62, %v2369_v9  ;;  %2407 = vmatmul.bf16.gmra.mxu0 %v5971_v25 }
 0x49e   : > { %2556 = vmatmul.bf16.gmra.mxu1 %v5972_v35 }
 0x49f   : > { %v2636_v40 = vmax.f32 %v8854_v24, %v2518_v20  ;;  %v8858_v20 = vld [vmem:[#allocation31_spill] sm:$0xff] }
 0x4a1   : > { %v2692_v33 = vmax.f32 %v2636_v40, 0.0 }
 0x4a2   : > { %v2370_v32 = vpop.f32.mrf.mxu0 }
 0x4a3   : > { %v2740_v63 = vmax.f32 %v2690_v52, %v2692_v33  ;;  %v2371_v58 = vadd.f32 %v2370_v32, %v8855_v10  ;;  %v2519_v16 = vpop.f32.mrf.mxu1  ;;  %v5974_v32 = vld [vmem:[%s6265_s20 + $0xa8] sm:$0xff] }
 0x4a5   : > { %v2520_v28 = vadd.f32 %v2519_v16, %v2371_v58  ;;  %v2768_v19 = vpack.c.bf16 %v2740_v63, %v2740_v63  ;;  %v8859_v63 = vld [vmem:[#allocation32_spill] sm:$0xff] }
 0x4a7   : > { %v2637_v42 = vmax.f32 %v8856_v45, %v2520_v28  ;;  %v2816_v54 = vunpack.c.l.b16 %v2768_v19 }
 0x4a9   : > { %v2693_v43 = vmax.f32 %v2637_v42, 0.0 }
 0x4aa   : > { %v2373_v22 = vpop.f32.mrf.mxu0 }
 0x4ab   : > { %v2741_v2 = vmax.f32 %v2691_v56, %v2693_v43  ;;  %v2374_v25 = vadd.f32 %v2373_v22, %v7058_v0  ;;  %v2522_v14 = vpop.f32.mrf.mxu1  ;;  %v8860_v43 = vld [vmem:[#allocation33_spill] sm:$0xff] }
 0x4ad   : > { %v2769_v51 = vpack.c.bf16 %v2741_v2, %v2741_v2  ;;  %v2523_v61 = vadd.f32 %v2522_v14, %v2374_v25  ;;  %2412 = vmatmul.bf16.gmra.mxu0 %v5972_v35 }
 0x4ae   : > { %2561 = vmatmul.bf16.gmra.mxu1 %v5973_v4 }
 0x4af   : > { %v2817_v21 = vunpack.c.l.b16 %v2769_v51  ;;  %v2638_v1 = vmax.f32 %v8857_v13, %v2523_v61 }
 0x4b1   : > { %v7573_v15 = vpack.c.b16 %v2817_v21, %v2816_v54  ;;  %v2694_v58 = vmax.f32 %v2638_v1, 0.0  ;;  %v5975_v21 = vld [vmem:[%s6265_s20 + $0xb0] sm:$0xff]  ;;  %v8861_v1 = vld [vmem:[#allocation34_spill] sm:$0xff] }
 0x4b2   : > { %v2375_v27 = vpop.f32.mrf.mxu0 }
 0x4b3   : > { %v2376_v9 = vadd.f32 %v2375_v27, %v7064_v41  ;;  %v2524_v62 = vpop.f32.mrf.mxu1  ;;  %3383 = vmatmul.bf16.gmra.mxu2 %v7573_v15  ;;  %3437 = vmatmul.bf16.gmra.mxu3 %v7573_v15 }
 0x4b5   : > { %v2525_v0 = vadd.f32 %v2524_v62, %v2376_v9 }
 0x4b7   : > { %v2639_v35 = vmax.f32 %v8858_v20, %v2525_v0 }
 0x4b9   : > { %v2695_v19 = vmax.f32 %v2639_v35, 0.0 }
 0x4ba   : > { %v2378_v24 = vpop.f32.mrf.mxu0 }
 0x4bb   : > { %v2379_v40 = vadd.f32 %v2378_v24, %v7077_v17  ;;  %v2527_v52 = vpop.f32.mrf.mxu1 }
 0x4bd   : > { %v2528_v33 = vadd.f32 %v2527_v52, %v2379_v40  ;;  %2417 = vmatmul.bf16.gmra.mxu0 %v5973_v4 }
 0x4be   : > { %2566 = vmatmul.bf16.gmra.mxu1 %v5974_v32 }
 0x4bf   : > { %v2640_v10 = vmax.f32 %v8859_v63, %v2528_v33  ;;  %v8862_v63 = vld [vmem:[#allocation35_spill] sm:$0xff] }
 0x4c1   : > { %v2696_v41 = vmax.f32 %v2640_v10, 0.0 }
 0x4c2   : > { %v2380_v16 = vpop.f32.mrf.mxu0 }
 0x4c3   : > { %v2742_v28 = vmax.f32 %v2694_v58, %v2696_v41  ;;  %v2381_v45 = vadd.f32 %v2380_v16, %v7083_v46  ;;  %v2529_v42 = vpop.f32.mrf.mxu1 }
 0x4c5   : > { %v2530_v56 = vadd.f32 %v2529_v42, %v2381_v45  ;;  %v2770_v25 = vpack.c.bf16 %v2742_v28, %v2742_v28  ;;  %v8863_v28 = vld [vmem:[#allocation38_spill] sm:$0xff] }
 0x4c7   : > { %v2641_v22 = vmax.f32 %v8860_v43, %v2530_v56  ;;  %v2818_v13 = vunpack.c.l.b16 %v2770_v25  ;;  %v8864_v43 = vld [vmem:[#allocation36_spill] sm:$0xff]  ;;  %v7604_v25 = vpop.f32.mrf.mxu2 }
 0x4c9   : > { %v2697_v17 = vmax.f32 %v2641_v22, 0.0  ;;  %v5824_v22 = vld [vmem:[%s8717_s3 + $0x174] sm:$0xf0] }
 0x4ca   : > { %v2383_v2 = vpop.f32.mrf.mxu0 }
 0x4cb   : > { %v2743_v14 = vmax.f32 %v2695_v19, %v2697_v17  ;;  %v2384_v51 = vadd.f32 %v2383_v2, %v7096_v59  ;;  %v2532_v61 = vpop.f32.mrf.mxu1 }
 0x4cd   : > { %v2771_v4 = vpack.c.bf16 %v2743_v14, %v2743_v14  ;;  %v2533_v54 = vadd.f32 %v2532_v61, %v2384_v51  ;;  %2422 = vmatmul.bf16.gmra.mxu0 %v5974_v32  ;;  %v5976_v32 = vld [vmem:[%s6265_s20 + $0xb8] sm:$0xff] }
 0x4ce   : > { %2571 = vmatmul.bf16.gmra.mxu1 %v5975_v21 }
 0x4cf   : > { %v2819_v46 = vunpack.c.l.b16 %v2771_v4  ;;  %v2642_v27 = vmax.f32 %v8861_v1, %v2533_v54  ;;  %v2954_v1 = vld [vmem:[%s8718_s4] sm:$0x3] }
 0x4d1   : > { %v7587_v9 = vpack.c.b16 %v2819_v46, %v2818_v13  ;;  %v2698_v58 = vmax.f32 %v2642_v27, 0.0  ;;  %v7607_v46 = vpop.f32.mrf.mxu3  ;;  %v5977_v27 = vld [vmem:[%s6265_s20 + $0xc0] sm:$0xff] }
 0x4d2   : > { %v2385_v62 = vpop.f32.mrf.mxu0 }
 0x4d3   : > { %v2386_v0 = vadd.f32 %v2385_v62, %v7102_v30  ;;  %v2534_v20 = vpop.f32.mrf.mxu1  ;;  %3388 = vmatmul.bf16.gmra.mxu2 %v7587_v9  ;;  %3442 = vmatmul.bf16.gmra.mxu3 %v7587_v9 }
 0x4d5   : > { %v2535_v59 = vadd.f32 %v2534_v20, %v2386_v0  ;;  %v8865_v20 = vld [vmem:[#allocation37_spill] sm:$0xff] }
 0x4d7   : > { %v2643_v35 = vmax.f32 %v7094_v55, %v2535_v59 }
 0x4d9   : > { %v2699_v17 = vmax.f32 %v2643_v35, 0.0  ;;  %v7614_v35 = vperm.slane %v2954_v1, 0 }
 0x4da   : > { %v2388_v24 = vpop.f32.mrf.mxu0 }
 0x4db   : > { %v2389_v40 = vadd.f32 %v2388_v24, %v7133_v3  ;;  %v2537_v52 = vpop.f32.mrf.mxu1  ;;  %v5305_v3 = vld [vmem:[%s8717_s3 + $0x170] sm:$0xf] }
 0x4dc   : > { %v5306_v19 = vor.u32 %v5824_v22, %v5305_v3  ;;  %v5838_v3 = vld [vmem:[%s8717_s3 + $0x1e4] sm:$0xf0] }
 0x4dd   : > { %v2538_v33 = vadd.f32 %v2537_v52, %v2389_v40  ;;  %2427 = vmatmul.bf16.gmra.mxu0 %v5975_v21  ;;  %v5840_v40 = vld [vmem:[%s8717_s3 + $0x1f4] sm:$0xf0]  ;;  %v3369_v52 = vpop.f32.mrf.mxu2 }
 0x4de   : > { %2576 = vmatmul.bf16.gmra.mxu1 %v5976_v32  ;;  %3478 = vmatpush.bf16.msrb.mxu2 %v5306_v19 }
 0x4df   : > { %v2644_v10 = vmax.f32 %v8862_v63, %v2538_v33 }
 0x4e1   : > { %v2700_v30 = vmax.f32 %v2644_v10, 0.0 }
 0x4e2   : > { %v2390_v41 = vpop.f32.mrf.mxu0 }
 0x4e3   : > { %v2744_v16 = vmax.f32 %v2698_v58, %v2700_v30  ;;  %v2391_v45 = vadd.f32 %v2390_v41, %v8863_v28  ;;  %v2539_v42 = vpop.f32.mrf.mxu1  ;;  %v3370_v58 = vadd.f32 %v3369_v52, %v7614_v35 }
 0x4e5   : > { %v2540_v56 = vadd.f32 %v2539_v42, %v2391_v45  ;;  %v2772_v51 = vpack.c.bf16 %v2744_v16, %v2744_v16  ;;  %v8866_v16 = vld [vmem:[#allocation39_spill] sm:$0xff]  ;;  %v5297_v42 = vld [vmem:[%s8717_s3 + $0x160] sm:$0xf] }
 0x4e7   : > { %v2645_v55 = vmax.f32 %v8864_v43, %v2540_v56  ;;  %v2820_v62 = vunpack.c.l.b16 %v2772_v51  ;;  %v8867_v51 = vld [vmem:[#allocation40_spill] sm:$0xff] }
 0x4e9   : > { %v2701_v2 = vmax.f32 %v2645_v55, 0.0  ;;  %v5361_v55 = vld [vmem:[%s8717_s3 + $0x1e0] sm:$0xf] }
 0x4ea   : > { %v2393_v14 = vpop.f32.mrf.mxu0 }
 0x4eb   : > { %v2745_v61 = vmax.f32 %v2699_v17, %v2701_v2  ;;  %v2394_v4 = vadd.f32 %v2393_v14, %v7158_v18  ;;  %v2542_v54 = vpop.f32.mrf.mxu1  ;;  %v5369_v18 = vld [vmem:[%s8717_s3 + $0x1f0] sm:$0xf]  ;;  %v5362_v17 = vor.u32 %v5838_v3, %v5361_v55  ;;  %v5978_v14 = vld [vmem:[%s6265_s20 + $0xc8] sm:$0xff]  ;;  %v5823_v55 = vld [vmem:[%s8717_s3 + $0x174] sm:$0xf] }
 0x4ec   : > { %v5307_v3 = vld [vmem:[%s8717_s3 + $0x178] sm:$0xf0] }
 0x4ed   : > { %v2773_v21 = vpack.c.bf16 %v2745_v61, %v2745_v61  ;;  %v2543_v13 = vadd.f32 %v2542_v54, %v2394_v4  ;;  %2432 = vmatmul.bf16.gmra.mxu0 %v5976_v32  ;;  %v5370_v32 = vor.u32 %v5840_v40, %v5369_v18  ;;  %v7648_v40 = vpop.f32.mrf.mxu2 }
 0x4ee   : > { %2581 = vmatmul.bf16.gmra.mxu1 %v5977_v27 }
 0x4ef   : > { %v2821_v0 = vunpack.c.l.b16 %v2773_v21  ;;  %v2646_v59 = vmax.f32 %v8865_v20, %v2543_v13  ;;  %3537 = vmatpush.bf16.msrb.mxu3 %v5370_v32 }
 0x4f1   : > { %v7616_v24 = vpack.c.b16 %v2821_v0, %v2820_v62  ;;  %v2702_v4 = vmax.f32 %v2646_v59, 0.0 }
 0x4f2   : > { %v2395_v33 = vpop.f32.mrf.mxu0 }
 0x4f3   : > { %v2396_v63 = vadd.f32 %v2395_v33, %v7164_v26  ;;  %v2544_v10 = vpop.f32.mrf.mxu1  ;;  %3393 = vmatmul.bf16.gmra.mxu2 %v7616_v24  ;;  %3447 = vmatmul.bf16.gmra.mxu3 %v7616_v24  ;;  %v5822_v26 = vld [vmem:[%s8717_s3 + $0x164] sm:$0xf0] }
 0x4f4   : > { %v5298_v43 = vor.u32 %v5822_v26, %v5297_v42  ;;  %3538 = vmatpush.bf16.msrb.mxu3 %v5362_v17  ;;  %v5807_v42 = vld [vmem:[%s8717_s3 + $0xf4] sm:$0xf] }
 0x4f5   : > { %v2545_v30 = vadd.f32 %v2544_v10, %v2396_v63 }
 0x4f6   : > { %v3428_v41 = vpop.f32.mrf.mxu3  ;;  %3479 = vmatpush.bf16.msrb.mxu2 %v5298_v43  ;;  %v3374_v26 = vpop.f32.mrf.mxu2 }
 0x4f7   : > { %v2647_v28 = vmax.f32 %v8866_v16, %v2545_v30  ;;  %v7629_v45 = vadd.f32 %v3428_v41, %v3370_v58 }
 0x4f9   : > { %v2703_v20 = vmax.f32 %v2647_v28, 0.0 }
 0x4fa   : > { %v2398_v56 = vpop.f32.mrf.mxu0 }
 0x4fb   : > { %v2399_v22 = vadd.f32 %v2398_v56, %v7177_v37  ;;  %v2547_v19 = vpop.f32.mrf.mxu1 }
 0x4fd   : > { %v2548_v2 = vadd.f32 %v2547_v19, %v2399_v22  ;;  %2437 = vmatmul.bf16.gmra.mxu0 %v5977_v27  ;;  %v5289_v22 = vld [vmem:[%s8717_s3 + $0x150] sm:$0xf] }
 0x4fe   : > { %2586 = vmatmul.bf16.gmra.mxu1 %v5978_v14  ;;  %v7651_v58 = vpop.f32.mrf.mxu3  ;;  %v8869_v19 = vld [vmem:[#allocation44_spill] sm:$0xff] }
 0x4ff   : > { %v2648_v61 = vmax.f32 %v8867_v51, %v2548_v2  ;;  %v5820_v51 = vld [vmem:[%s8717_s3 + $0x154] sm:$0xf0] }
 0x501   : > { %v2704_v54 = vmax.f32 %v2648_v61, 0.0  ;;  %v5353_v61 = vld [vmem:[%s8717_s3 + $0x1d0] sm:$0xf] }
 0x502   : > { %v2400_v21 = vpop.f32.mrf.mxu0 }
 0x503   : > { %v2746_v13 = vmax.f32 %v2702_v4, %v2704_v54  ;;  %v2401_v1 = vadd.f32 %v2400_v21, %v7183_v53  ;;  %v2549_v62 = vpop.f32.mrf.mxu1  ;;  %v5979_v53 = vld [vmem:[%s6265_s20 + $0xd0] sm:$0xff]  ;;  %v5836_v4 = vld [vmem:[%s8717_s3 + $0x1d4] sm:$0xf0]  ;;  %v5290_v54 = vor.u32 %v5820_v51, %v5289_v22  ;;  %v7705_v22 = vpop.f32.mrf.mxu2 }
 0x504   : > { %v5354_v21 = vor.u32 %v5836_v4, %v5353_v61 }
 0x505   : > { %v2550_v0 = vadd.f32 %v2549_v62, %v2401_v1  ;;  %v2774_v52 = vpack.c.bf16 %v2746_v13, %v2746_v13  ;;  %v3375_v13 = vadd.f32 %v3374_v26, %v7614_v35  ;;  %3480 = vmatpush.bf16.msrb.mxu2 %v5290_v54 }
 0x506   : > { %3539 = vmatpush.bf16.msrb.mxu3 %v5354_v21 }
 0x507   : > { %v2649_v37 = vmax.f32 %v7175_v5, %v2550_v0  ;;  %v2822_v30 = vunpack.c.l.b16 %v2774_v52  ;;  %v8868_v5 = vld [vmem:[#allocation41_spill] sm:$0xff]  ;;  %v8870_v0 = vld [vmem:[#allocation42_spill] sm:$0xff] }
 0x509   : > { %v2705_v18 = vmax.f32 %v2649_v37, 0.0 }
 0x50a   : > { %v2403_v27 = vpop.f32.mrf.mxu0 }
 0x50b   : > { %v2747_v33 = vmax.f32 %v2703_v20, %v2705_v18  ;;  %v2404_v32 = vadd.f32 %v2403_v27, %v7196_v34  ;;  %v2552_v59 = vpop.f32.mrf.mxu1  ;;  %v5243_v34 = vld [vmem:[%s8717_s3 + $0xf8] sm:$0xf0] }
 0x50c   : > { %v5246_v43 = vor.u32 %v5807_v42, %v5243_v34 }
 0x50d   : > { %v2775_v63 = vpack.c.bf16 %v2747_v33, %v2747_v33  ;;  %v2553_v10 = vadd.f32 %v2552_v59, %v2404_v32  ;;  %2442 = vmatmul.bf16.gmra.mxu0 %v5978_v14  ;;  %v5310_v14 = vor.u32 %v5823_v55, %v5307_v3  ;;  %v5980_v32 = vld [vmem:[%s6265_s20 + $0xd8] sm:$0xff]  ;;  %v8871_v59 = vld [vmem:[#allocation43_spill] sm:$0xff] }
 0x50e   : > { %2591 = vmatmul.bf16.gmra.mxu1 %v5979_v53  ;;  %3714 = vmatpush.bf16.msrb.mxu0 %v5246_v43 }
 0x50f   : > { %v2823_v41 = vunpack.c.l.b16 %v2775_v63  ;;  %v2650_v16 = vmax.f32 %v8868_v5, %v2553_v10  ;;  %3773 = vmatpush.bf16.msrb.mxu1 %v5310_v14 }
 0x511   : > { %v7655_v28 = vpack.c.b16 %v2823_v41, %v2822_v30  ;;  %v2706_v10 = vmax.f32 %v2650_v16, 0.0  ;;  %v5345_v16 = vld [vmem:[%s8717_s3 + $0x1c0] sm:$0xf] }
 0x512   : > { %v2405_v56 = vpop.f32.mrf.mxu0 }
 0x513   : > { %v2406_v17 = vadd.f32 %v2405_v56, %v8869_v19  ;;  %v2554_v2 = vpop.f32.mrf.mxu1  ;;  %3398 = vmatmul.bf16.gmra.mxu2 %v7655_v28  ;;  %3452 = vmatmul.bf16.gmra.mxu3 %v7655_v28 }
 0x515   : > { %v2555_v1 = vadd.f32 %v2554_v2, %v2406_v17  ;;  %v1969_v17 = vadd.f32 %v7258_v36, %v6857_v23  ;;  %v8872_v36 = vld [vmem:[#allocation45_spill] sm:$0xff] }
 0x516   : > { %v3433_v62 = vpop.f32.mrf.mxu3 }
 0x517   : > { %v2651_v37 = vmax.f32 %v8870_v0, %v2555_v1  ;;  %v7686_v20 = vadd.f32 %v3433_v62, %v3375_v13  ;;  %v2118_v4 = vadd.f32 %v7262_v44, %v1969_v17  ;;  %v5981_v1 = vld [vmem:[%s6265_s20 + $0xe0] sm:$0xff]  ;;  %v5235_v44 = vld [vmem:[%s8717_s3 + $0xe8] sm:$0xf0] }
 0x519   : > { %v2707_v55 = vmax.f32 %v2651_v37, 0.0 }
 0x51a   : > { %v2408_v18 = vpop.f32.mrf.mxu0 }
 0x51b   : > { %v2409_v27 = vadd.f32 %v2408_v18, %v7239_v29  ;;  %v2557_v52 = vpop.f32.mrf.mxu1  ;;  %v5281_v29 = vld [vmem:[%s8717_s3 + $0x140] sm:$0xf]  ;;  %v5821_v18 = vld [vmem:[%s8717_s3 + $0x164] sm:$0xf] }
 0x51d   : > { %v2558_v33 = vadd.f32 %v2557_v52, %v2409_v27  ;;  %2447 = vmatmul.bf16.gmra.mxu0 %v5979_v53  ;;  %v5818_v53 = vld [vmem:[%s8717_s3 + $0x144] sm:$0xf0] }
 0x51e   : > { %2596 = vmatmul.bf16.gmra.mxu1 %v5980_v32  ;;  %v5282_v43 = vor.u32 %v5818_v53, %v5281_v29  ;;  %v7713_v13 = vpop.f32.mrf.mxu3  ;;  %v8873_v27 = vld [vmem:[#allocation47_spill] sm:$0xff]  ;;  %v5227_v29 = vld [vmem:[%s8717_s3 + $0xd8] sm:$0xf0]  ;;  %v5819_v53 = vld [vmem:[%s8717_s3 + $0x154] sm:$0xf] }
 0x51f   : > { %v2652_v63 = vmax.f32 %v8871_v59, %v2558_v33  ;;  %v2267_v52 = vadd.f32 %v8873_v27, %v2118_v4  ;;  %v5816_v59 = vld [vmem:[%s8717_s3 + $0x134] sm:$0xf0]  ;;  %v5337_v4 = vld [vmem:[%s8717_s3 + $0x1b0] sm:$0xf] }
 0x520   : > { %3481 = vmatpush.bf16.msrb.mxu2 %v5282_v43 }
 0x521   : > { %v2708_v30 = vmax.f32 %v2652_v63, 0.0 }
 0x522   : > { %v2410_v41 = vpop.f32.mrf.mxu0 }
 0x523   : > { %v2748_v5 = vmax.f32 %v2706_v10, %v2708_v30  ;;  %v2411_v42 = vadd.f32 %v2410_v41, %v7245_v50  ;;  %v2559_v34 = vpop.f32.mrf.mxu1  ;;  %v5834_v50 = vld [vmem:[%s8717_s3 + $0x1c4] sm:$0xf0]  ;;  %v3379_v10 = vpop.f32.mrf.mxu2 }
 0x525   : > { %v2560_v26 = vadd.f32 %v2559_v34, %v2411_v42  ;;  %v2776_v2 = vpack.c.bf16 %v2748_v5, %v2748_v5  ;;  %v5299_v5 = vld [vmem:[%s8717_s3 + $0x168] sm:$0xf0] }
 0x527   : > { %v2653_v56 = vmax.f32 %v7237_v6, %v2560_v26  ;;  %v5346_v6 = vor.u32 %v5834_v50, %v5345_v16  ;;  %v2824_v62 = vunpack.c.l.b16 %v2776_v2  ;;  %v5302_v26 = vor.u32 %v5821_v18, %v5299_v5  ;;  %v5982_v5 = vld [vmem:[%s6265_s20 + $0xe8] sm:$0xff] }
 0x528   : > { %v3380_v16 = vadd.f32 %v3379_v10, %v7614_v35  ;;  %v1974_v18 = vadd.f32 %v7277_v31, %v6857_v23  ;;  %v5815_v10 = vld [vmem:[%s8717_s3 + $0x134] sm:$0xf] }
 0x529   : > { %v2709_v3 = vmax.f32 %v2653_v56, 0.0  ;;  %3540 = vmatpush.bf16.msrb.mxu3 %v5346_v6  ;;  %v5803_v56 = vld [vmem:[%s8717_s3 + $0xd4] sm:$0xf]  ;;  %3774 = vmatpush.bf16.msrb.mxu1 %v5302_v26 }
 0x52a   : > { %v2413_v19 = vpop.f32.mrf.mxu0  ;;  %v5230_v50 = vor.u32 %v5803_v56, %v5227_v29  ;;  %v2123_v31 = vadd.f32 %v7281_v60, %v1974_v18  ;;  %v5797_v56 = vld [vmem:[%s8717_s3 + $0xa4] sm:$0xf]  ;;  %v5203_v60 = vld [vmem:[%s8717_s3 + $0xa8] sm:$0xf0] }
 0x52b   : > { %v2749_v14 = vmax.f32 %v2707_v55, %v2709_v3  ;;  %v2414_v51 = vadd.f32 %v2413_v19, %v7260_v11  ;;  %v2562_v61 = vpop.f32.mrf.mxu1  ;;  %v5805_v11 = vld [vmem:[%s8717_s3 + $0xe4] sm:$0xf]  ;;  %v5291_v55 = vld [vmem:[%s8717_s3 + $0x158] sm:$0xf0] }
 0x52c   : > { %v5238_v63 = vor.u32 %v5805_v11, %v5235_v44  ;;  %v5294_v6 = vor.u32 %v5819_v53, %v5291_v55  ;;  %v8874_v19 = vld [vmem:[#allocation46_spill] sm:$0xff]  ;;  %v5283_v44 = vld [vmem:[%s8717_s3 + $0x148] sm:$0xf0]  ;;  %v2272_v29 = vadd.f32 %v7283_v12, %v2123_v31  ;;  %v5795_v12 = vld [vmem:[%s8717_s3 + $0x94] sm:$0xf]  ;;  %v1979_v31 = vadd.f32 %v7302_v8, %v6857_v23 }
 0x52d   : > { %v2777_v54 = vpack.c.bf16 %v2749_v14, %v2749_v14  ;;  %v7711_v21 = vadd.f32 %v2562_v61, %v2414_v51  ;;  %2452 = vmatmul.bf16.gmra.mxu0 %v5980_v32  ;;  %v5273_v32 = vld [vmem:[%s8717_s3 + $0x130] sm:$0xf]  ;;  %v5801_v14 = vld [vmem:[%s8717_s3 + $0xc4] sm:$0xf]  ;;  %v5219_v51 = vld [vmem:[%s8717_s3 + $0xc8] sm:$0xf0] }
 0x52e   : > { %2601 = vmatmul.bf16.gmra.mxu1 %v5981_v1  ;;  %v5274_v41 = vor.u32 %v5816_v59, %v5273_v32  ;;  %3715 = vmatpush.bf16.msrb.mxu0 %v5238_v63  ;;  %v5817_v61 = vld [vmem:[%s8717_s3 + $0x144] sm:$0xf]  ;;  %v5799_v59 = vld [vmem:[%s8717_s3 + $0xb4] sm:$0xf]  ;;  %v5211_v63 = vld [vmem:[%s8717_s3 + $0xb8] sm:$0xf0] }
 0x52f   : > { %v2825_v0 = vunpack.c.l.b16 %v2777_v54  ;;  %v2654_v37 = vmax.f32 %v8872_v36, %v7711_v21  ;;  %v5832_v54 = vld [vmem:[%s8717_s3 + $0x1b4] sm:$0xf0]  ;;  %3775 = vmatpush.bf16.msrb.mxu1 %v5294_v6  ;;  %v5286_v32 = vor.u32 %v5817_v61, %v5283_v44  ;;  %v5195_v21 = vld [vmem:[%s8717_s3 + $0x98] sm:$0xf0]  ;;  %v5811_v36 = vld [vmem:[%s8717_s3 + $0x114] sm:$0xf] }
 0x530   : > { %3482 = vmatpush.bf16.msrb.mxu2 %v5274_v41  ;;  %v5338_v11 = vor.u32 %v5832_v54, %v5337_v4  ;;  %v5275_v41 = vld [vmem:[%s8717_s3 + $0x138] sm:$0xf0]  ;;  %v5809_v44 = vld [vmem:[%s8717_s3 + $0x104] sm:$0xf] }
 0x531   : > { %v7728_v33 = vpack.c.b16 %v2825_v0, %v2824_v62  ;;  %v5222_v62 = vor.u32 %v5801_v14, %v5219_v51  ;;  %v2710_v53 = vmax.f32 %v2654_v37, 0.0  ;;  %v5198_v51 = vor.u32 %v5795_v12, %v5195_v21  ;;  %v5259_v61 = vld [vmem:[%s8717_s3 + $0x118] sm:$0xf0] }
 0x532   : > { %v2415_v30 = vpop.f32.mrf.mxu0  ;;  %3716 = vmatpush.bf16.msrb.mxu0 %v5230_v50  ;;  %3541 = vmatpush.bf16.msrb.mxu3 %v5338_v11  ;;  %v5267_v50 = vld [vmem:[%s8717_s3 + $0x128] sm:$0xf0]  ;;  %v5262_v4 = vor.u32 %v5811_v36, %v5259_v61  ;;  %v8876_v54 = vld [vmem:[#allocation49_spill] sm:$0xff] }
 0x533   : > { %v2416_v42 = vadd.f32 %v2415_v30, %v2267_v52  ;;  %v2564_v34 = vpop.f32.mrf.mxu1  ;;  %3403 = vmatmul.bf16.gmra.mxu2 %v7728_v33  ;;  %3457 = vmatmul.bf16.gmra.mxu3 %v7728_v33  ;;  %v5187_v11 = vld [vmem:[%s8717_s3 + $0x88] sm:$0xf0] }
 0x534   : > { %3776 = vmatpush.bf16.msrb.mxu1 %v5286_v32  ;;  %v5251_v32 = vld [vmem:[%s8717_s3 + $0x108] sm:$0xf0] }
 0x535   : > { %v7751_v43 = vadd.f32 %v2564_v34, %v2416_v42  ;;  %v5278_v42 = vor.u32 %v5815_v10, %v5275_v41  ;;  %v8875_v34 = vld [vmem:[#allocation48_spill] sm:$0xff]  ;;  %v5254_v10 = vor.u32 %v5809_v44, %v5251_v32 }
 0x536   : > { %v3438_v3 = vpop.f32.mrf.mxu3  ;;  %3717 = vmatpush.bf16.msrb.mxu0 %v5222_v62  ;;  %v8881_v32 = vld [vmem:[#allocation56_spill] sm:$0xff] }
 0x537   : > { %v2655_v17 = vmax.f32 %v8874_v19, %v7751_v43  ;;  %v7758_v2 = vadd.f32 %v3438_v3, %v3380_v16  ;;  %v5206_v43 = vor.u32 %v5797_v56, %v5203_v60  ;;  %v5983_v60 = vld [vmem:[%s6265_s20 + $0xf0] sm:$0xff] }
 0x538   : > { %3777 = vmatpush.bf16.msrb.mxu1 %v5278_v42  ;;  %v2128_v42 = vadd.f32 %v7312_v48, %v1979_v31  ;;  %v5265_v48 = vld [vmem:[%s8717_s3 + $0x120] sm:$0xf]  ;;  %v5984_v31 = vld [vmem:[%s6265_s20 + $0xf8] sm:$0xff]  ;;  %s4670_s20 = sshll.u32 %s8940_s30, 3 }
 0x539   : > { %v2711_v18 = vmax.f32 %v2655_v17, 0.0  ;;  %s388_s16 = scalar_lea.vmem %s8725_s11, %s4670_s20 }
 0x53a   : > { %v2418_v0 = vpop.f32.mrf.mxu0 }
 0x53b   : > { %v2419_v27 = vadd.f32 %v2418_v0, %v7279_v7  ;;  %v2567_v52 = vpop.f32.mrf.mxu1  ;;  %v5214_v7 = vor.u32 %v5799_v59, %v5211_v63  ;;  %v5793_v0 = vld [vmem:[%s8717_s3 + $0x84] sm:$0xf]  ;;  %v7837_v59 = vpop.f32.mrf.mxu2 }
 0x53d   : > { %v2568_v30 = vadd.f32 %v2567_v52, %v2419_v27  ;;  %2457 = vmatmul.bf16.gmra.mxu0 %v5981_v1  ;;  %v5813_v1 = vld [vmem:[%s8717_s3 + $0x124] sm:$0xf]  ;;  %v5190_v52 = vor.u32 %v5793_v0, %v5187_v11 }
 0x53e   : > { %2606 = vmatmul.bf16.gmra.mxu1 %v5982_v5  ;;  %3718 = vmatpush.bf16.msrb.mxu0 %v5214_v7  ;;  %v5270_v3 = vor.u32 %v5813_v1, %v5267_v50  ;;  %v7843_v56 = vpop.f32.mrf.mxu3  ;;  %v8879_v11 = vld [vmem:[#allocation54_spill] sm:$0xff] }
 0x53f   : > { %v2656_v26 = vmax.f32 %v8875_v34, %v2568_v30  ;;  %v1984_v44 = vadd.f32 %v8879_v11, %v6857_v23 }
 0x540   : > { %3778 = vmatpush.bf16.msrb.mxu1 %v5270_v3  ;;  %v5329_v3 = vld [vmem:[%s8717_s3 + $0x1a0] sm:$0xf] }
 0x541   : > { %v2712_v16 = vmax.f32 %v2656_v26, 0.0 }
 0x542   : > { %v2420_v55 = vpop.f32.mrf.mxu0  ;;  %3719 = vmatpush.bf16.msrb.mxu0 %v5206_v43 }
 0x543   : > { %v2750_v6 = vmax.f32 %v2710_v53, %v2712_v16  ;;  %v2421_v19 = vadd.f32 %v2420_v55, %v2272_v29  ;;  %v2569_v14 = vpop.f32.mrf.mxu1  ;;  %v8877_v53 = vld [vmem:[#allocation50_spill] sm:$0xff]  ;;  %v2277_v16 = vadd.f32 %v7315_v38, %v2128_v42  ;;  %v5830_v38 = vld [vmem:[%s8717_s3 + $0x1a4] sm:$0xf0] }
 0x544   : > { %3779 = vmatpush.bf16.msrb.mxu1 %v5262_v4  ;;  %v5257_v4 = vld [vmem:[%s8717_s3 + $0x110] sm:$0xf] }
 0x545   : > { %v2570_v37 = vadd.f32 %v2569_v14, %v2421_v19  ;;  %v2778_v30 = vpack.c.bf16 %v2750_v6, %v2750_v6  ;;  %v5330_v14 = vor.u32 %v5830_v38, %v5329_v3  ;;  %v5828_v3 = vld [vmem:[%s8717_s3 + $0x194] sm:$0xf0] }
 0x546   : > { %3720 = vmatpush.bf16.msrb.mxu0 %v5198_v51 }
 0x547   : > { %v2657_v62 = vmax.f32 %v8876_v54, %v2570_v37  ;;  %v2826_v1 = vunpack.c.l.b16 %v2778_v30  ;;  %3542 = vmatpush.bf16.msrb.mxu3 %v5330_v14  ;;  %v8878_v37 = vld [vmem:[#allocation51_spill] sm:$0xff]  ;;  %v5812_v54 = vld [vmem:[%s8717_s3 + $0x114] sm:$0xf0]  ;;  %v5249_v30 = vld [vmem:[%s8717_s3 + $0x100] sm:$0xf] }
 0x548   : > { %3780 = vmatpush.bf16.msrb.mxu1 %v5254_v10  ;;  %v5258_v0 = vor.u32 %v5812_v54, %v5257_v4  ;;  %v8886_v4 = vld [vmem:[#allocation60_spill] sm:$0xff] }
 0x549   : > { %v2713_v27 = vmax.f32 %v2657_v62, 0.0 }
 0x54a   : > { %v2423_v63 = vpop.f32.mrf.mxu0  ;;  %3721 = vmatpush.bf16.msrb.mxu0 %v5190_v52 }
 0x54b   : > { %v2751_v7 = vmax.f32 %v2711_v18, %v2713_v27  ;;  %v2424_v41 = vadd.f32 %v2423_v63, %v7304_v39  ;;  %v2572_v17 = vpop.f32.mrf.mxu1  ;;  %v5814_v39 = vld [vmem:[%s8717_s3 + $0x124] sm:$0xf0]  ;;  %v2133_v63 = vadd.f32 %v8881_v32, %v1984_v44  ;;  %v8888_v32 = vld [vmem:[#allocation58_spill] sm:$0xff] }
 0x54c   : > { %v5266_v55 = vor.u32 %v5814_v39, %v5265_v48  ;;  %v8880_v18 = vld [vmem:[#allocation55_spill] sm:$0xff] }
 0x54d   : > { %v2779_v34 = vpack.c.bf16 %v2751_v7, %v2751_v7  ;;  %v2573_v26 = vadd.f32 %v2572_v17, %v2424_v41  ;;  %2462 = vmatmul.bf16.gmra.mxu0 %v5982_v5  ;;  %v3384_v5 = vpop.f32.mrf.mxu2  ;;  %v5810_v7 = vld [vmem:[%s8717_s3 + $0x104] sm:$0xf0]  ;;  %v8882_v41 = vld [vmem:[#allocation52_spill] sm:$0xff] }
 0x54e   : > { %2611 = vmatmul.bf16.gmra.mxu1 %v5983_v60  ;;  %3483 = vmatpush.bf16.msrb.mxu2 %v5266_v55  ;;  %v3385_v12 = vadd.f32 %v3384_v5, %v7614_v35  ;;  %v5250_v42 = vor.u32 %v5810_v7, %v5249_v30  ;;  %v8884_v5 = vld [vmem:[#allocation53_spill] sm:$0xff]  ;;  %v5321_v55 = vld [vmem:[%s8717_s3 + $0x190] sm:$0xf]  ;;  %v5313_v7 = vld [vmem:[%s8717_s3 + $0x180] sm:$0xf] }
 0x54f   : > { %v2827_v29 = vunpack.c.l.b16 %v2779_v34  ;;  %v2658_v8 = vmax.f32 %v8877_v53, %v2573_v26  ;;  %v8883_v34 = vld [vmem:[#allocation57_spill] sm:$0xff]  ;;  %v5322_v38 = vor.u32 %v5828_v3, %v5321_v55  ;;  %v8892_v3 = vld [vmem:[#allocation64_spill] sm:$0xff] }
 0x550   : > { %v2282_v26 = vadd.f32 %v8883_v34, %v2133_v63 }
 0x551   : > { %v7848_v43 = vpack.c.b16 %v2827_v29, %v2826_v1  ;;  %v2714_v1 = vmax.f32 %v2658_v8, 0.0  ;;  %3543 = vmatpush.bf16.msrb.mxu3 %v5322_v38 }
 0x552   : > { %v2425_v50 = vpop.f32.mrf.mxu0  ;;  %3484 = vmatpush.bf16.msrb.mxu2 %v5258_v0  ;;  %v8887_v0 = vld [vmem:[#allocation61_spill] sm:$0xff] }
 0x553   : > { %v2426_v6 = vadd.f32 %v2425_v50, %v2277_v16  ;;  %v2574_v19 = vpop.f32.mrf.mxu1  ;;  %3408 = vmatmul.bf16.gmra.mxu2 %v7848_v43  ;;  %3462 = vmatmul.bf16.gmra.mxu3 %v7848_v43 }
 0x555   : > { %v2575_v21 = vadd.f32 %v2574_v19, %v2426_v6  ;;  %v7894_v19 = vpop.f32.mrf.mxu2 }
 0x556   : > { %v3443_v36 = vpop.f32.mrf.mxu3  ;;  %3485 = vmatpush.bf16.msrb.mxu2 %v5250_v42 }
 0x557   : > { %v2659_v51 = vmax.f32 %v8878_v37, %v2575_v21  ;;  %v7866_v61 = vadd.f32 %v3443_v36, %v3385_v12  ;;  %v8885_v12 = vld [vmem:[#allocation59_spill] sm:$0xff] }
 0x558   : > { %v1989_v21 = vadd.f32 %v8885_v12, %v6857_v23 }
 0x559   : > { %v2715_v6 = vmax.f32 %v2659_v51, 0.0 }
 0x55a   : > { %v2428_v62 = vpop.f32.mrf.mxu0  ;;  %v2138_v11 = vadd.f32 %v8887_v0, %v1989_v21  ;;  %v8894_v21 = vld [vmem:[#allocation3_spill] sm:$0xff] }
 0x55b   : > { %v2429_v27 = vadd.f32 %v2428_v62, %v8880_v18  ;;  %v2577_v52 = vpop.f32.mrf.mxu1 }
 0x55d   : > { %v2578_v10 = vadd.f32 %v2577_v52, %v2429_v27  ;;  %2467 = vmatmul.bf16.gmra.mxu0 %v5983_v60 }
 0x55e   : > { %2616 = vmatmul.bf16.gmra.mxu1 %v5984_v31  ;;  %v7901_v51 = vpop.f32.mrf.mxu3 }
 0x55f   : > { %v2660_v17 = vmax.f32 %v8882_v41, %v2578_v10  ;;  %v8889_v10 = vld [vmem:[#allocation62_spill] sm:$0xff]  ;;  %v5826_v41 = vld [vmem:[%s8717_s3 + $0x184] sm:$0xf0] }
 0x560   : > { %v2287_v31 = vadd.f32 %v8889_v10, %v2138_v11  ;;  %v5314_v34 = vor.u32 %v5826_v41, %v5313_v7  ;;  %v5433_v10 = vld [vmem:[%s8717_s3 + $0x270] sm:$0xf] }
 0x561   : > { %v2716_v29 = vmax.f32 %v2660_v17, 0.0  ;;  %v3389_v17 = vpop.f32.mrf.mxu2 }
 0x562   : > { %v2430_v53 = vpop.f32.mrf.mxu0  ;;  %3544 = vmatpush.bf16.msrb.mxu3 %v5314_v34  ;;  %v8897_v34 = vld [vmem:[#allocation67_spill] sm:$0xff] }
 0x563   : > { %v2752_v60 = vmax.f32 %v2714_v1, %v2716_v29  ;;  %v2431_v16 = vadd.f32 %v2430_v53, %v2282_v26  ;;  %v2579_v48 = vpop.f32.mrf.mxu1  ;;  %v3390_v29 = vadd.f32 %v3389_v17, %v7614_v35 }
 0x565   : > { %v2580_v39 = vadd.f32 %v2579_v48, %v2431_v16  ;;  %v2780_v36 = vpack.c.bf16 %v2752_v60, %v2752_v60  ;;  %v8890_v16 = vld [vmem:[#allocation2_spill] sm:$0xff] }
 0x567   : > { %v2661_v50 = vmax.f32 %v8884_v5, %v2580_v39  ;;  %v2828_v27 = vunpack.c.l.b16 %v2780_v36 }
 0x569   : > { %v2717_v8 = vmax.f32 %v2661_v50, 0.0  ;;  %v8891_v50 = vld [vmem:[#allocation63_spill] sm:$0xff]  ;;  %v7936_v17 = vpop.f32.mrf.mxu2 }
 0x56a   : > { %v2433_v14 = vpop.f32.mrf.mxu0  ;;  %v1994_v55 = vadd.f32 %v8891_v50, %v6857_v23 }
 0x56b   : > { %v2753_v37 = vmax.f32 %v2715_v6, %v2717_v8  ;;  %v2434_v54 = vadd.f32 %v2433_v14, %v8886_v4  ;;  %v2582_v62 = vpop.f32.mrf.mxu1  ;;  %v8893_v8 = vld [vmem:[#allocation65_spill] sm:$0xff] }
 0x56c   : > { %v2143_v14 = vadd.f32 %v8893_v8, %v1994_v55  ;;  %v8900_v8 = vld [vmem:[#allocation5_spill] sm:$0xff] }
 0x56d   : > { %v2781_v44 = vpack.c.bf16 %v2753_v37, %v2753_v37  ;;  %v2583_v18 = vadd.f32 %v2582_v62, %v2434_v54  ;;  %3722 = vmatmul.bf16.vlgmr.msrb.gmra.mxu0 %v7545_v49  ;;  %v8895_v37 = vld [vmem:[#allocation66_spill] sm:$0xff] }
 0x56e   : > { %3781 = vmatmul.bf16.vlgmr.msrb.gmra.mxu1 %v7559_v57  ;;  %v2292_v4 = vadd.f32 %v8895_v37, %v2143_v14  ;;  %v5791_v37 = vld [vmem:[%s8717_s3 + $0x74] sm:$0xf] }
 0x56f   : > { %v2829_v52 = vunpack.c.l.b16 %v2781_v44  ;;  %v2662_v63 = vmax.f32 %v8888_v32, %v2583_v18 }
 0x571   : > { %v7906_v30 = vpack.c.b16 %v2829_v52, %v2828_v27  ;;  %v2718_v54 = vmax.f32 %v2662_v63, 0.0  ;;  %v8896_v52 = vld [vmem:[#allocation4_spill] sm:$0xff] }
 0x572   : > { %v2435_v42 = vpop.f32.mrf.mxu0 }
 0x573   : > { %v2436_v26 = vadd.f32 %v2435_v42, %v2287_v31  ;;  %v2584_v1 = vpop.f32.mrf.mxu1  ;;  %3413 = vmatmul.bf16.gmra.mxu2 %v7906_v30  ;;  %3467 = vmatmul.bf16.gmra.mxu3 %v7906_v30  ;;  %v5856_v31 = vld [vmem:[%s8717_s3 + $0x274] sm:$0xf0] }
 0x574   : > { %v5434_v7 = vor.u32 %v5856_v31, %v5433_v10 }
 0x575   : > { %v2585_v53 = vadd.f32 %v2584_v1, %v2436_v26  ;;  %v1999_v26 = vadd.f32 %v8897_v34, %v6857_v23  ;;  %v5789_v34 = vld [vmem:[%s8717_s3 + $0x64] sm:$0xf] }
 0x576   : > { %v3448_v60 = vpop.f32.mrf.mxu3  ;;  %3596 = vmatpush.bf16.msra.mxu2 %v5434_v7  ;;  %v5425_v7 = vld [vmem:[%s8717_s3 + $0x260] sm:$0xf] }
 0x577   : > { %v2663_v48 = vmax.f32 %v8890_v16, %v2585_v53  ;;  %v7918_v39 = vadd.f32 %v3448_v60, %v3390_v29  ;;  %v8898_v53 = vld [vmem:[#allocation68_spill] sm:$0xff] }
 0x579   : > { %v2719_v63 = vmax.f32 %v2663_v48, 0.0 }
 0x57a   : > { %v2438_v5 = vpop.f32.mrf.mxu0 }
 0x57b   : > { %v2439_v38 = vadd.f32 %v2438_v5, %v8892_v3  ;;  %v2587_v6 = vpop.f32.mrf.mxu1  ;;  %v8899_v5 = vld [vmem:[#allocation69_spill] sm:$0xff] }
 0x57c   : > { %v2148_v50 = vadd.f32 %v8899_v5, %v1999_v26  ;;  %v5171_v26 = vld [vmem:[%s8717_s3 + $0x68] sm:$0xf0] }
 0x57d   : > { %v2588_v12 = vadd.f32 %v2587_v6, %v2439_v38  ;;  %3727 = vmatmul.bf16.gmra.mxu0 %v7559_v57  ;;  %v5174_v5 = vor.u32 %v5789_v34, %v5171_v26  ;;  %v8910_v34 = vld [vmem:[#allocation76_spill] sm:$0xff] }
 0x57e   : > { %3786 = vmatmul.bf16.gmra.mxu1 %v7573_v15  ;;  %v7943_v48 = vpop.f32.mrf.mxu3 }
 0x57f   : > { %v2664_v36 = vmax.f32 %v8894_v21, %v2588_v12  ;;  %v8901_v12 = vld [vmem:[#allocation70_spill] sm:$0xff] }
 0x580   : > { %v2297_v21 = vadd.f32 %v8901_v12, %v2148_v50  ;;  %v8905_v50 = vld [vmem:[#allocation73_spill] sm:$0xff] }
 0x581   : > { %v2720_v62 = vmax.f32 %v2664_v36, 0.0 }
 0x582   : > { %v2440_v0 = vpop.f32.mrf.mxu0 }
 0x583   : > { %v2754_v11 = vmax.f32 %v2718_v54, %v2720_v62  ;;  %v2441_v44 = vadd.f32 %v2440_v0, %v2292_v4  ;;  %v2589_v18 = vpop.f32.mrf.mxu1  ;;  %3486 = vmatmul.bf16.vlgmr.msrb.gmra.mxu2 %v7559_v57  ;;  %v5179_v4 = vld [vmem:[%s8717_s3 + $0x78] sm:$0xf0]  ;;  %v3394_v54 = vpop.f32.mrf.mxu2 }
 0x584   : > { %v5182_v0 = vor.u32 %v5791_v37, %v5179_v4 }
 0x585   : > { %v2590_v27 = vadd.f32 %v2589_v18, %v2441_v44  ;;  %v2782_v1 = vpack.c.bf16 %v2754_v11, %v2754_v11  ;;  %v3395_v18 = vadd.f32 %v3394_v54, %v7614_v35 }
 0x586   : > { %3655 = vmatpush.bf16.msra.mxu3 %v5182_v0 }
 0x587   : > { %v2665_v32 = vmax.f32 %v8896_v52, %v2590_v27  ;;  %v2852_v38 = vunpack.c.l.b16 %v2782_v1  ;;  %v8903_v1 = vld [vmem:[#allocation71_spill] sm:$0xff] }
 0x589   : > { %v2721_v41 = vmax.f32 %v2665_v32, 0.0  ;;  %v8902_v32 = vld [vmem:[#allocation6_spill] sm:$0xff] }
 0x58a   : > { %v2443_v42 = vpop.f32.mrf.mxu0  ;;  %3656 = vmatpush.bf16.msra.mxu3 %v5174_v5 }
 0x58b   : > { %v2755_v29 = vmax.f32 %v2719_v63, %v2721_v41  ;;  %v2444_v60 = vadd.f32 %v2443_v42, %v8898_v53  ;;  %v2592_v16 = vpop.f32.mrf.mxu1  ;;  %v5854_v63 = vld [vmem:[%s8717_s3 + $0x264] sm:$0xf0]  ;;  %v8904_v53 = vld [vmem:[#allocation72_spill] sm:$0xff] }
 0x58c   : > { %v5426_v42 = vor.u32 %v5854_v63, %v5425_v7  ;;  %v8909_v63 = vld [vmem:[#allocation75_spill] sm:$0xff] }
 0x58d   : > { %v2783_v55 = vpack.c.bf16 %v2755_v29, %v2755_v29  ;;  %v2593_v3 = vadd.f32 %v2592_v16, %v2444_v60  ;;  %3732 = vmatmul.bf16.gmra.mxu0 %v7573_v15  ;;  %v2004_v29 = vadd.f32 %v8903_v1, %v6857_v23 }
 0x58e   : > { %3791 = vmatmul.bf16.gmra.mxu1 %v7587_v9  ;;  %3597 = vmatpush.bf16.msra.mxu2 %v5426_v42 }
 0x58f   : > { %v2853_v6 = vunpack.c.l.b16 %v2783_v55  ;;  %v2666_v14 = vmax.f32 %v8900_v8, %v2593_v3  ;;  %v2153_v55 = vadd.f32 %v8905_v50, %v2004_v29  ;;  %v8907_v8 = vld [vmem:[#allocation74_spill] sm:$0xff]  ;;  %v8911_v29 = vld [vmem:[#allocation77_spill] sm:$0xff] }
 0x591   : > { %v7948_v36 = vpack.c.b16 %v2853_v6, %v2852_v38  ;;  %v8906_v38 = vld [vmem:[#allocation7_spill] sm:$0xff]  ;;  %v2302_v12 = vadd.f32 %v8907_v8, %v2153_v55  ;;  %v8912_v55 = vld [vmem:[#allocation9_spill] sm:$0xff] }
 0x592   : > { %v2445_v62 = vpop.f32.mrf.mxu0 }
 0x593   : > { %v2446_v11 = vadd.f32 %v2445_v62, %v2297_v21  ;;  %v2594_v44 = vpop.f32.mrf.mxu1  ;;  %3472 = vmatmul.bf16.gmra.mxu3 %v7948_v36  ;;  %3491 = vmatmul.bf16.gmra.mxu2 %v7573_v15  ;;  %v2722_v21 = vmax.f32 %v2666_v14, 0.0  ;;  %v2009_v14 = vadd.f32 %v8909_v63, %v6857_v23  ;;  %v8914_v63 = vld [vmem:[#allocation10_spill] sm:$0xff] }
 0x595   : > { %v2595_v27 = vadd.f32 %v2594_v44, %v2446_v11  ;;  %v8908_v44 = vld [vmem:[#allocation8_spill] sm:$0xff] }
 0x596   : > { %v3453_v52 = vpop.f32.mrf.mxu3 }
 0x597   : > { %v2667_v10 = vmax.f32 %v8902_v32, %v2595_v27  ;;  %v7960_v31 = vadd.f32 %v3453_v52, %v3395_v18  ;;  %v7985_v32 = vpop.f32.mrf.mxu2 }
 0x599   : > { %v2723_v27 = vmax.f32 %v2667_v10, 0.0 }
 0x59a   : > { %v2448_v41 = vpop.f32.mrf.mxu0 }
 0x59b   : > { %v2449_v60 = vadd.f32 %v2448_v41, %v8904_v53  ;;  %v2597_v16 = vpop.f32.mrf.mxu1  ;;  %v2158_v53 = vadd.f32 %v8911_v29, %v2009_v14 }
 0x59d   : > { %v2598_v3 = vadd.f32 %v2597_v16, %v2449_v60  ;;  %3737 = vmatmul.bf16.gmra.mxu0 %v7587_v9 }
 0x59e   : > { %3796 = vmatmul.bf16.gmra.mxu1 %v7616_v24  ;;  %v7992_v5 = vpop.f32.mrf.mxu3 }
 0x59f   : > { %v2668_v6 = vmax.f32 %v8906_v38, %v2598_v3  ;;  %v5417_v38 = vld [vmem:[%s8717_s3 + $0x250] sm:$0xf] }
 0x5a1   : > { %v2724_v37 = vmax.f32 %v2668_v6, 0.0  ;;  %v5852_v6 = vld [vmem:[%s8717_s3 + $0x254] sm:$0xf0] }
 0x5a2   : > { %v2450_v4 = vpop.f32.mrf.mxu0  ;;  %v5418_v8 = vor.u32 %v5852_v6, %v5417_v38  ;;  %v8919_v38 = vld [vmem:[#allocation82_spill] sm:$0xff] }
 0x5a3   : > { %v2756_v54 = vmax.f32 %v2722_v21, %v2724_v37  ;;  %v2451_v62 = vadd.f32 %v2450_v4, %v2302_v12  ;;  %v2599_v0 = vpop.f32.mrf.mxu1  ;;  %3496 = vmatmul.bf16.gmra.mxu2 %v7587_v9  ;;  %3545 = vmatmul.bf16.vlgmr.msrb.gmra.mxu3 %v7573_v15  ;;  %v8913_v12 = vld [vmem:[#allocation78_spill] sm:$0xff]  ;;  %v5787_v4 = vld [vmem:[%s8717_s3 + $0x54] sm:$0xf] }
 0x5a4   : > { %v2307_v21 = vadd.f32 %v8913_v12, %v2158_v53  ;;  %3598 = vmatpush.bf16.msra.mxu2 %v5418_v8 }
 0x5a5   : > { %v2600_v11 = vadd.f32 %v2599_v0, %v2451_v62  ;;  %v2784_v41 = vpack.c.bf16 %v2756_v54, %v2756_v54  ;;  %v5163_v54 = vld [vmem:[%s8717_s3 + $0x58] sm:$0xf0]  ;;  %v3399_v62 = vpop.f32.mrf.mxu2 }
 0x5a7   : > { %v2669_v18 = vmax.f32 %v8908_v44, %v2600_v11  ;;  %v2858_v10 = vunpack.c.l.b16 %v2784_v41  ;;  %v5166_v11 = vor.u32 %v5787_v4, %v5163_v54 }
 0x5a9   : > { %v2725_v52 = vmax.f32 %v2669_v18, 0.0  ;;  %3657 = vmatpush.bf16.msra.mxu3 %v5166_v11  ;;  %v5409_v11 = vld [vmem:[%s8717_s3 + $0x240] sm:$0xf] }
 0x5aa   : > { %v2453_v7 = vpop.f32.mrf.mxu0 }
 0x5ab   : > { %v2757_v42 = vmax.f32 %v2723_v27, %v2725_v52  ;;  %v2454_v26 = vadd.f32 %v2453_v7, %v8910_v34  ;;  %v2602_v1 = vpop.f32.mrf.mxu1  ;;  %v3400_v27 = vadd.f32 %v3399_v62, %v7614_v35  ;;  %v8915_v34 = vld [vmem:[#allocation79_spill] sm:$0xff] }
 0x5ad   : > { %v2785_v60 = vpack.c.bf16 %v2757_v42, %v2757_v42  ;;  %v2603_v16 = vadd.f32 %v2602_v1, %v2454_v26  ;;  %3742 = vmatmul.bf16.gmra.mxu0 %v7616_v24  ;;  %v2014_v26 = vadd.f32 %v8915_v34, %v6857_v23  ;;  %v8916_v1 = vld [vmem:[#allocation80_spill] sm:$0xff] }
 0x5ae   : > { %3801 = vmatmul.bf16.gmra.mxu1 %v7655_v28 }
 0x5af   : > { %v2859_v50 = vunpack.c.l.b16 %v2785_v60  ;;  %v2670_v3 = vmax.f32 %v8912_v55, %v2603_v16  ;;  %v8917_v60 = vld [vmem:[#allocation81_spill] sm:$0xff] }
 0x5b0   : > { %v2163_v16 = vadd.f32 %v8917_v60, %v2014_v26  ;;  %v8040_v26 = vpop.f32.mrf.mxu2 }
 0x5b1   : > { %v8003_v37 = vpack.c.b16 %v2859_v50, %v2858_v10  ;;  %v8918_v50 = vld [vmem:[#allocation11_spill] sm:$0xff]  ;;  %v2726_v8 = vmax.f32 %v2670_v3, 0.0  ;;  %v5785_v3 = vld [vmem:[%s8717_s3 + $0x44] sm:$0xf] }
 0x5b2   : > { %v2455_v0 = vpop.f32.mrf.mxu0  ;;  %v2312_v6 = vadd.f32 %v8919_v38, %v2163_v16  ;;  %v8923_v38 = vld [vmem:[#allocation87_spill] sm:$0xff] }
 0x5b3   : > { %v2456_v44 = vadd.f32 %v2455_v0, %v2307_v21  ;;  %v2604_v18 = vpop.f32.mrf.mxu1  ;;  %3501 = vmatmul.bf16.gmra.mxu2 %v7616_v24  ;;  %3550 = vmatmul.bf16.gmra.mxu3 %v7587_v9 }
 0x5b5   : > { %v2605_v52 = vadd.f32 %v2604_v18, %v2456_v44  ;;  %v5850_v44 = vld [vmem:[%s8717_s3 + $0x244] sm:$0xf0] }
 0x5b6   : > { %v3458_v7 = vpop.f32.mrf.mxu3  ;;  %v5410_v18 = vor.u32 %v5850_v44, %v5409_v11 }
 0x5b7   : > { %v2671_v14 = vmax.f32 %v8914_v63, %v2605_v52  ;;  %v8015_v41 = vadd.f32 %v3458_v7, %v3400_v27  ;;  %v5155_v27 = vld [vmem:[%s8717_s3 + $0x48] sm:$0xf0]  ;;  %v8920_v52 = vld [vmem:[#allocation12_spill] sm:$0xff] }
 0x5b8   : > { %v5158_v63 = vor.u32 %v5785_v3, %v5155_v27  ;;  %3599 = vmatpush.bf16.msra.mxu2 %v5410_v18  ;;  %v8925_v3 = vld [vmem:[#allocation88_spill] sm:$0xff] }
 0x5ba   : > { %v2458_v42 = vpop.f32.mrf.mxu0  ;;  %3658 = vmatpush.bf16.msra.mxu3 %v5158_v63 }
 0x5bb   : > { %v2459_v29 = vadd.f32 %v2458_v42, %v8916_v1  ;;  %v2607_v53 = vpop.f32.mrf.mxu1  ;;  %v2727_v42 = vmax.f32 %v2671_v14, 0.0 }
 0x5bd   : > { %v2608_v10 = vadd.f32 %v2607_v53, %v2459_v29  ;;  %3747 = vmatmul.bf16.gmra.mxu0 %v7655_v28  ;;  %v8921_v29 = vld [vmem:[#allocation85_spill] sm:$0xff] }
 0x5be   : > { %3806 = vmatmul.bf16.gmra.mxu1 %v7728_v33  ;;  %v2019_v53 = vadd.f32 %v8921_v29, %v6857_v23  ;;  %v8047_v14 = vpop.f32.mrf.mxu3 }
 0x5bf   : > { %v2672_v55 = vmax.f32 %v8918_v50, %v2608_v10  ;;  %v8922_v10 = vld [vmem:[#allocation86_spill] sm:$0xff] }
 0x5c1   : > { %v2728_v12 = vmax.f32 %v2672_v55, 0.0 }
 0x5c2   : > { %v2460_v21 = vpop.f32.mrf.mxu0 }
 0x5c3   : > { %v2758_v4 = vmax.f32 %v2726_v8, %v2728_v12  ;;  %v2461_v54 = vadd.f32 %v2460_v21, %v2312_v6  ;;  %v2609_v62 = vpop.f32.mrf.mxu1  ;;  %3506 = vmatmul.bf16.gmra.mxu2 %v7655_v28  ;;  %3555 = vmatmul.bf16.gmra.mxu3 %v7616_v24  ;;  %v2168_v6 = vadd.f32 %v8923_v38, %v2019_v53  ;;  %v5401_v21 = vld [vmem:[%s8717_s3 + $0x230] sm:$0xf] }
 0x5c5   : > { %v2610_v0 = vadd.f32 %v2609_v62, %v2461_v54  ;;  %v2786_v60 = vpack.c.bf16 %v2758_v4, %v2758_v4  ;;  %v5848_v4 = vld [vmem:[%s8717_s3 + $0x234] sm:$0xf0]  ;;  %v2317_v18 = vadd.f32 %v8925_v3, %v2168_v6  ;;  %v8927_v6 = vld [vmem:[#allocation91_spill] sm:$0xff] }
 0x5c6   : > { %v5402_v44 = vor.u32 %v5848_v4, %v5401_v21 }
 0x5c7   : > { %v2673_v7 = vmax.f32 %v8920_v52, %v2610_v0  ;;  %v2864_v54 = vunpack.c.l.b16 %v2786_v60  ;;  %v8924_v0 = vld [vmem:[#allocation83_spill] sm:$0xff]  ;;  %v3404_v52 = vpop.f32.mrf.mxu2 }
 0x5c8   : > { %3600 = vmatpush.bf16.msra.mxu2 %v5402_v44  ;;  %v3405_v53 = vadd.f32 %v3404_v52, %v7614_v35  ;;  %v8929_v44 = vld [vmem:[#allocation89_spill] sm:$0xff] }
 0x5c9   : > { %v2729_v34 = vmax.f32 %v2673_v7, 0.0 }
 0x5ca   : > { %v2463_v1 = vpop.f32.mrf.mxu0 }
 0x5cb   : > { %v2759_v16 = vmax.f32 %v2727_v42, %v2729_v34  ;;  %v2464_v50 = vadd.f32 %v2463_v1, %v8922_v10  ;;  %v2612_v55 = vpop.f32.mrf.mxu1  ;;  %v5783_v34 = vld [vmem:[%s8717_s3 + $0x34] sm:$0xf]  ;;  %v5147_v1 = vld [vmem:[%s8717_s3 + $0x38] sm:$0xf0] }
 0x5cc   : > { %v5150_v29 = vor.u32 %v5783_v34, %v5147_v1  ;;  %v8926_v10 = vld [vmem:[#allocation84_spill] sm:$0xff]  ;;  %v5846_v34 = vld [vmem:[%s8717_s3 + $0x224] sm:$0xf0] }
 0x5cd   : > { %v2787_v8 = vpack.c.bf16 %v2759_v16, %v2759_v16  ;;  %v2613_v12 = vadd.f32 %v2612_v55, %v2464_v50  ;;  %3752 = vmatmul.bf16.gmra.mxu0 %v7728_v33 }
 0x5ce   : > { %3811 = vmatmul.bf16.gmra.mxu1 %v7848_v43  ;;  %3659 = vmatpush.bf16.msra.mxu3 %v5150_v29 }
 0x5cf   : > { %v2865_v62 = vunpack.c.l.b16 %v2787_v8  ;;  %v2674_v11 = vmax.f32 %v8924_v0, %v2613_v12  ;;  %v2024_v8 = vadd.f32 %v8927_v6, %v6857_v23  ;;  %v8928_v12 = vld [vmem:[#allocation92_spill] sm:$0xff] }
 0x5d1   : > { %v8058_v27 = vpack.c.b16 %v2865_v62, %v2864_v54  ;;  %v8075_v54 = vpop.f32.mrf.mxu2  ;;  %v2173_v62 = vadd.f32 %v7604_v25, %v2024_v8  ;;  %v2730_v52 = vmax.f32 %v2674_v11, 0.0  ;;  %v5393_v25 = vld [vmem:[%s8717_s3 + $0x220] sm:$0xf] }
 0x5d2   : > { %v2465_v7 = vpop.f32.mrf.mxu0 }
 0x5d3   : > { %v2466_v63 = vadd.f32 %v2465_v7, %v2317_v18  ;;  %v2614_v42 = vpop.f32.mrf.mxu1  ;;  %3511 = vmatmul.bf16.gmra.mxu2 %v7728_v33  ;;  %3560 = vmatmul.bf16.gmra.mxu3 %v7655_v28  ;;  %v2322_v18 = vadd.f32 %v7607_v46, %v2173_v62  ;;  %v5394_v46 = vor.u32 %v5846_v34, %v5393_v25  ;;  %v5779_v34 = vld [vmem:[%s8717_s3 + $0x14] sm:$0xf] }
 0x5d5   : > { %v2615_v60 = vadd.f32 %v2614_v42, %v2466_v63  ;;  %3601 = vmatpush.bf16.msra.mxu2 %v5394_v46 }
 0x5d6   : > { %v3463_v16 = vpop.f32.mrf.mxu3 }
 0x5d7   : > { %v2675_v50 = vmax.f32 %v8926_v10, %v2615_v60  ;;  %v8070_v55 = vadd.f32 %v3463_v16, %v3405_v53  ;;  %v8930_v53 = vld [vmem:[#allocation90_spill] sm:$0xff]  ;;  %v5139_v10 = vld [vmem:[%s8717_s3 + $0x28] sm:$0xf0] }
 0x5d8   : > { %v5781_v16 = vld [vmem:[%s8717_s3 + $0x24] sm:$0xf] }
 0x5d9   : > { %v3409_v1 = vpop.f32.mrf.mxu2  ;;  %v2731_v6 = vmax.f32 %v2675_v50, 0.0 }
 0x5da   : > { %v2468_v38 = vpop.f32.mrf.mxu0  ;;  %v3410_v50 = vadd.f32 %v3409_v1, %v7614_v35  ;;  %v5131_v1 = vld [vmem:[%s8717_s3 + $0x18] sm:$0xf0] }
 0x5db   : > { %v2469_v21 = vadd.f32 %v2468_v38, %v8928_v12  ;;  %v2617_v4 = vpop.f32.mrf.mxu1  ;;  %v5142_v38 = vor.u32 %v5781_v16, %v5139_v10 }
 0x5dd   : > { %v2618_v0 = vadd.f32 %v2617_v4, %v2469_v21  ;;  %3757 = vmatmul.bf16.gmra.mxu0 %v7848_v43  ;;  %3660 = vmatpush.bf16.msra.mxu3 %v5142_v38 }
 0x5de   : > { %3816 = vmatmul.bf16.gmra.mxu1 %v7906_v30 }
 0x5df   : > { %v2676_v3 = vmax.f32 %v8929_v44, %v2618_v0  ;;  %v8100_v0 = vpop.f32.mrf.mxu3 }
 0x5e1   : > { %v2732_v7 = vmax.f32 %v2676_v3, 0.0  ;;  %v8098_v62 = vpop.f32.mrf.mxu2 }
 0x5e2   : > { %v2470_v63 = vpop.f32.mrf.mxu0 }
 0x5e3   : > { %v2760_v23 = vmax.f32 %v2730_v52, %v2732_v7  ;;  %v2471_v42 = vadd.f32 %v2470_v63, %v2322_v18  ;;  %3516 = vmatmul.bf16.gmra.mxu2 %v7848_v43  ;;  %3565 = vmatmul.bf16.gmra.mxu3 %v7728_v33  ;;  %v2619_v29 = vpop.f32.mrf.mxu1 }
 0x5e5   : > { %v2620_v11 = vadd.f32 %v2619_v29, %v2471_v42  ;;  %v2788_v12 = vpack.c.bf16 %v2760_v23, %v2760_v23  ;;  %v5385_v23 = vld [vmem:[%s8717_s3 + $0x210] sm:$0xf]  ;;  %v5844_v42 = vld [vmem:[%s8717_s3 + $0x214] sm:$0xf0]  ;;  %v5134_v29 = vor.u32 %v5779_v34, %v5131_v1  ;;  %v5839_v34 = vld [vmem:[%s8717_s3 + $0x1f4] sm:$0xf] }
 0x5e6   : > { %v5386_v25 = vor.u32 %v5844_v42, %v5385_v23 }
 0x5e7   : > { %v2677_v60 = vmax.f32 %v8930_v53, %v2620_v11  ;;  %v2870_v44 = vunpack.c.l.b16 %v2788_v12  ;;  %3661 = vmatpush.bf16.msra.mxu3 %v5134_v29  ;;  %v5377_v11 = vld [vmem:[%s8717_s3 + $0x200] sm:$0xf]  ;;  %v5842_v53 = vld [vmem:[%s8717_s3 + $0x204] sm:$0xf0]  ;;  %v5123_v12 = vld [vmem:[%s8717_s3 + $0x8] sm:$0xf0] }
 0x5e8   : > { %3602 = vmatpush.bf16.msra.mxu2 %v5386_v25  ;;  %v5435_v29 = vld [vmem:[%s8717_s3 + $0x278] sm:$0xf0] }
 0x5e9   : > { %v2733_v8 = vmax.f32 %v2677_v60, 0.0  ;;  %v5378_v60 = vor.u32 %v5842_v53, %v5377_v11 }
 0x5eb   : > { %v2761_v21 = vmax.f32 %v2731_v6, %v2733_v8  ;;  %v5777_v8 = vld [vmem:[%s8717_s3 + $0x4] sm:$0xf] }
 0x5ec   : > { %3603 = vmatpush.bf16.msra.mxu2 %v5378_v60 }
 0x5ed   : > { %3762 = vmatmul.bf16.gmra.mxu0 %v7906_v30  ;;  %v2789_v4 = vpack.c.bf16 %v2761_v21, %v2761_v21  ;;  %v5126_v21 = vor.u32 %v5777_v8, %v5123_v12  ;;  %v3372_v8 = vadd.f32 %v7648_v40, %v7614_v35 }
 0x5ee   : > { %3821 = vmatmul.bf16.gmra.mxu1 %v7948_v36 }
 0x5ef   : > { %v2871_v3 = vunpack.c.l.b16 %v2789_v4  ;;  %3662 = vmatpush.bf16.msra.mxu3 %v5126_v21  ;;  %v3431_v12 = vadd.f32 %v7651_v58, %v3372_v8 }
 0x5f1   : > { %v8103_v18 = vpack.c.b16 %v2871_v3, %v2870_v44 }
 0x5f3   : > { %3521 = vmatmul.bf16.gmra.mxu2 %v7906_v30  ;;  %3570 = vmatmul.bf16.gmra.mxu3 %v7848_v43 }
 0x5f6   : > { %v3414_v52 = vpop.f32.mrf.mxu2  ;;  %v3468_v7 = vpop.f32.mrf.mxu3 }
 0x5f7   : > { %v8108_v63 = vadd.f32 %v3468_v7, %v3410_v50  ;;  %v3415_v4 = vadd.f32 %v3414_v52, %v7614_v35  ;;  %v5371_v52 = vld [vmem:[%s8717_s3 + $0x1f8] sm:$0xf0] }
 0x5f8   : > { %v5374_v1 = vor.u32 %v5839_v34, %v5371_v52  ;;  %v5853_v34 = vld [vmem:[%s8717_s3 + $0x264] sm:$0xf]  ;;  %v5427_v52 = vld [vmem:[%s8717_s3 + $0x268] sm:$0xf0] }
 0x5fa   : > { %3832 = vmatpush.bf16.msrb.mxu2 %v5374_v1  ;;  %v5430_v1 = vor.u32 %v5853_v34, %v5427_v52 }
 0x5fd   : > { %3767 = vmatmul.bf16.gmra.mxu0 %v7948_v36 }
 0x5fe   : > { %3826 = vmatmul.bf16.gmra.mxu1 %v8003_v37  ;;  %v3416_v46 = vpop.f32.mrf.mxu2  ;;  %v8133_v38 = vpop.f32.mrf.mxu3 }
 0x5ff   : > { %v3417_v7 = vadd.f32 %v3416_v46, %v7614_v35 }
 0x603   : > { %3526 = vmatmul.bf16.gmra.mxu2 %v7948_v36  ;;  %3575 = vmatmul.bf16.gmra.mxu3 %v7906_v30 }
 0x606   : > { %v3487_v16 = vpop.f32.mrf.mxu2 }
 0x607   : > { %v3488_v10 = vadd.f32 %v3487_v16, %v7629_v45 }
 0x60e   : > { %v3489_v6 = vpop.f32.mrf.mxu2 }
 0x60f   : > { %v3490_v21 = vadd.f32 %v3489_v6, %v3431_v12 }
 0x613   : > { %3531 = vmatmul.bf16.gmra.mxu2 %v8003_v37  ;;  %3580 = vmatmul.bf16.gmra.mxu3 %v7948_v36 }
 0x616   : > { %v3473_v45 = vpop.f32.mrf.mxu3  ;;  %v3492_v44 = vpop.f32.mrf.mxu2 }
 0x617   : > { %v8144_v3 = vadd.f32 %v3473_v45, %v3415_v4  ;;  %v3493_v50 = vadd.f32 %v3492_v44, %v7686_v20  ;;  %v5855_v20 = vld [vmem:[%s8717_s3 + $0x274] sm:$0xf] }
 0x618   : > { %v5438_v46 = vor.u32 %v5855_v20, %v5435_v29  ;;  %v3377_v20 = vadd.f32 %v7705_v22, %v7614_v35  ;;  %v5835_v22 = vld [vmem:[%s8717_s3 + $0x1d4] sm:$0xf] }
 0x61a   : > { %3891 = vmatpush.bf16.msrb.mxu3 %v5438_v46  ;;  %v3436_v29 = vadd.f32 %v7713_v13, %v3377_v20  ;;  %v5355_v13 = vld [vmem:[%s8717_s3 + $0x1d8] sm:$0xf0]  ;;  %v5833_v20 = vld [vmem:[%s8717_s3 + $0x1c4] sm:$0xf] }
 0x61e   : > { %v3475_v23 = vpop.f32.mrf.mxu3  ;;  %v3494_v42 = vpop.f32.mrf.mxu2  ;;  %3892 = vmatpush.bf16.msrb.mxu3 %v5430_v1  ;;  %v3387_v1 = vadd.f32 %v7894_v19, %v7614_v35  ;;  %v5849_v19 = vld [vmem:[%s8717_s3 + $0x244] sm:$0xf] }
 0x61f   : > { %v8148_v25 = vadd.f32 %v3475_v23, %v3417_v7  ;;  %v3495_v46 = vadd.f32 %v3494_v42, %v3436_v29  ;;  %v5358_v42 = vor.u32 %v5835_v22, %v5355_v13  ;;  %v5347_v29 = vld [vmem:[%s8717_s3 + $0x1c8] sm:$0xf0] }
 0x623   : > { %3585 = vmatmul.bf16.gmra.mxu3 %v8003_v37  ;;  %3604 = vmatmul.bf16.vlgmr.msra.gmra.mxu2 %v7587_v9 }
 0x626   : > { %v3497_v11 = vpop.f32.mrf.mxu2  ;;  %v3546_v53 = vpop.f32.mrf.mxu3 }
 0x627   : > { %v3498_v60 = vadd.f32 %v3497_v11, %v7758_v2  ;;  %v8165_v16 = vadd.f32 %v3546_v53, %v3488_v10  ;;  %v5837_v2 = vld [vmem:[%s8717_s3 + $0x1e4] sm:$0xf]  ;;  %v5363_v10 = vld [vmem:[%s8717_s3 + $0x1e8] sm:$0xf0] }
 0x628   : > { %v5366_v40 = vor.u32 %v5837_v2, %v5363_v10 }
 0x62a   : > { %3833 = vmatpush.bf16.msrb.mxu2 %v5366_v40 }
 0x62e   : > { %v3499_v4 = vpop.f32.mrf.mxu2  ;;  %v3548_v45 = vpop.f32.mrf.mxu3  ;;  %3834 = vmatpush.bf16.msrb.mxu2 %v5358_v42  ;;  %v3392_v42 = vadd.f32 %v7936_v17, %v7614_v35  ;;  %v5847_v17 = vld [vmem:[%s8717_s3 + $0x234] sm:$0xf] }
 0x62f   : > { %v8170_v44 = vadd.f32 %v3548_v45, %v3490_v21  ;;  %v3382_v45 = vadd.f32 %v7837_v59, %v7614_v35 }
 0x633   : > { %3590 = vmatmul.bf16.gmra.mxu3 %v8058_v27  ;;  %3609 = vmatmul.bf16.gmra.mxu2 %v7616_v24 }
 0x636   : > { %v3502_v7 = vpop.f32.mrf.mxu2  ;;  %v3551_v58 = vpop.f32.mrf.mxu3 }
 0x637   : > { %v3503_v6 = vadd.f32 %v3502_v7, %v7866_v61  ;;  %v8181_v23 = vadd.f32 %v3551_v58, %v3493_v50 }
 0x63e   : > { %v3504_v11 = vpop.f32.mrf.mxu2  ;;  %v3553_v61 = vpop.f32.mrf.mxu3 }
 0x63f   : > { %v8192_v50 = vadd.f32 %v3553_v61, %v3495_v46 }
 0x643   : > { %3614 = vmatmul.bf16.gmra.mxu2 %v7655_v28  ;;  %3663 = vmatmul.bf16.vlgmr.msra.gmra.mxu3 %v7532_v47  ;;  %v3441_v47 = vadd.f32 %v7843_v56, %v3382_v45  ;;  %v3451_v45 = vadd.f32 %v7943_v48, %v3392_v42  ;;  %v5403_v48 = vld [vmem:[%s8717_s3 + $0x238] sm:$0xf0] }
 0x645   : > { %v3500_v10 = vadd.f32 %v3499_v4, %v3441_v47  ;;  %v3446_v4 = vadd.f32 %v7901_v51, %v3387_v1  ;;  %v5411_v51 = vld [vmem:[%s8717_s3 + $0x248] sm:$0xf0]  ;;  %v3397_v1 = vadd.f32 %v7985_v32, %v7614_v35 }
 0x646   : > { %v3507_v53 = vpop.f32.mrf.mxu2  ;;  %v3556_v8 = vpop.f32.mrf.mxu3 }
 0x647   : > { %v3508_v12 = vadd.f32 %v3507_v53, %v7918_v39  ;;  %v8197_v21 = vadd.f32 %v3556_v8, %v3498_v60  ;;  %v5851_v39 = vld [vmem:[%s8717_s3 + $0x254] sm:$0xf]  ;;  %v5419_v60 = vld [vmem:[%s8717_s3 + $0x258] sm:$0xf0]  ;;  %v3505_v46 = vadd.f32 %v3504_v11, %v3446_v4  ;;  %v3456_v4 = vadd.f32 %v7992_v5, %v3397_v1 }
 0x648   : > { %v5422_v2 = vor.u32 %v5851_v39, %v5419_v60 }
 0x64a   : > { %3893 = vmatpush.bf16.msrb.mxu3 %v5422_v2 }
 0x64e   : > { %v3509_v40 = vpop.f32.mrf.mxu2  ;;  %v3558_v7 = vpop.f32.mrf.mxu3 }
 0x64f   : > { %v8214_v58 = vadd.f32 %v3558_v7, %v3500_v10  ;;  %v3510_v47 = vadd.f32 %v3509_v40, %v3451_v45  ;;  %v5406_v10 = vor.u32 %v5847_v17, %v5403_v48  ;;  %v5387_v48 = vld [vmem:[%s8717_s3 + $0x218] sm:$0xf0] }
 0x653   : > { %3619 = vmatmul.bf16.gmra.mxu2 %v7728_v33  ;;  %3668 = vmatmul.bf16.gmra.mxu3 %v7545_v49  ;;  %v5350_v49 = vor.u32 %v5833_v20, %v5347_v29 }
 0x655   : > { %3835 = vmatpush.bf16.msrb.mxu2 %v5350_v49 }
 0x656   : > { %v3512_v59 = vpop.f32.mrf.mxu2  ;;  %v3561_v56 = vpop.f32.mrf.mxu3 }
 0x657   : > { %v3513_v34 = vadd.f32 %v3512_v59, %v7960_v31  ;;  %v8219_v52 = vadd.f32 %v3561_v56, %v3503_v6  ;;  %v5414_v6 = vor.u32 %v5849_v19, %v5411_v51  ;;  %v5845_v51 = vld [vmem:[%s8717_s3 + $0x224] sm:$0xf] }
 0x659   : > { %3894 = vmatpush.bf16.msrb.mxu3 %v5414_v6  ;;  %v5395_v6 = vld [vmem:[%s8717_s3 + $0x228] sm:$0xf0] }
 0x65d   : > { %3895 = vmatpush.bf16.msrb.mxu3 %v5406_v10 }
 0x65e   : > { %v3514_v61 = vpop.f32.mrf.mxu2  ;;  %v3563_v53 = vpop.f32.mrf.mxu3 }
 0x65f   : > { %v8230_v31 = vadd.f32 %v3563_v53, %v3505_v46  ;;  %v3515_v20 = vadd.f32 %v3514_v61, %v3456_v4  ;;  %v5825_v4 = vld [vmem:[%s8717_s3 + $0x184] sm:$0xf] }
 0x663   : > { %3624 = vmatmul.bf16.gmra.mxu2 %v7848_v43  ;;  %3673 = vmatmul.bf16.gmra.mxu3 %v7559_v57  ;;  %v5831_v57 = vld [vmem:[%s8717_s3 + $0x1b4] sm:$0xf] }
 0x666   : > { %v3517_v11 = vpop.f32.mrf.mxu2  ;;  %v3566_v8 = vpop.f32.mrf.mxu3 }
 0x667   : > { %v3518_v22 = vadd.f32 %v3517_v11, %v8015_v41  ;;  %v8241_v13 = vadd.f32 %v3566_v8, %v3508_v12  ;;  %v5339_v41 = vld [vmem:[%s8717_s3 + $0x1b8] sm:$0xf0]  ;;  %v5398_v11 = vor.u32 %v5845_v51, %v5395_v6  ;;  %v3402_v8 = vadd.f32 %v8040_v26, %v7614_v35  ;;  %v5827_v26 = vld [vmem:[%s8717_s3 + $0x194] sm:$0xf] }
 0x668   : > { %v5342_v12 = vor.u32 %v5831_v57, %v5339_v41 }
 0x669   : > { %3896 = vmatpush.bf16.msrb.mxu3 %v5398_v11  ;;  %v3461_v42 = vadd.f32 %v8047_v14, %v3402_v8  ;;  %v5323_v14 = vld [vmem:[%s8717_s3 + $0x198] sm:$0xf0] }
 0x66a   : > { %3836 = vmatpush.bf16.msrb.mxu2 %v5342_v12  ;;  %v5326_v17 = vor.u32 %v5827_v26, %v5323_v14 }
 0x66e   : > { %v3519_v39 = vpop.f32.mrf.mxu2  ;;  %v3568_v60 = vpop.f32.mrf.mxu3 }
 0x66f   : > { %v8246_v2 = vadd.f32 %v3568_v60, %v3510_v47  ;;  %v3520_v45 = vadd.f32 %v3519_v39, %v3461_v42  ;;  %v5843_v39 = vld [vmem:[%s8717_s3 + $0x214] sm:$0xf] }
 0x670   : > { %v5390_v10 = vor.u32 %v5843_v39, %v5387_v48 }
 0x672   : > { %3897 = vmatpush.bf16.msrb.mxu3 %v5390_v10 }
 0x673   : > { %3629 = vmatmul.bf16.gmra.mxu2 %v7906_v30  ;;  %3678 = vmatmul.bf16.gmra.mxu3 %v7573_v15 }
 0x676   : > { %v3522_v40 = vpop.f32.mrf.mxu2  ;;  %v3571_v7 = vpop.f32.mrf.mxu3 }
 0x677   : > { %v3523_v59 = vadd.f32 %v3522_v40, %v8070_v55  ;;  %v8263_v56 = vadd.f32 %v3571_v7, %v3513_v34  ;;  %v5829_v55 = vld [vmem:[%s8717_s3 + $0x1a4] sm:$0xf]  ;;  %v5331_v34 = vld [vmem:[%s8717_s3 + $0x1a8] sm:$0xf0] }
 0x678   : > { %v5334_v32 = vor.u32 %v5829_v55, %v5331_v34 }
 0x67a   : > { %3837 = vmatpush.bf16.msrb.mxu2 %v5334_v32 }
 0x67e   : > { %v3524_v29 = vpop.f32.mrf.mxu2  ;;  %v3573_v49 = vpop.f32.mrf.mxu3  ;;  %3838 = vmatpush.bf16.msrb.mxu2 %v5326_v17 }
 0x67f   : > { %v8268_v46 = vadd.f32 %v3573_v49, %v3515_v20  ;;  %v5315_v20 = vld [vmem:[%s8717_s3 + $0x188] sm:$0xf0] }
 0x683   : > { %3634 = vmatmul.bf16.gmra.mxu2 %v7948_v36  ;;  %3683 = vmatmul.bf16.gmra.mxu3 %v7587_v9 }
 0x686   : > { %v3527_v53 = vpop.f32.mrf.mxu2  ;;  %v3576_v5 = vpop.f32.mrf.mxu3 }
 0x687   : > { %v3528_v61 = vadd.f32 %v3527_v53, %v8108_v63  ;;  %v8279_v19 = vadd.f32 %v3576_v5, %v3518_v22  ;;  %v3412_v53 = vadd.f32 %v8098_v62, %v7614_v35 }
 0x68e   : > { %v3529_v47 = vpop.f32.mrf.mxu2  ;;  %v3578_v63 = vpop.f32.mrf.mxu3 }
 0x68f   : > { %v8290_v22 = vadd.f32 %v3578_v63, %v3520_v45 }
 0x693   : > { %3639 = vmatmul.bf16.gmra.mxu2 %v8003_v37  ;;  %3688 = vmatmul.bf16.gmra.mxu3 %v7616_v24 }
 0x696   : > { %v3532_v60 = vpop.f32.mrf.mxu2  ;;  %v3581_v57 = vpop.f32.mrf.mxu3 }
 0x697   : > { %v3533_v41 = vadd.f32 %v3532_v60, %v8144_v3  ;;  %v8295_v12 = vadd.f32 %v3581_v57, %v3523_v59  ;;  %v3407_v3 = vadd.f32 %v8075_v54, %v7614_v35  ;;  %v5318_v54 = vor.u32 %v5825_v4, %v5315_v20 }
 0x699   : > { %v3466_v40 = vadd.f32 %v8100_v0, %v3407_v3  ;;  %3839 = vmatpush.bf16.msrb.mxu2 %v5318_v54 }
 0x69b   : > { %v3525_v7 = vadd.f32 %v3524_v29, %v3466_v40 }
 0x69e   : > { %v3534_v59 = vpop.f32.mrf.mxu2  ;;  %v3583_v1 = vpop.f32.mrf.mxu3 }
 0x69f   : > { %v3535_v49 = vadd.f32 %v3534_v59, %v8148_v25  ;;  %v8319_v55 = vadd.f32 %v3583_v1, %v3525_v7  ;;  %v3471_v25 = vadd.f32 %v8133_v38, %v3412_v53 }
 0x6a1   : > { %v3530_v5 = vadd.f32 %v3529_v47, %v3471_v25 }
 0x6a3   : > { %3644 = vmatmul.bf16.gmra.mxu2 %v8058_v27  ;;  %3693 = vmatmul.bf16.gmra.mxu3 %v7655_v28 }
 0x6a6   : > { %v3586_v0 = vpop.f32.mrf.mxu3  ;;  %v3605_v29 = vpop.f32.mrf.mxu2 }
 0x6a7   : > { %v8323_v34 = vadd.f32 %v3586_v0, %v3528_v61  ;;  %v8326_v32 = vadd.f32 %v3605_v29, %v8165_v16  ;;  %v5841_v61 = vld [vmem:[%s8717_s3 + $0x204] sm:$0xf]  ;;  %v5379_v16 = vld [vmem:[%s8717_s3 + $0x208] sm:$0xf0] }
 0x6a8   : > { %v5382_v42 = vor.u32 %v5841_v61, %v5379_v16  ;;  %v3723_v61 = vpop.f32.mrf.mxu0  ;;  %v3782_v16 = vpop.f32.mrf.mxu1 }
 0x6aa   : > { %3898 = vmatpush.bf16.msrb.mxu3 %v5382_v42 }
 0x6ae   : > { %v3588_v51 = vpop.f32.mrf.mxu3  ;;  %v3607_v6 = vpop.f32.mrf.mxu2 }
 0x6af   : > { %v8331_v11 = vadd.f32 %v3588_v51, %v3530_v5  ;;  %v8334_v8 = vadd.f32 %v3607_v6, %v8170_v44 }
 0x6b1   : > { %8931 = vst [vmem:[#allocation13_spill] sm:$0xff] %v8331_v11 }
 0x6b3   : > { %3649 = vmatmul.bf16.gmra.mxu2 %v8103_v18  ;;  %3698 = vmatmul.bf16.gmra.mxu3 %v7728_v33 }
 0x6b6   : > { %v3591_v35 = vpop.f32.mrf.mxu3  ;;  %v3610_v62 = vpop.f32.mrf.mxu2 }
 0x6b7   : > { %v8344_v38 = vadd.f32 %v3591_v35, %v3533_v41  ;;  %v8347_v44 = vadd.f32 %v3610_v62, %v8181_v23  ;;  %v3725_v62 = vpop.f32.mrf.mxu0 }
 0x6be   : > { %v3593_v45 = vpop.f32.mrf.mxu3  ;;  %v3612_v47 = vpop.f32.mrf.mxu2 }
 0x6bf   : > { %v8349_v63 = vadd.f32 %v3593_v45, %v3535_v49  ;;  %v8352_v60 = vadd.f32 %v3612_v47, %v8192_v50  ;;  %v5864_v45 = vld [vmem:[%s8719_s5 + $0x38] sm:$0xff] }
 0x6c0   : > { %4364 = vmatpush.bf16.msra.mxu0 %v5864_v45 }
 0x6c3   : > { %3703 = vmatmul.bf16.gmra.mxu3 %v7848_v43  ;;  %3840 = vmatmul.bf16.vlgmr.msrb.gmra.mxu2 %v7573_v15 }
 0x6c6   : > { %v3615_v57 = vpop.f32.mrf.mxu2  ;;  %v8356_v26 = vpop.f32.mrf.mxu3 }
 0x6c7   : > { %v8359_v41 = vadd.f32 %v3615_v57, %v8197_v21  ;;  %v3728_v57 = vpop.f32.mrf.mxu0 }
 0x6ce   : > { %v3617_v14 = vpop.f32.mrf.mxu2  ;;  %v8361_v23 = vpop.f32.mrf.mxu3 }
 0x6cf   : > { %v8364_v39 = vadd.f32 %v3617_v14, %v8214_v58  ;;  %v5896_v14 = vld [vmem:[%s8719_s5 + $0x138] sm:$0xff] }
 0x6d0   : > { %4420 = vmatpush.bf16.msra.mxu2 %v5896_v14 }
 0x6d3   : > { %3708 = vmatmul.bf16.gmra.mxu3 %v7906_v30  ;;  %3845 = vmatmul.bf16.gmra.mxu2 %v7587_v9 }
 0x6d6   : > { %v3620_v50 = vpop.f32.mrf.mxu2  ;;  %v8368_v17 = vpop.f32.mrf.mxu3 }
 0x6d7   : > { %v8371_v15 = vadd.f32 %v3620_v50, %v8219_v52 }
 0x6de   : > { %v3622_v48 = vpop.f32.mrf.mxu2  ;;  %v8373_v3 = vpop.f32.mrf.mxu3 }
 0x6df   : > { %v8376_v21 = vadd.f32 %v3622_v48, %v8230_v31 }
 0x6e3   : > { %3850 = vmatmul.bf16.gmra.mxu2 %v7616_v24  ;;  %3899 = vmatmul.bf16.vlgmr.msrb.gmra.mxu3 %v7587_v9 }
 0x6e6   : > { %v3625_v58 = vpop.f32.mrf.mxu2  ;;  %v8380_v10 = vpop.f32.mrf.mxu3 }
 0x6e7   : > { %v8383_v40 = vadd.f32 %v3625_v58, %v8241_v13 }
 0x6ee   : > { %v3627_v7 = vpop.f32.mrf.mxu2  ;;  %v8385_v59 = vpop.f32.mrf.mxu3 }
 0x6ef   : > { %v8388_v52 = vadd.f32 %v3627_v7, %v8246_v2  ;;  %v5871_v7 = vld [vmem:[%s8719_s5 + $0x70] sm:$0xff] }
 0x6f3   : > { %3855 = vmatmul.bf16.gmra.mxu2 %v7655_v28  ;;  %3904 = vmatmul.bf16.gmra.mxu3 %v7616_v24 }
 0x6f6   : > { %v3630_v31 = vpop.f32.mrf.mxu2  ;;  %v8392_v1 = vpop.f32.mrf.mxu3 }
 0x6f7   : > { %v8395_v9 = vadd.f32 %v3630_v31, %v8263_v56  ;;  %v3730_v31 = vpop.f32.mrf.mxu0 }
 0x6fe   : > { %v3632_v4 = vpop.f32.mrf.mxu2  ;;  %v8397_v20 = vpop.f32.mrf.mxu3 }
 0x6ff   : > { %v8400_v13 = vadd.f32 %v3632_v4, %v8268_v46  ;;  %v5862_v4 = vld [vmem:[%s8719_s5 + $0x28] sm:$0xff] }
 0x703   : > { %3860 = vmatmul.bf16.gmra.mxu2 %v7728_v33  ;;  %3909 = vmatmul.bf16.gmra.mxu3 %v7655_v28 }
 0x706   : > { %v3635_v2 = vpop.f32.mrf.mxu2  ;;  %v8404_v49 = vpop.f32.mrf.mxu3 }
 0x707   : > { %v8407_v24 = vadd.f32 %v3635_v2, %v8279_v19 }
 0x70e   : > { %v3637_v54 = vpop.f32.mrf.mxu2  ;;  %v8409_v0 = vpop.f32.mrf.mxu3 }
 0x70f   : > { %v8412_v56 = vadd.f32 %v3637_v54, %v8290_v22 }
 0x713   : > { %3865 = vmatmul.bf16.gmra.mxu2 %v7848_v43  ;;  %3914 = vmatmul.bf16.gmra.mxu3 %v7728_v33 }
 0x716   : > { %v3640_v46 = vpop.f32.mrf.mxu2  ;;  %v8416_v29 = vpop.f32.mrf.mxu3 }
 0x717   : > { %v8419_v28 = vadd.f32 %v3640_v46, %v8295_v12  ;;  %v5985_v46 = vld [vmem:[%s8718_s4] sm:$0x3] }
 0x71e   : > { %v3642_v53 = vpop.f32.mrf.mxu2  ;;  %v8421_v25 = vpop.f32.mrf.mxu3 }
 0x71f   : > { %v8424_v19 = vadd.f32 %v3642_v53, %v8319_v55  ;;  %v8480_v53 = vperm.slane %v5985_v46, 1 }
 0x721   : > { %v3667_v46 = vadd.f32 %v8361_v23, %v8480_v53  ;;  %v5857_v23 = vld [vmem:[%s8719_s5] sm:$0xff] }
 0x723   : > { %3870 = vmatmul.bf16.gmra.mxu2 %v7906_v30  ;;  %3919 = vmatmul.bf16.gmra.mxu3 %v7848_v43 }
 0x726   : > { %v3645_v22 = vpop.f32.mrf.mxu2  ;;  %v8428_v5 = vpop.f32.mrf.mxu3 }
 0x727   : > { %v8431_v33 = vadd.f32 %v3645_v22, %v8323_v34  ;;  %v5861_v22 = vld [vmem:[%s8719_s5 + $0x20] sm:$0xff] }
 0x72e   : > { %v8433_v51 = vpop.f32.mrf.mxu2  ;;  %v8435_v12 = vpop.f32.mrf.mxu3 }
 0x72f   : > { %8932 = vst [vmem:[#allocation16_spill] sm:$0xff] %v8433_v51 }
 0x733   : > { %3875 = vmatmul.bf16.gmra.mxu2 %v7948_v36  ;;  %3924 = vmatmul.bf16.gmra.mxu3 %v7906_v30  ;;  %v5872_v30 = vld [vmem:[%s8719_s5 + $0x78] sm:$0xff] }
 0x734   : > { %4378 = vmatpush.bf16.msra.mxu1 %v5872_v30 }
 0x736   : > { %v3650_v55 = vpop.f32.mrf.mxu2  ;;  %v8439_v6 = vpop.f32.mrf.mxu3 }
 0x737   : > { %v8442_v43 = vadd.f32 %v3650_v55, %v8344_v38  ;;  %v3784_v38 = vpop.f32.mrf.mxu1  ;;  %v3665_v55 = vadd.f32 %v8356_v26, %v8480_v53 }
 0x738   : > { %4379 = vmatpush.bf16.msra.mxu1 %v5871_v7  ;;  %v5859_v7 = vld [vmem:[%s8719_s5 + $0x10] sm:$0xff] }
 0x739   : > { %v3724_v14 = vadd.f32 %v3723_v61, %v3665_v55 }
 0x73b   : > { %v3783_v26 = vadd.f32 %v3782_v16, %v3724_v14  ;;  %v5895_v14 = vld [vmem:[%s8719_s5 + $0x130] sm:$0xff] }
 0x73c   : > { %4421 = vmatpush.bf16.msra.mxu2 %v5895_v14 }
 0x73e   : > { %v3652_v42 = vpop.f32.mrf.mxu2  ;;  %v8444_v35 = vpop.f32.mrf.mxu3 }
 0x73f   : > { %v8447_v34 = vadd.f32 %v3652_v42, %v8349_v63  ;;  %v3787_v58 = vpop.f32.mrf.mxu1  ;;  %v5860_v42 = vld [vmem:[%s8719_s5 + $0x18] sm:$0xff] }
 0x741   : > { %8933 = vst [vmem:[#allocation14_spill] sm:$0xff] %v8447_v34  ;;  %v5858_v34 = vld [vmem:[%s8719_s5 + $0x8] sm:$0xff] }
 0x743   : > { %3880 = vmatmul.bf16.gmra.mxu2 %v8003_v37  ;;  %3929 = vmatmul.bf16.gmra.mxu3 %v7948_v36  ;;  %v5863_v36 = vld [vmem:[%s8719_s5 + $0x30] sm:$0xff] }
 0x744   : > { %4365 = vmatpush.bf16.msra.mxu0 %v5863_v36  ;;  %v3733_v36 = vpop.f32.mrf.mxu0 }
 0x746   : > { %v8457_v47 = vpop.f32.mrf.mxu3  ;;  %v3841_v63 = vpop.f32.mrf.mxu2 }
 0x748   : > { %4366 = vmatpush.bf16.msra.mxu0 %v5862_v4 }
 0x74c   : > { %4367 = vmatpush.bf16.msra.mxu0 %v5861_v22  ;;  %v3842_v22 = vadd.f32 %v3841_v63, %v3783_v26  ;;  %v3735_v16 = vpop.f32.mrf.mxu0 }
 0x74e   : > { %v8462_v50 = vpop.f32.mrf.mxu3  ;;  %v3843_v48 = vpop.f32.mrf.mxu2 }
 0x750   : > { %4368 = vmatpush.bf16.msra.mxu0 %v5860_v42  ;;  %v3726_v42 = vadd.f32 %v3725_v62, %v3667_v46  ;;  %v5870_v62 = vld [vmem:[%s8719_s5 + $0x68] sm:$0xff] }
 0x751   : > { %4380 = vmatpush.bf16.msra.mxu1 %v5870_v62 }
 0x752   : > { %v3785_v63 = vadd.f32 %v3784_v38, %v3726_v42  ;;  %v3672_v38 = vadd.f32 %v8373_v3, %v8480_v53  ;;  %v5869_v3 = vld [vmem:[%s8719_s5 + $0x60] sm:$0xff] }
 0x753   : > { %3885 = vmatmul.bf16.gmra.mxu2 %v8058_v27  ;;  %3934 = vmatmul.bf16.gmra.mxu3 %v8003_v37  ;;  %v3789_v37 = vpop.f32.mrf.mxu1 }
 0x754   : > { %4369 = vmatpush.bf16.msra.mxu0 %v5859_v7  ;;  %v3738_v42 = vpop.f32.mrf.mxu0  ;;  %v3731_v14 = vadd.f32 %v3730_v31, %v3672_v38  ;;  %v5868_v31 = vld [vmem:[%s8719_s5 + $0x58] sm:$0xff] }
 0x755   : > { %4381 = vmatpush.bf16.msra.mxu1 %v5869_v3 }
 0x756   : > { %v8475_v2 = vpop.f32.mrf.mxu3  ;;  %v3846_v54 = vpop.f32.mrf.mxu2 }
 0x758   : > { %4370 = vmatpush.bf16.msra.mxu0 %v5858_v34 }
 0x759   : > { %4382 = vmatpush.bf16.msra.mxu1 %v5868_v31 }
 0x75b   : > { %v3792_v4 = vpop.f32.mrf.mxu1 }
 0x75c   : > { %4371 = vmatpush.bf16.msra.mxu0 %v5857_v23 }
 0x75e   : > { %v8490_v45 = vpop.f32.mrf.mxu3  ;;  %v3848_v30 = vpop.f32.mrf.mxu2 }
 0x763   : > { %3939 = vmatmul.bf16.gmra.mxu3 %v8058_v27  ;;  %v3670_v27 = vadd.f32 %v8368_v17, %v8480_v53  ;;  %v3794_v34 = vpop.f32.mrf.mxu1 }
 0x765   : > { %v3729_v46 = vadd.f32 %v3728_v57, %v3670_v27 }
 0x766   : > { %v3851_v61 = vpop.f32.mrf.mxu2  ;;  %v3900_v55 = vpop.f32.mrf.mxu3 }
 0x767   : > { %v3901_v51 = vadd.f32 %v3900_v55, %v3842_v22  ;;  %v3788_v22 = vadd.f32 %v3787_v58, %v3729_v46  ;;  %v5894_v55 = vld [vmem:[%s8719_s5 + $0x128] sm:$0xff]  ;;  %v3790_v58 = vadd.f32 %v3789_v37, %v3731_v14  ;;  %v3740_v46 = vpop.f32.mrf.mxu0  ;;  %v3677_v37 = vadd.f32 %v8385_v59, %v8480_v53 }
 0x768   : > { %4422 = vmatpush.bf16.msra.mxu2 %v5894_v55 }
 0x769   : > { %v3950_v11 = vmax.f32 %v8326_v32, %v3901_v51  ;;  %v3844_v32 = vadd.f32 %v3843_v48, %v3785_v63  ;;  %v3847_v48 = vadd.f32 %v3846_v54, %v3788_v22  ;;  %v3849_v54 = vadd.f32 %v3848_v30, %v3790_v58 }
 0x76a   : > { %v3736_v3 = vadd.f32 %v3735_v16, %v3677_v37  ;;  %v5893_v16 = vld [vmem:[%s8719_s5 + $0x120] sm:$0xff] }
 0x76b   : > { %v3797_v63 = vpop.f32.mrf.mxu1  ;;  %v3970_v62 = vmax.f32 %v3950_v11, 0.0  ;;  %v5867_v11 = vld [vmem:[%s8719_s5 + $0x50] sm:$0xff] }
 0x76c   : > { %4383 = vmatpush.bf16.msra.mxu1 %v5867_v11  ;;  %4423 = vmatpush.bf16.msra.mxu2 %v5893_v16 }
 0x76e   : > { %v3853_v51 = vpop.f32.mrf.mxu2  ;;  %v3902_v7 = vpop.f32.mrf.mxu3 }
 0x76f   : > { %v3903_v26 = vadd.f32 %v3902_v7, %v3844_v32 }
 0x771   : > { %v3951_v17 = vmax.f32 %v8334_v8, %v3903_v26 }
 0x773   : > { %3944 = vmatmul.bf16.gmra.mxu3 %v8103_v18  ;;  %v3675_v18 = vadd.f32 %v8380_v10, %v8480_v53  ;;  %v3799_v22 = vpop.f32.mrf.mxu1 }
 0x776   : > { %v3905_v23 = vpop.f32.mrf.mxu3  ;;  %v3856_v27 = vpop.f32.mrf.mxu2 }
 0x777   : > { %v3906_v57 = vadd.f32 %v3905_v23, %v3847_v48  ;;  %v3971_v48 = vmax.f32 %v3951_v17, 0.0  ;;  %v3680_v17 = vadd.f32 %v8392_v1, %v8480_v53 }
 0x779   : > { %v3952_v8 = vmax.f32 %v8347_v44, %v3906_v57  ;;  %v3734_v44 = vadd.f32 %v3733_v36, %v3675_v18 }
 0x77b   : > { %v3972_v32 = vmax.f32 %v3952_v8, 0.0  ;;  %v3793_v30 = vadd.f32 %v3792_v4, %v3734_v44  ;;  %v5866_v8 = vld [vmem:[%s8719_s5 + $0x48] sm:$0xff]  ;;  %v5865_v4 = vld [vmem:[%s8719_s5 + $0x40] sm:$0xff] }
 0x77c   : > { %4384 = vmatpush.bf16.msra.mxu1 %v5866_v8 }
 0x77d   : > { %v3990_v7 = vmax.f32 %v3970_v62, %v3972_v32  ;;  %v3852_v14 = vadd.f32 %v3851_v61, %v3793_v30  ;;  %v3743_v62 = vpop.f32.mrf.mxu0  ;;  %v3802_v61 = vpop.f32.mrf.mxu1 }
 0x77e   : > { %v3907_v26 = vpop.f32.mrf.mxu3  ;;  %v3858_v10 = vpop.f32.mrf.mxu2 }
 0x77f   : > { %v3908_v38 = vadd.f32 %v3907_v26, %v3849_v54  ;;  %v4000_v57 = vpack.c.bf16 %v3990_v7, %v3990_v7  ;;  %v3795_v7 = vadd.f32 %v3794_v34, %v3736_v3  ;;  %v5879_v34 = vld [vmem:[%s8719_s5 + $0xb0] sm:$0xff] }
 0x780   : > { %4385 = vmatpush.bf16.msra.mxu1 %v5865_v4 }
 0x781   : > { %v3953_v55 = vmax.f32 %v8352_v60, %v3908_v38  ;;  %v4012_v32 = vunpack.c.l.b16 %v4000_v57  ;;  %v3854_v44 = vadd.f32 %v3853_v51, %v3795_v7  ;;  %v3682_v51 = vadd.f32 %v8397_v20, %v8480_v53 }
 0x782   : > { %v3685_v20 = vadd.f32 %v8404_v49, %v8480_v53  ;;  %v5892_v49 = vld [vmem:[%s8719_s5 + $0x118] sm:$0xff] }
 0x783   : > { %v3973_v23 = vmax.f32 %v3953_v55, 0.0  ;;  %v3739_v55 = vadd.f32 %v3738_v42, %v3680_v17  ;;  %v5878_v42 = vld [vmem:[%s8719_s5 + $0xa8] sm:$0xff]  ;;  %4424 = vmatpush.bf16.msra.mxu2 %v5892_v49 }
 0x784   : > { %v3744_v4 = vadd.f32 %v3743_v62, %v3685_v20 }
 0x785   : > { %v3991_v36 = vmax.f32 %v3971_v48, %v3973_v23  ;;  %v3745_v37 = vpop.f32.mrf.mxu0  ;;  %v3798_v30 = vadd.f32 %v3797_v63, %v3739_v55  ;;  %v3804_v48 = vpop.f32.mrf.mxu1 }
 0x786   : > { %v3910_v60 = vpop.f32.mrf.mxu3  ;;  %v3861_v26 = vpop.f32.mrf.mxu2 }
 0x787   : > { %v4001_v18 = vpack.c.bf16 %v3991_v36, %v3991_v36  ;;  %v3911_v58 = vadd.f32 %v3910_v60, %v3852_v14  ;;  %v3857_v23 = vadd.f32 %v3856_v27, %v3798_v30  ;;  %v3741_v36 = vadd.f32 %v3740_v46, %v3682_v51  ;;  %v5877_v60 = vld [vmem:[%s8719_s5 + $0xa0] sm:$0xff]  ;;  %v5876_v46 = vld [vmem:[%s8719_s5 + $0x98] sm:$0xff] }
 0x789   : > { %v4013_v54 = vunpack.c.l.b16 %v4001_v18  ;;  %v3954_v59 = vmax.f32 %v8359_v41, %v3911_v58  ;;  %v5880_v41 = vld [vmem:[%s8719_s5 + $0xb8] sm:$0xff]  ;;  %v3800_v63 = vadd.f32 %v3799_v22, %v3741_v36  ;;  %v5875_v22 = vld [vmem:[%s8719_s5 + $0x90] sm:$0xff] }
 0x78a   : > { %4392 = vmatpush.bf16.msrb.mxu0 %v5880_v41 }
 0x78b   : > { %v4014_v31 = vpack.c.b16 %v4013_v54, %v4012_v32  ;;  %v3974_v27 = vmax.f32 %v3954_v59, 0.0  ;;  %v3859_v58 = vadd.f32 %v3858_v10, %v3800_v63  ;;  %v3687_v10 = vadd.f32 %v8409_v0, %v8480_v53 }
 0x78c   : > { %v3803_v59 = vadd.f32 %v3802_v61, %v3744_v4 }
 0x78d   : > { %4372 = vmatmul.bf16.vlgmr.msra.gmra.mxu0 %v4014_v31  ;;  %v3748_v18 = vpop.f32.mrf.mxu0 }
 0x78e   : > { %v3912_v38 = vpop.f32.mrf.mxu3  ;;  %4393 = vmatpush.bf16.msrb.mxu0 %v5879_v34  ;;  %v3863_v14 = vpop.f32.mrf.mxu2  ;;  %v3862_v62 = vadd.f32 %v3861_v26, %v3803_v59  ;;  %v3746_v34 = vadd.f32 %v3745_v37, %v3687_v10  ;;  %v5873_v26 = vld [vmem:[%s8719_s5 + $0x80] sm:$0xff] }
 0x78f   : > { %v3913_v11 = vadd.f32 %v3912_v38, %v3854_v44 }
 0x790   : > { %v3805_v36 = vadd.f32 %v3804_v48, %v3746_v34 }
 0x791   : > { %v3955_v1 = vmax.f32 %v8364_v39, %v3913_v11 }
 0x792   : > { %4394 = vmatpush.bf16.msrb.mxu0 %v5878_v42  ;;  %v3864_v37 = vadd.f32 %v3863_v14, %v3805_v36  ;;  %v3692_v14 = vadd.f32 %v8421_v25, %v8480_v53  ;;  %v5885_v25 = vld [vmem:[%s8719_s5 + $0xe0] sm:$0xff] }
 0x793   : > { %v3975_v16 = vmax.f32 %v3955_v1, 0.0 }
 0x795   : > { %v3750_v55 = vpop.f32.mrf.mxu0 }
 0x796   : > { %v3915_v57 = vpop.f32.mrf.mxu3  ;;  %4395 = vmatpush.bf16.msrb.mxu0 %v5877_v60  ;;  %v3866_v7 = vpop.f32.mrf.mxu2 }
 0x797   : > { %v3916_v39 = vadd.f32 %v3915_v57, %v3857_v23  ;;  %v3690_v57 = vadd.f32 %v8416_v29, %v8480_v53  ;;  %v5887_v29 = vld [vmem:[%s8719_s5 + $0xf0] sm:$0xff] }
 0x799   : > { %v3956_v8 = vmax.f32 %v8371_v15, %v3916_v39  ;;  %v3807_v15 = vpop.f32.mrf.mxu1  ;;  %v3749_v20 = vadd.f32 %v3748_v18, %v3690_v57 }
 0x79a   : > { %4396 = vmatpush.bf16.msrb.mxu0 %v5876_v46 }
 0x79b   : > { %v3976_v3 = vmax.f32 %v3956_v8, 0.0  ;;  %v5888_v8 = vld [vmem:[%s8719_s5 + $0xf8] sm:$0xff] }
 0x79c   : > { %4406 = vmatpush.bf16.msrb.mxu1 %v5888_v8 }
 0x79d   : > { %v3992_v32 = vmax.f32 %v3974_v27, %v3976_v3  ;;  %v3753_v63 = vpop.f32.mrf.mxu0  ;;  %v3808_v3 = vadd.f32 %v3807_v15, %v3749_v20  ;;  %v3700_v20 = vadd.f32 %v8439_v6, %v8480_v53  ;;  %v3702_v6 = vadd.f32 %v8444_v35, %v8480_v53 }
 0x79e   : > { %v3917_v54 = vpop.f32.mrf.mxu3  ;;  %4397 = vmatpush.bf16.msrb.mxu0 %v5875_v22  ;;  %v3868_v42 = vpop.f32.mrf.mxu2 }
 0x79f   : > { %v3918_v17 = vadd.f32 %v3917_v54, %v3859_v58  ;;  %v4002_v41 = vpack.c.bf16 %v3992_v32, %v3992_v32  ;;  %v5891_v58 = vld [vmem:[%s8719_s5 + $0x110] sm:$0xff]  ;;  %v3867_v32 = vadd.f32 %v3866_v7, %v3808_v3  ;;  %v3751_v54 = vadd.f32 %v3750_v55, %v3692_v14 }
 0x7a0   : > { %4407 = vmatpush.bf16.msrb.mxu1 %v5887_v29  ;;  %4425 = vmatpush.bf16.msra.mxu2 %v5891_v58  ;;  %v3697_v55 = vadd.f32 %v8435_v12, %v8480_v53 }
 0x7a1   : > { %v3957_v31 = vmax.f32 %v8376_v21, %v3918_v17  ;;  %v5874_v21 = vld [vmem:[%s8719_s5 + $0x88] sm:$0xff]  ;;  %v3809_v23 = vpop.f32.mrf.mxu1  ;;  %v4018_v0 = vunpack.c.l.b16 %v4002_v41 }
 0x7a2   : > { %4398 = vmatpush.bf16.msrb.mxu0 %v5874_v21  ;;  %v3810_v7 = vadd.f32 %v3809_v23, %v3751_v54 }
 0x7a3   : > { %v3977_v44 = vmax.f32 %v3957_v31, 0.0  ;;  %v3695_v31 = vadd.f32 %v8428_v5, %v8480_v53  ;;  %v5883_v5 = vld [vmem:[%s8719_s5 + $0xd0] sm:$0xff] }
 0x7a4   : > { %v3869_v59 = vadd.f32 %v3868_v42, %v3810_v7  ;;  %v3705_v7 = vadd.f32 %v8457_v47, %v8480_v53 }
 0x7a5   : > { %v3993_v38 = vmax.f32 %v3975_v16, %v3977_v44  ;;  %v3755_v15 = vpop.f32.mrf.mxu0  ;;  %v5884_v44 = vld [vmem:[%s8719_s5 + $0xd8] sm:$0xff]  ;;  %v3754_v41 = vadd.f32 %v3753_v63, %v3695_v31 }
 0x7a6   : > { %v3920_v11 = vpop.f32.mrf.mxu3  ;;  %4399 = vmatpush.bf16.msrb.mxu0 %v5873_v26  ;;  %v3871_v18 = vpop.f32.mrf.mxu2  ;;  %v3756_v42 = vadd.f32 %v3755_v15, %v3697_v55 }
 0x7a7   : > { %v4003_v51 = vpack.c.bf16 %v3993_v38, %v3993_v38  ;;  %v3921_v30 = vadd.f32 %v3920_v11, %v3862_v62 }
 0x7a9   : > { %v4019_v61 = vunpack.c.l.b16 %v4003_v51  ;;  %v3958_v1 = vmax.f32 %v8383_v40, %v3921_v30  ;;  %v3812_v48 = vpop.f32.mrf.mxu1 }
 0x7aa   : > { %v3813_v11 = vadd.f32 %v3812_v48, %v3754_v41  ;;  %v5889_v41 = vld [vmem:[%s8719_s5 + $0x100] sm:$0xff] }
 0x7ab   : > { %v4020_v39 = vpack.c.b16 %v4019_v61, %v4018_v0  ;;  %v3978_v49 = vmax.f32 %v3958_v1, 0.0  ;;  %v5882_v1 = vld [vmem:[%s8719_s5 + $0xc8] sm:$0xff] }
 0x7ac   : > { %v3872_v23 = vadd.f32 %v3871_v18, %v3813_v11 }
 0x7ad   : > { %4386 = vmatmul.bf16.vlgmr.msra.gmra.mxu1 %v4020_v39  ;;  %v3758_v30 = vpop.f32.mrf.mxu0 }
 0x7ae   : > { %v3922_v60 = vpop.f32.mrf.mxu3 }
 0x7af   : > { %v3923_v40 = vadd.f32 %v3922_v60, %v3864_v37  ;;  %v5881_v60 = vld [vmem:[%s8719_s5 + $0xc0] sm:$0xff] }
 0x7b1   : > { %v3959_v27 = vmax.f32 %v8388_v52, %v3923_v40  ;;  %v5886_v52 = vld [vmem:[%s8719_s5 + $0xe8] sm:$0xff]  ;;  %v3814_v10 = vpop.f32.mrf.mxu1 }
 0x7b2   : > { %4408 = vmatpush.bf16.msrb.mxu1 %v5886_v52  ;;  %v3815_v40 = vadd.f32 %v3814_v10, %v3756_v42  ;;  %v5904_v42 = vld [vmem:[%s8721_s7 + $0x38] sm:$0xff] }
 0x7b3   : > { %v3979_v34 = vmax.f32 %v3959_v27, 0.0  ;;  %v5890_v27 = vld [vmem:[%s8719_s5 + $0x108] sm:$0xff]  ;;  %4505 = vmatpush.bf16.msra.mxu3 %v5904_v42 }
 0x7b4   : > { %4426 = vmatpush.bf16.msra.mxu2 %v5890_v27 }
 0x7b5   : > { %v3760_v48 = vpop.f32.mrf.mxu0 }
 0x7b6   : > { %v3925_v46 = vpop.f32.mrf.mxu3  ;;  %4409 = vmatpush.bf16.msrb.mxu1 %v5885_v25 }
 0x7b7   : > { %v3926_v4 = vadd.f32 %v3925_v46, %v3867_v32 }
 0x7b8   : > { %4427 = vmatpush.bf16.msra.mxu2 %v5889_v41  ;;  %v5899_v41 = vld [vmem:[%s8721_s7 + $0x10] sm:$0xff] }
 0x7b9   : > { %v3960_v17 = vmax.f32 %v8395_v9, %v3926_v4  ;;  %v3873_v9 = vpop.f32.mrf.mxu2  ;;  %v3817_v26 = vpop.f32.mrf.mxu1  ;;  %v3761_v4 = vadd.f32 %v3760_v48, %v3702_v6 }
 0x7ba   : > { %4410 = vmatpush.bf16.msrb.mxu1 %v5884_v44  ;;  %v3874_v29 = vadd.f32 %v3873_v9, %v3815_v40 }
 0x7bb   : > { %v3980_v22 = vmax.f32 %v3960_v17, 0.0 }
 0x7bd   : > { %v3994_v16 = vmax.f32 %v3978_v49, %v3980_v22  ;;  %v3763_v25 = vpop.f32.mrf.mxu0 }
 0x7be   : > { %v3927_v62 = vpop.f32.mrf.mxu3  ;;  %4411 = vmatpush.bf16.msrb.mxu1 %v5883_v5  ;;  %v3764_v35 = vadd.f32 %v3763_v25, %v3705_v7  ;;  %v8936_v7 = vld [vmem:[#allocation14_spill] sm:$0xff] }
 0x7bf   : > { %v3928_v38 = vadd.f32 %v3927_v62, %v3869_v59  ;;  %v4004_v0 = vpack.c.bf16 %v3994_v16, %v3994_v16 }
 0x7c1   : > { %v3961_v21 = vmax.f32 %v8400_v13, %v3928_v38  ;;  %v3876_v39 = vpop.f32.mrf.mxu2  ;;  %v4024_v12 = vunpack.c.l.b16 %v4004_v0  ;;  %v3819_v58 = vpop.f32.mrf.mxu1 }
 0x7c2   : > { %4412 = vmatpush.bf16.msrb.mxu1 %v5882_v1  ;;  %v3820_v49 = vadd.f32 %v3819_v58, %v3761_v4 }
 0x7c3   : > { %v3981_v51 = vmax.f32 %v3961_v21, 0.0 }
 0x7c5   : > { %v3995_v61 = vmax.f32 %v3979_v34, %v3981_v51 }
 0x7c6   : > { %v3930_v13 = vpop.f32.mrf.mxu3  ;;  %4413 = vmatpush.bf16.msrb.mxu1 %v5881_v60 }
 0x7c7   : > { %v4005_v57 = vpack.c.bf16 %v3995_v61, %v3995_v61  ;;  %v3931_v36 = vadd.f32 %v3930_v13, %v3872_v23  ;;  %v3710_v13 = vadd.f32 %v8475_v2, %v8480_v53 }
 0x7c9   : > { %v4025_v37 = vunpack.c.l.b16 %v4005_v57  ;;  %v3962_v8 = vmax.f32 %v8407_v24, %v3931_v36  ;;  %v3759_v24 = vadd.f32 %v3758_v30, %v3700_v20  ;;  %v3878_v32 = vpop.f32.mrf.mxu2  ;;  %v3822_v31 = vpop.f32.mrf.mxu1  ;;  %v5903_v20 = vld [vmem:[%s8721_s7 + $0x30] sm:$0xff] }
 0x7ca   : > { %v3879_v59 = vadd.f32 %v3878_v32, %v3820_v49  ;;  %v3823_v38 = vadd.f32 %v3822_v31, %v3764_v35  ;;  %4506 = vmatpush.bf16.msra.mxu3 %v5903_v20 }
 0x7cb   : > { %v4026_v63 = vpack.c.b16 %v4025_v37, %v4024_v12  ;;  %v3818_v52 = vadd.f32 %v3817_v26, %v3759_v24  ;;  %v3982_v22 = vmax.f32 %v3962_v8, 0.0 }
 0x7cd   : > { %4400 = vmatmul.bf16.vlgmr.msrb.gmra.mxu0 %v4026_v63  ;;  %v3877_v46 = vadd.f32 %v3876_v39, %v3818_v52  ;;  %v3707_v39 = vadd.f32 %v8462_v50, %v8480_v53  ;;  %v5902_v63 = vld [vmem:[%s8721_s7 + $0x28] sm:$0xff]  ;;  %v8934_v52 = vld [vmem:[#allocation13_spill] sm:$0xff] }
 0x7ce   : > { %v3932_v14 = vpop.f32.mrf.mxu3  ;;  %4507 = vmatpush.bf16.msra.mxu3 %v5902_v63 }
 0x7cf   : > { %v3933_v3 = vadd.f32 %v3932_v14, %v3874_v29 }
 0x7d1   : > { %v3963_v18 = vmax.f32 %v8412_v56, %v3933_v3  ;;  %v3881_v56 = vpop.f32.mrf.mxu2  ;;  %v3824_v47 = vpop.f32.mrf.mxu1 }
 0x7d2   : > { %v3882_v55 = vadd.f32 %v3881_v56, %v3823_v38  ;;  %v5897_v38 = vld [vmem:[%s8721_s7] sm:$0xff] }
 0x7d3   : > { %v3983_v21 = vmax.f32 %v3963_v18, 0.0 }
 0x7d6   : > { %v3935_v54 = vpop.f32.mrf.mxu3 }
 0x7d7   : > { %v3936_v17 = vadd.f32 %v3935_v54, %v3877_v46  ;;  %v8935_v46 = vld [vmem:[#allocation16_spill] sm:$0xff] }
 0x7d8   : > { %v3648_v54 = vadd.f32 %v8935_v46, %v8934_v52 }
 0x7d9   : > { %v3964_v15 = vmax.f32 %v8419_v28, %v3936_v17  ;;  %v3765_v28 = vpop.f32.mrf.mxu0  ;;  %v3883_v51 = vpop.f32.mrf.mxu2 }
 0x7da   : > { %v3827_v37 = vpop.f32.mrf.mxu1  ;;  %v3766_v60 = vadd.f32 %v3765_v28, %v3707_v39  ;;  %v5898_v28 = vld [vmem:[%s8721_s7 + $0x8] sm:$0xff] }
 0x7db   : > { %v3984_v10 = vmax.f32 %v3964_v15, 0.0 }
 0x7dc   : > { %v3825_v48 = vadd.f32 %v3824_v47, %v3766_v60  ;;  %v5912_v47 = vld [vmem:[%s8723_s9 + $0x38] sm:$0xff] }
 0x7dd   : > { %v3996_v16 = vmax.f32 %v3982_v22, %v3984_v10  ;;  %4590 = vmatpush.bf16.msra.mxu0 %v5912_v47 }
 0x7de   : > { %v3937_v44 = vpop.f32.mrf.mxu3  ;;  %v3884_v24 = vadd.f32 %v3883_v51, %v3825_v48  ;;  %v5910_v51 = vld [vmem:[%s8723_s9 + $0x28] sm:$0xff]  ;;  %v5905_v48 = vld [vmem:[%s8723_s9] sm:$0xff] }
 0x7df   : > { %v3938_v9 = vadd.f32 %v3937_v44, %v3879_v59  ;;  %v4006_v11 = vpack.c.bf16 %v3996_v16, %v3996_v16 }
 0x7e1   : > { %v3965_v62 = vmax.f32 %v8424_v19, %v3938_v9  ;;  %v4030_v61 = vunpack.c.l.b16 %v4006_v11  ;;  %v3768_v57 = vpop.f32.mrf.mxu0  ;;  %v3886_v8 = vpop.f32.mrf.mxu2  ;;  %v5901_v9 = vld [vmem:[%s8721_s7 + $0x20] sm:$0xff]  ;;  %v5911_v11 = vld [vmem:[%s8723_s9 + $0x30] sm:$0xff] }
 0x7e2   : > { %v3769_v12 = vadd.f32 %v3768_v57, %v3710_v13  ;;  %4508 = vmatpush.bf16.msra.mxu3 %v5901_v9  ;;  %4591 = vmatpush.bf16.msra.mxu0 %v5911_v11 }
 0x7e3   : > { %v3985_v5 = vmax.f32 %v3965_v62, 0.0  ;;  %v5900_v62 = vld [vmem:[%s8721_s7 + $0x18] sm:$0xff] }
 0x7e4   : > { %v3828_v2 = vadd.f32 %v3827_v37, %v3769_v12 }
 0x7e5   : > { %v3997_v34 = vmax.f32 %v3983_v21, %v3985_v5 }
 0x7e6   : > { %v3940_v30 = vpop.f32.mrf.mxu3  ;;  %v3887_v40 = vadd.f32 %v3886_v8, %v3828_v2  ;;  %4509 = vmatpush.bf16.msra.mxu3 %v5900_v62  ;;  %4592 = vmatpush.bf16.msra.mxu0 %v5910_v51 }
 0x7e7   : > { %v4007_v23 = vpack.c.bf16 %v3997_v34, %v3997_v34  ;;  %v3941_v0 = vadd.f32 %v3940_v30, %v3882_v55 }
 0x7e9   : > { %v4031_v1 = vunpack.c.l.b16 %v4007_v23  ;;  %v3966_v19 = vmax.f32 %v8431_v33, %v3941_v0  ;;  %v3712_v33 = vadd.f32 %v8490_v45, %v8480_v53  ;;  %v3770_v27 = vpop.f32.mrf.mxu0  ;;  %v3829_v53 = vpop.f32.mrf.mxu1  ;;  %v5909_v23 = vld [vmem:[%s8723_s9 + $0x20] sm:$0xff] }
 0x7ea   : > { %v3888_v45 = vpop.f32.mrf.mxu2  ;;  %4510 = vmatpush.bf16.msra.mxu3 %v5899_v41  ;;  %4593 = vmatpush.bf16.msra.mxu0 %v5909_v23 }
 0x7eb   : > { %v4032_v26 = vpack.c.b16 %v4031_v1, %v4030_v61  ;;  %v3771_v29 = vadd.f32 %v3770_v27, %v3712_v33  ;;  %v3986_v18 = vmax.f32 %v3966_v19, 0.0  ;;  %v5921_v61 = vld [vmem:[%s8720_s6] ss:$0 sm:$0xff]  ;;  %v5908_v27 = vld [vmem:[%s8723_s9 + $0x18] sm:$0xff] }
 0x7ed   : > { %4414 = vmatmul.bf16.vlgmr.msrb.gmra.mxu1 %v4032_v26  ;;  %v3830_v58 = vadd.f32 %v3829_v53, %v3771_v29  ;;  %v5906_v29 = vld [vmem:[%s8723_s9 + $0x8] sm:$0xff] }
 0x7ee   : > { %v3942_v36 = vpop.f32.mrf.mxu3  ;;  %4511 = vmatpush.bf16.msra.mxu3 %v5898_v28  ;;  %4594 = vmatpush.bf16.msra.mxu0 %v5908_v27 }
 0x7ef   : > { %v3943_v32 = vadd.f32 %v3942_v36, %v3884_v24  ;;  %v3889_v4 = vadd.f32 %v3888_v45, %v3830_v58  ;;  %v5922_v24 = vld [vmem:[%s8722_s8] ss:$0 sm:$0xff] }
 0x7f1   : > { %v3967_v15 = vmax.f32 %v3648_v54, %v3943_v32 }
 0x7f2   : > { %4512 = vmatpush.bf16.msra.mxu3 %v5897_v38 }
 0x7f3   : > { %v3987_v22 = vmax.f32 %v3967_v15, 0.0 }
 0x7f6   : > { %v3945_v50 = vpop.f32.mrf.mxu3 }
 0x7f7   : > { %v3946_v14 = vadd.f32 %v3945_v50, %v3887_v40  ;;  %v5907_v50 = vld [vmem:[%s8723_s9 + $0x10] sm:$0xff] }
 0x7f8   : > { %4595 = vmatpush.bf16.msra.mxu0 %v5907_v50 }
 0x7f9   : > { %v3968_v3 = vmax.f32 %v8442_v43, %v3946_v14 }
 0x7fb   : > { %v3988_v6 = vmax.f32 %v3968_v3, 0.0 }
 0x7fc   : > { %4596 = vmatpush.bf16.msra.mxu0 %v5906_v29 }
 0x7fd   : > { %v3998_v17 = vmax.f32 %v3986_v18, %v3988_v6  ;;  %v5923_v6 = vld [vmem:[%s8724_s10] ss:$0 sm:$0xff] }
 0x7fe   : > { %v3947_v25 = vpop.f32.mrf.mxu3 }
 0x7ff   : > { %v3948_v31 = vadd.f32 %v3947_v25, %v3889_v4  ;;  %v4008_v43 = vpack.c.bf16 %v3998_v17, %v3998_v17 }
 0x800   : > { %4597 = vmatpush.bf16.msra.mxu0 %v5905_v48 }
 0x801   : > { %v3969_v49 = vmax.f32 %v8936_v7, %v3948_v31  ;;  %v4036_v16 = vunpack.c.l.b16 %v4008_v43 }
 0x803   : > { %v3989_v10 = vmax.f32 %v3969_v49, 0.0 }
 0x805   : > { %v3999_v56 = vmax.f32 %v3987_v22, %v3989_v10 }
 0x807   : > { %v4009_v59 = vpack.c.bf16 %v3999_v56, %v3999_v56 }
 0x809   : > { %v4037_v44 = vunpack.c.l.b16 %v4009_v59 }
 0x80a   : > { %v4373_v21 = vpop.f32.mrf.mxu0 }
 0x80b   : > { %v4038_v35 = vpack.c.b16 %v4037_v44, %v4036_v16  ;;  %v4374_v1 = vadd.f32 %v5921_v61, %v4373_v21 }
 0x80d   : > { %4428 = vmatmul.bf16.vlgmr.msra.gmra.mxu2 %v4038_v35 }
 0x812   : > { %v4375_v55 = vpop.f32.mrf.mxu0 }
 0x813   : > { %v4376_v13 = vadd.f32 %v5921_v61, %v4375_v55 }
 0x82a   : > { %v4387_v5 = vpop.f32.mrf.mxu1 }
 0x82b   : > { %v4388_v26 = vadd.f32 %v4387_v5, %v4374_v1 }
 0x832   : > { %v4389_v34 = vpop.f32.mrf.mxu1 }
 0x833   : > { %v4390_v57 = vadd.f32 %v4389_v34, %v4376_v13 }
 0x84a   : > { %v4401_v30 = vpop.f32.mrf.mxu0 }
 0x84b   : > { %v4402_v36 = vadd.f32 %v4401_v30, %v4388_v26 }
 0x852   : > { %v4403_v42 = vpop.f32.mrf.mxu0 }
 0x853   : > { %v4404_v12 = vadd.f32 %v4403_v42, %v4390_v57 }
 0x86a   : > { %v4415_v0 = vpop.f32.mrf.mxu1 }
 0x86b   : > { %v4416_v37 = vadd.f32 %v4415_v0, %v4402_v36 }
 0x872   : > { %v4417_v39 = vpop.f32.mrf.mxu1 }
 0x873   : > { %v4418_v8 = vadd.f32 %v4417_v39, %v4404_v12 }
 0x890   : > { %v4429_v19 = vpop.f32.mrf.mxu2 }
 0x891   : > { %v4430_v60 = vadd.f32 %v4429_v19, %v4416_v37 }
 0x893   : > { %v4434_v20 = vmax.f32 %v4430_v60, 0.0 }
 0x898   : > { %v4431_v33 = vpop.f32.mrf.mxu2 }
 0x899   : > { %v4432_v2 = vadd.f32 %v4431_v33, %v4418_v8 }
 0x89b   : > { %v4435_v40 = vmax.f32 %v4432_v2, 0.0 }
 0x89d   : > { %v4436_v63 = vpack.c.bf16 %v4435_v40, %v4434_v20 }
 0x89f   : > { %4513 = vmatmul.bf16.vlgmr.msra.gmra.mxu3 %v4436_v63 }
 0x922   : > { %v4514_v14 = vpop.f32.mrf.mxu3 }
 0x923   : > { %v4515_v3 = vadd.f32 %v5922_v24, %v4514_v14 }
 0x925   : > { %v4519_v58 = vmax.f32 %v4515_v3, 0.0 }
 0x92a   : > { %v4516_v53 = vpop.f32.mrf.mxu3 }
 0x92b   : > { %v4517_v45 = vadd.f32 %v5922_v24, %v4516_v53 }
 0x92d   : > { %v4520_v18 = vmax.f32 %v4517_v45, 0.0 }
 0x92f   : > { %v4521_v32 = vpack.c.bf16 %v4520_v18, %v4519_v58 }
 0x931   : > { %4598 = vmatmul.bf16.vlgmr.msra.gmra.mxu0 %v4521_v32 }
 0x9ae   : > { %v4599_v52 = vpop.f32.mrf.mxu0 }
 0x9af   : > { %v4600_v46 = vadd.f32 %v5923_v6, %v4599_v52 }
 0x9b1   : > { %4604 = vst [vmem:[%s388_s16] sm:$0xff] %v4600_v46 }
 0x9b6   : > { %v4601_v54 = vpop.f32.mrf.mxu0 }
 0x9b7   : > { %v4602_v4 = vadd.f32 %v5923_v6, %v4601_v54 }
 0x9b9   : > { %4605 = vst [vmem:[%s388_s16 + $0x8] sm:$0xff] %v4602_v4 }
 0x9ba PF: > { %s21_s17 = sadd.s32 1, %s5992_s17  }
 0x9bb   : > { %p18_p5 = scmp.ge.s32.totalorder %s21_s17, 4  }
 0x9bd   :  { %20 = sbr.rel (!%p18_p5) target bundleno = 1 (0x1), region = 94 }

</bundles_post_ra>
